<compile_context>
chip_gen: v7x
topology: tpu7x:2x2x1
jax: 0.10.0
libtpu: 0.0.40
codegen_flags: <defaults>
</compile_context>

<pallas_src>
import functools

import jax
import jax.numpy as jnp
from jax.experimental import pallas as pl
from jax.experimental.pallas import tpu as pltpu

_BN_EPS = 1e-5
_VMEM_LIMIT = 32 * 1024 * 1024   # explicit scoped-VMEM budget, safe on v5e/v6e/v7x


def _cparams():
    return pltpu.CompilerParams(
        dimension_semantics=("parallel",),
        vmem_limit_bytes=_VMEM_LIMIT,
    )


def _row_tiling(m):
    """Pick a row tile (multiple of 8) dividing m, preferring >= 2 grid steps."""
    cands = (512, 256, 128, 64, 32, 16, 8)
    for t in cands:
        if m % t == 0 and m // t >= 2:
            return t, m
    for t in cands:
        if m % t == 0:
            return t, m
    return 256, pl.cdiv(m, 256) * 256   # fallback: pad rows (not hit in __main__)


# ----------------------------------------------------------------------------
# Pallas kernels
# ----------------------------------------------------------------------------

def _dual_1x1_kernel(x_ref, w_ref, b_ref, o1_ref, o2_ref):
    # x:(TM,K) bf16, w:(K,2C) bf16, b:(1,2C) f32 -> o1,o2:(TM,C) bf16
    acc = jnp.dot(x_ref[...], w_ref[...], preferred_element_type=jnp.float32)
    acc = acc + b_ref[...]
    y = acc * jax.nn.sigmoid(acc)          # swish, exp/recip on the EUP
    c = o1_ref.shape[-1]
    o1_ref[...] = y[:, :c].astype(o1_ref.dtype)
    o2_ref[...] = y[:, c:].astype(o2_ref.dtype)


def _split_k_1x1_kernel(x1_ref, x2_ref, w1_ref, w2_ref, b_ref, o_ref):
    # conv3 over the virtual concat [x1 | x2]: split-K, two dots, one f32 acc.
    acc = jnp.dot(x1_ref[...], w1_ref[...], preferred_element_type=jnp.float32)
    acc = acc + jnp.dot(x2_ref[...], w2_ref[...], preferred_element_type=jnp.float32)
    acc = acc + b_ref[...]
    o_ref[...] = (acc * jax.nn.sigmoid(acc)).astype(o_ref.dtype)


def _conv3x3_kernel(xf_ref, w_ref, b_ref, o_ref, *, wp):
    # xf:(L_in,Cin) bf16 = row-flattened spatially-padded image (in VMEM),
    # w:(9,Cin,Cout) bf16 folded weights, b:(1,Cout) f32, o:(L_out,Cout) bf16
    # with L_out = H*wp; the 2 pad columns of each row are dropped by the caller.
    l_out, cout = o_ref.shape
    acc = jnp.zeros((l_out, cout), jnp.float32)
    for ky in range(3):
        for kx in range(3):
            off = ky * wp + kx                       # static tap offset
            xs = xf_ref[off:off + l_out, :]          # contiguous shifted slice
            acc = acc + jnp.dot(xs, w_ref[ky * 3 + kx],
                                preferred_element_type=jnp.float32)
    acc = acc + b_ref[...]
    o_ref[...] = (acc * jax.nn.sigmoid(acc)).astype(o_ref.dtype)


# ----------------------------------------------------------------------------
# Wrappers (BN folding + pallas_call plumbing)
# ----------------------------------------------------------------------------

def _bn_scale_bias(p):
    scale = p["gamma"] / jnp.sqrt(p["var"] + _BN_EPS)
    bias = (p["beta"] - p["mean"] * scale).astype(jnp.float32)
    return scale, bias


def fold_bn_1x1(p):
    scale, bias = _bn_scale_bias(p)
    w = p["w"][:, :, 0, 0]                           # (Cout, Cin)
    w_mat = (w * scale[:, None]).T                   # (Cin, Cout)
    return w_mat.astype(jnp.bfloat16), bias


def fold_bn_3x3(p):
    scale, bias = _bn_scale_bias(p)
    cout, cin = p["w"].shape[:2]
    w = jnp.transpose(p["w"], (2, 3, 1, 0)) * scale  # (3,3,Cin,Cout), t = ky*3+kx
    return w.reshape(9, cin, cout).astype(jnp.bfloat16), bias


def dual_conv1x1_bn_swish(x2d, w12, b12, cmid):
    m, k = x2d.shape
    ntot = w12.shape[1]
    tm, mp = _row_tiling(m)
    if mp != m:
        x2d = jnp.pad(x2d, ((0, mp - m), (0, 0)))
    y1, y2 = pl.pallas_call(
        _dual_1x1_kernel,
        out_shape=(jax.ShapeDtypeStruct((mp, cmid), jnp.bfloat16),
                   jax.ShapeDtypeStruct((mp, cmid), jnp.bfloat16)),
        grid=(mp // tm,),
        in_specs=[
            pl.BlockSpec((tm, k), lambda i: (i, 0)),
            pl.BlockSpec((k, ntot), lambda i: (0, 0)),
            pl.BlockSpec((1, ntot), lambda i: (0, 0)),
        ],
        out_specs=(pl.BlockSpec((tm, cmid), lambda i: (i, 0)),
                   pl.BlockSpec((tm, cmid), lambda i: (i, 0))),
        compiler_params=_cparams(),
    )(x2d, w12, b12.reshape(1, ntot))
    return y1[:m], y2[:m]


def conv3x3_bn_swish(x_nhwc, w9, bias):
    n, h, w, cin = x_nhwc.shape
    cout = w9.shape[-1]
    wp = w + 2
    # Halo pad (1 top / 2 bottom / 1 left / 1 right) so every shifted slice of
    # the row-flattened image stays in bounds; extra pad only feeds garbage rows.
    xp = jnp.pad(x_nhwc.astype(jnp.bfloat16), ((0, 0), (1, 2), (1, 1), (0, 0)))
    l_in = (h + 3) * wp
    l_out = h * wp
    xf = xp.reshape(n, l_in, cin)
    out = pl.pallas_call(
        functools.partial(_conv3x3_kernel, wp=wp),
        out_shape=jax.ShapeDtypeStruct((n, l_out, cout), jnp.bfloat16),
        grid=(n,),
        in_specs=[
            pl.BlockSpec((None, l_in, cin), lambda i: (i, 0, 0)),
            pl.BlockSpec((9, cin, cout), lambda i: (0, 0, 0)),
            pl.BlockSpec((1, cout), lambda i: (0, 0)),
        ],
        out_specs=pl.BlockSpec((None, l_out, cout), lambda i: (i, 0, 0)),
        compiler_params=_cparams(),
    )(xf, w9, bias.reshape(1, cout))
    # each flattened row is (h, padded-width): drop the 2 pad columns
    return out.reshape(n, h, wp, cout)[:, :, :w, :]


def split_k_conv1x1_bn_swish(x1_2d, x2_2d, w1, w2, bias, out_dtype=jnp.float32):
    m, k = x1_2d.shape
    nout = w1.shape[1]
    tm, mp = _row_tiling(m)
    if mp != m:
        x1_2d = jnp.pad(x1_2d, ((0, mp - m), (0, 0)))
        x2_2d = jnp.pad(x2_2d, ((0, mp - m), (0, 0)))
    out = pl.pallas_call(
        _split_k_1x1_kernel,
        out_shape=jax.ShapeDtypeStruct((mp, nout), out_dtype),
        grid=(mp // tm,),
        in_specs=[
            pl.BlockSpec((tm, k), lambda i: (i, 0)),
            pl.BlockSpec((tm, k), lambda i: (i, 0)),
            pl.BlockSpec((k, nout), lambda i: (0, 0)),
            pl.BlockSpec((k, nout), lambda i: (0, 0)),
            pl.BlockSpec((1, nout), lambda i: (0, 0)),
        ],
        out_specs=pl.BlockSpec((tm, nout), lambda i: (i, 0)),
        compiler_params=_cparams(),
    )(x1_2d, x2_2d, w1, w2, bias.reshape(1, nout))
    return out[:m]


# ----------------------------------------------------------------------------
# CSPStage forward (block_fn = BasicBlock, n = 1, spp = False, act = swish)
# ----------------------------------------------------------------------------

def cspstage_forward(x_nchw, params):
    n, cin, h, w = x_nchw.shape
    m = n * h * w
    x2d = jnp.transpose(x_nchw, (0, 2, 3, 1)).reshape(m, cin).astype(jnp.bfloat16)

    # conv1 || conv2 (1x1) fused into one matmul over the shared input
    w1, b1 = fold_bn_1x1(params["conv1"])
    w2, b2 = fold_bn_1x1(params["conv2"])
    cmid = w1.shape[1]
    y1, y2 = dual_conv1x1_bn_swish(
        x2d, jnp.concatenate([w1, w2], axis=1), jnp.concatenate([b1, b2]), cmid)

    # BasicBlock (shortcut=False): two 3x3 ConvBNLayer + swish
    y2 = y2.reshape(n, h, w, cmid)
    wb1, bb1 = fold_bn_3x3(params["block_conv1"])
    wb2, bb2 = fold_bn_3x3(params["block_conv2"])
    y2 = conv3x3_bn_swish(y2, wb1, bb1)
    y2 = conv3x3_bn_swish(y2, wb2, bb2)
    y2 = y2.reshape(m, cmid)

    # conv3 over the (virtual) channel concat [y1 | y2]: split-K fused kernel
    w3, b3 = fold_bn_1x1(params["conv3"])            # (2*cmid, ch_out)
    out2d = split_k_conv1x1_bn_swish(y1, y2, w3[:cmid], w3[cmid:], b3,
                                     out_dtype=jnp.float32)
    cout = w3.shape[1]
    return jnp.transpose(out2d.reshape(n, h, w, cout), (0, 3, 1, 2))


# ----------------------------------------------------------------------------
# Pure-JAX f32 reference (lax.conv), used only to validate the Pallas pipeline
# ----------------------------------------------------------------------------

def _ref_conv_bn_swish(x_nhwc, p):
    w = p["w"]
    pad = w.shape[2] // 2
    w_hwio = jnp.transpose(w, (2, 3, 1, 0))
    y = jax.lax.conv_general_dilated(
        x_nhwc, w_hwio, (1, 1), [(pad, pad), (pad, pad)],
        dimension_numbers=("NHWC", "HWIO", "NHWC"),
        preferred_element_type=jnp.float32)
    scale = p["gamma"] / jnp.sqrt(p["var"] + _BN_EPS)
    y = y * scale + (p["beta"] - p["mean"] * scale)
    return y * jax.nn.sigmoid(y)


def cspstage_reference(x_nchw, params):
    x = jnp.transpose(x_nchw, (0, 2, 3, 1))
    y1 = _ref_conv_bn_swish(x, params["conv1"])
    y2 = _ref_conv_bn_swish(x, params["conv2"])
    y2 = _ref_conv_bn_swish(y2, params["block_conv1"])
    y2 = _ref_conv_bn_swish(y2, params["block_conv2"])
    y = jnp.concatenate([y1, y2], axis=-1)
    y = _ref_conv_bn_swish(y, params["conv3"])
    return jnp.transpose(y, (0, 3, 1, 2))


# ----------------------------------------------------------------------------
# Deterministic parameter construction
# ----------------------------------------------------------------------------

def _make_convbn_params(key, cin, cout, ksize):
    k1, k2, k3, k4, k5 = jax.random.split(key, 5)
    return dict(
        w=0.1 * jax.random.normal(k1, (cout, cin, ksize, ksize), jnp.float32),
        gamma=1.0 + 0.1 * jax.random.normal(k2, (cout,), jnp.float32),
        beta=0.1 * jax.random.normal(k3, (cout,), jnp.float32),
        mean=0.1 * jax.random.normal(k4, (cout,), jnp.float32),
        var=jnp.abs(jax.random.normal(k5, (cout,), jnp.float32)) + 0.5,
    )


def make_cspstage_params(key, ch_in, ch_out):
    ch_mid = ch_out // 2
    keys = jax.random.split(key, 5)
    return dict(
        conv1=_make_convbn_params(keys[0], ch_in, ch_mid, 1),
        conv2=_make_convbn_params(keys[1], ch_in, ch_mid, 1),
        block_conv1=_make_convbn_params(keys[2], ch_mid, ch_mid, 3),
        block_conv2=_make_convbn_params(keys[3], ch_mid, ch_mid, 3),
        conv3=_make_convbn_params(keys[4], 2 * ch_mid, ch_out, 1),
    )


# ----------------------------------------------------------------------------
# Main
# ----------------------------------------------------------------------------

if __name__ == "__main__":
    key = jax.random.PRNGKey(0)
    kx, kp = jax.random.split(key)

    batch, ch_in, ch_out, hw = 2, 8, 8, 16
    x = jax.random.normal(kx, (batch, ch_in, hw, hw), jnp.float32)   # NCHW input
    params = make_cspstage_params(kp, ch_in, ch_out)

    fwd = jax.jit(functools.partial(cspstage_forward, params=params))
    out = jax.block_until_ready(fwd(x))
    assert out.shape == (batch, ch_out, hw, hw), out.shape

    ref = jax.block_until_ready(cspstage_reference(x, params))
    max_err = float(jnp.max(jnp.abs(out - ref)))
    # bf16 operands / intermediates -> looser tolerance than pure f32
    assert jnp.allclose(out, ref, atol=5e-2, rtol=5e-2), max_err

    print("KERNEL_OK")
</pallas_src>

<mosaic_0001>
module attributes {stable_mosaic.version = 11 : i64} {
  func.func @_dual_1x1_kernel(%arg0: i32, %arg1: memref<256x8xbf16, #tpu.memory_space<vmem>>, %arg2: memref<8x8xbf16, #tpu.memory_space<vmem>>, %arg3: memref<1x8xf32, #tpu.memory_space<vmem>>, %arg4: memref<256x4xbf16, #tpu.memory_space<vmem>>, %arg5: memref<256x4xbf16, #tpu.memory_space<vmem>>) attributes {dimension_semantics = [#tpu.dimension_semantics<parallel>], iteration_bounds = array<i64: 2>, scalar_prefetch = 0 : i64, scratch_operands = 0 : i64, tpu.core_type = #tpu.core_type<tc>, window_params = [{transform_indices = @transform_0, window_bounds = array<i64: 256, 8>}, {pipeline_mode = #tpu.pipeline_mode<synchronous>, transform_indices = @transform_1, window_bounds = array<i64: 8, 8>}, {pipeline_mode = #tpu.pipeline_mode<synchronous>, transform_indices = @transform_2, window_bounds = array<i64: 1, 8>}, {transform_indices = @transform_3, window_bounds = array<i64: 256, 4>}, {transform_indices = @transform_4, window_bounds = array<i64: 256, 4>}]} {
    %c0 = arith.constant 0 : index
    %c0_0 = arith.constant 0 : index
    %0 = vector.load %arg1[%c0, %c0_0] : memref<256x8xbf16, #tpu.memory_space<vmem>>, vector<256x8xbf16>
    %c0_1 = arith.constant 0 : index
    %c0_2 = arith.constant 0 : index
    %1 = vector.load %arg2[%c0_1, %c0_2] : memref<8x8xbf16, #tpu.memory_space<vmem>>, vector<8x8xbf16>
    %cst = arith.constant dense<0.000000e+00> : vector<256x8xf32>
    %2 = tpu.matmul %0, %1, %cst {dimension_numbers = #tpu.dot_dimension_numbers<[1], [0], [0], [1], [0, 0, 1, 1], [], []>} : vector<256x8xbf16>, vector<8x8xbf16>, vector<256x8xf32> -> vector<256x8xf32>
    %c0_3 = arith.constant 0 : index
    %c0_4 = arith.constant 0 : index
    %3 = vector.load %arg3[%c0_3, %c0_4] : memref<1x8xf32, #tpu.memory_space<vmem>>, vector<1x8xf32>
    %4 = vector.broadcast %3 : vector<1x8xf32> to vector<256x8xf32>
    %5 = arith.addf %2, %4 : vector<256x8xf32>
    %6 = arith.negf %5 : vector<256x8xf32>
    %7 = math.exp %6 : vector<256x8xf32>
    %cst_5 = arith.constant 1.000000e+00 : f32
    %8 = vector.broadcast %cst_5 : f32 to vector<256x8xf32>
    %9 = arith.addf %8, %7 : vector<256x8xf32>
    %10 = arith.divf %8, %9 : vector<256x8xf32>
    %11 = arith.mulf %5, %10 : vector<256x8xf32>
    %12 = vector.extract_strided_slice %11 {offsets = [0, 0], sizes = [256, 4], strides = [1, 1]} : vector<256x8xf32> to vector<256x4xf32>
    %13 = arith.truncf %12 : vector<256x4xf32> to vector<256x4xbf16>
    %c0_6 = arith.constant 0 : index
    %c0_7 = arith.constant 0 : index
    %14 = vector.load %arg4[%c0_6, %c0_7] : memref<256x4xbf16, #tpu.memory_space<vmem>>, vector<256x4xbf16>
    tpu.vector_store %arg4[%c0_6, %c0_7], %13 {strides = array<i32>} : memref<256x4xbf16, #tpu.memory_space<vmem>>, vector<256x4xbf16>,
    %15 = vector.extract_strided_slice %11 {offsets = [0, 4], sizes = [256, 4], strides = [1, 1]} : vector<256x8xf32> to vector<256x4xf32>
    %16 = arith.truncf %15 : vector<256x4xf32> to vector<256x4xbf16>
    %c0_8 = arith.constant 0 : index
    %c0_9 = arith.constant 0 : index
    %17 = vector.load %arg5[%c0_8, %c0_9] : memref<256x4xbf16, #tpu.memory_space<vmem>>, vector<256x4xbf16>
    tpu.vector_store %arg5[%c0_8, %c0_9], %16 {strides = array<i32>} : memref<256x4xbf16, #tpu.memory_space<vmem>>, vector<256x4xbf16>,
    return
  }
  func.func @transform_0(%arg0: i32) -> (i32, i32) {
    %c0_i32 = arith.constant 0 : i32
    %c0_i32_0 = arith.constant 0 : i32
    return %arg0, %c0_i32 : i32, i32
  }
  func.func @transform_1(%arg0: i32) -> (i32, i32) {
    %c0_i32 = arith.constant 0 : i32
    %c0_i32_0 = arith.constant 0 : i32
    %c0_i32_1 = arith.constant 0 : i32
    return %c0_i32, %c0_i32_0 : i32, i32
  }
  func.func @transform_2(%arg0: i32) -> (i32, i32) {
    %c0_i32 = arith.constant 0 : i32
    %c0_i32_0 = arith.constant 0 : i32
    %c0_i32_1 = arith.constant 0 : i32
    return %c0_i32, %c0_i32_0 : i32, i32
  }
  func.func @transform_3(%arg0: i32) -> (i32, i32) {
    %c0_i32 = arith.constant 0 : i32
    %c0_i32_0 = arith.constant 0 : i32
    return %arg0, %c0_i32 : i32, i32
  }
  func.func @transform_4(%arg0: i32) -> (i32, i32) {
    %c0_i32 = arith.constant 0 : i32
    %c0_i32_0 = arith.constant 0 : i32
    return %arg0, %c0_i32 : i32, i32
  }
}

module attributes {stable_mosaic.version = 11 : i64} {
  func.func @_conv3x3_kernel(%arg0: i32, %arg1: memref<1x342x4xbf16, #tpu.memory_space<vmem>>, %arg2: memref<9x4x4xbf16, #tpu.memory_space<vmem>>, %arg3: memref<1x4xf32, #tpu.memory_space<vmem>>, %arg4: memref<1x288x4xbf16, #tpu.memory_space<vmem>>) attributes {dimension_semantics = [#tpu.dimension_semantics<parallel>], iteration_bounds = array<i64: 2>, scalar_prefetch = 0 : i64, scratch_operands = 0 : i64, tpu.core_type = #tpu.core_type<tc>, window_params = [{transform_indices = @transform_0, window_bounds = array<i64: 1, 342, 4>}, {pipeline_mode = #tpu.pipeline_mode<synchronous>, transform_indices = @transform_1, window_bounds = array<i64: 9, 4, 4>}, {pipeline_mode = #tpu.pipeline_mode<synchronous>, transform_indices = @transform_2, window_bounds = array<i64: 1, 4>}, {transform_indices = @transform_3, window_bounds = array<i64: 1, 288, 4>}]} {
    %cst = arith.constant 0.000000e+00 : f32
    %0 = vector.broadcast %cst : f32 to vector<288x4xf32>
    %c0 = arith.constant 0 : index
    %c0_0 = arith.constant 0 : index
    %c0_1 = arith.constant 0 : index
    %1 = vector.load %arg1[%c0, %c0_0, %c0_1] : memref<1x342x4xbf16, #tpu.memory_space<vmem>>, vector<1x288x4xbf16>
    %2 = vector.shape_cast %1 : vector<1x288x4xbf16> to vector<288x4xbf16>
    %c0_2 = arith.constant 0 : index
    %c0_3 = arith.constant 0 : index
    %c0_4 = arith.constant 0 : index
    %3 = vector.load %arg2[%c0_2, %c0_3, %c0_4] : memref<9x4x4xbf16, #tpu.memory_space<vmem>>, vector<1x4x4xbf16>
    %4 = vector.shape_cast %3 : vector<1x4x4xbf16> to vector<4x4xbf16>
    %cst_5 = arith.constant dense<0.000000e+00> : vector<288x4xf32>
    %5 = tpu.matmul %2, %4, %cst_5 {dimension_numbers = #tpu.dot_dimension_numbers<[1], [0], [0], [1], [0, 0, 1, 1], [], []>} : vector<288x4xbf16>, vector<4x4xbf16>, vector<288x4xf32> -> vector<288x4xf32>
    %6 = arith.addf %0, %5 : vector<288x4xf32>
    %c0_6 = arith.constant 0 : index
    %c1 = arith.constant 1 : index
    %c0_7 = arith.constant 0 : index
    %7 = vector.load %arg1[%c0_6, %c1, %c0_7] : memref<1x342x4xbf16, #tpu.memory_space<vmem>>, vector<1x288x4xbf16>
    %8 = vector.shape_cast %7 : vector<1x288x4xbf16> to vector<288x4xbf16>
    %c1_8 = arith.constant 1 : index
    %c0_9 = arith.constant 0 : index
    %c0_10 = arith.constant 0 : index
    %9 = vector.load %arg2[%c1_8, %c0_9, %c0_10] : memref<9x4x4xbf16, #tpu.memory_space<vmem>>, vector<1x4x4xbf16>
    %10 = vector.shape_cast %9 : vector<1x4x4xbf16> to vector<4x4xbf16>
    %cst_11 = arith.constant dense<0.000000e+00> : vector<288x4xf32>
    %11 = tpu.matmul %8, %10, %cst_11 {dimension_numbers = #tpu.dot_dimension_numbers<[1], [0], [0], [1], [0, 0, 1, 1], [], []>} : vector<288x4xbf16>, vector<4x4xbf16>, vector<288x4xf32> -> vector<288x4xf32>
    %12 = arith.addf %6, %11 : vector<288x4xf32>
    %c0_12 = arith.constant 0 : index
    %c2 = arith.constant 2 : index
    %c0_13 = arith.constant 0 : index
    %13 = vector.load %arg1[%c0_12, %c2, %c0_13] : memref<1x342x4xbf16, #tpu.memory_space<vmem>>, vector<1x288x4xbf16>
    %14 = vector.shape_cast %13 : vector<1x288x4xbf16> to vector<288x4xbf16>
    %c2_14 = arith.constant 2 : index
    %c0_15 = arith.constant 0 : index
    %c0_16 = arith.constant 0 : index
    %15 = vector.load %arg2[%c2_14, %c0_15, %c0_16] : memref<9x4x4xbf16, #tpu.memory_space<vmem>>, vector<1x4x4xbf16>
    %16 = vector.shape_cast %15 : vector<1x4x4xbf16> to vector<4x4xbf16>
    %cst_17 = arith.constant dense<0.000000e+00> : vector<288x4xf32>
    %17 = tpu.matmul %14, %16, %cst_17 {dimension_numbers = #tpu.dot_dimension_numbers<[1], [0], [0], [1], [0, 0, 1, 1], [], []>} : vector<288x4xbf16>, vector<4x4xbf16>, vector<288x4xf32> -> vector<288x4xf32>
    %18 = arith.addf %12, %17 : vector<288x4xf32>
    %c0_18 = arith.constant 0 : index
    %c18 = arith.constant 18 : index
    %c0_19 = arith.constant 0 : index
    %19 = vector.load %arg1[%c0_18, %c18, %c0_19] : memref<1x342x4xbf16, #tpu.memory_space<vmem>>, vector<1x288x4xbf16>
    %20 = vector.shape_cast %19 : vector<1x288x4xbf16> to vector<288x4xbf16>
    %c3 = arith.constant 3 : index
    %c0_20 = arith.constant 0 : index
    %c0_21 = arith.constant 0 : index
    %21 = vector.load %arg2[%c3, %c0_20, %c0_21] : memref<9x4x4xbf16, #tpu.memory_space<vmem>>, vector<1x4x4xbf16>
    %22 = vector.shape_cast %21 : vector<1x4x4xbf16> to vector<4x4xbf16>
    %cst_22 = arith.constant dense<0.000000e+00> : vector<288x4xf32>
    %23 = tpu.matmul %20, %22, %cst_22 {dimension_numbers = #tpu.dot_dimension_numbers<[1], [0], [0], [1], [0, 0, 1, 1], [], []>} : vector<288x4xbf16>, vector<4x4xbf16>, vector<288x4xf32> -> vector<288x4xf32>
    %24 = arith.addf %18, %23 : vector<288x4xf32>
    %c0_23 = arith.constant 0 : index
    %c19 = arith.constant 19 : index
    %c0_24 = arith.constant 0 : index
    %25 = vector.load %arg1[%c0_23, %c19, %c0_24] : memref<1x342x4xbf16, #tpu.memory_space<vmem>>, vector<1x288x4xbf16>
    %26 = vector.shape_cast %25 : vector<1x288x4xbf16> to vector<288x4xbf16>
    %c4 = arith.constant 4 : index
    %c0_25 = arith.constant 0 : index
    %c0_26 = arith.constant 0 : index
    %27 = vector.load %arg2[%c4, %c0_25, %c0_26] : memref<9x4x4xbf16, #tpu.memory_space<vmem>>, vector<1x4x4xbf16>
    %28 = vector.shape_cast %27 : vector<1x4x4xbf16> to vector<4x4xbf16>
    %cst_27 = arith.constant dense<0.000000e+00> : vector<288x4xf32>
    %29 = tpu.matmul %26, %28, %cst_27 {dimension_numbers = #tpu.dot_dimension_numbers<[1], [0], [0], [1], [0, 0, 1, 1], [], []>} : vector<288x4xbf16>, vector<4x4xbf16>, vector<288x4xf32> -> vector<288x4xf32>
    %30 = arith.addf %24, %29 : vector<288x4xf32>
    %c0_28 = arith.constant 0 : index
    %c20 = arith.constant 20 : index
    %c0_29 = arith.constant 0 : index
    %31 = vector.load %arg1[%c0_28, %c20, %c0_29] : memref<1x342x4xbf16, #tpu.memory_space<vmem>>, vector<1x288x4xbf16>
    %32 = vector.shape_cast %31 : vector<1x288x4xbf16> to vector<288x4xbf16>
    %c5 = arith.constant 5 : index
    %c0_30 = arith.constant 0 : index
    %c0_31 = arith.constant 0 : index
    %33 = vector.load %arg2[%c5, %c0_30, %c0_31] : memref<9x4x4xbf16, #tpu.memory_space<vmem>>, vector<1x4x4xbf16>
    %34 = vector.shape_cast %33 : vector<1x4x4xbf16> to vector<4x4xbf16>
    %cst_32 = arith.constant dense<0.000000e+00> : vector<288x4xf32>
    %35 = tpu.matmul %32, %34, %cst_32 {dimension_numbers = #tpu.dot_dimension_numbers<[1], [0], [0], [1], [0, 0, 1, 1], [], []>} : vector<288x4xbf16>, vector<4x4xbf16>, vector<288x4xf32> -> vector<288x4xf32>
    %36 = arith.addf %30, %35 : vector<288x4xf32>
    %c0_33 = arith.constant 0 : index
    %c36 = arith.constant 36 : index
    %c0_34 = arith.constant 0 : index
    %37 = vector.load %arg1[%c0_33, %c36, %c0_34] : memref<1x342x4xbf16, #tpu.memory_space<vmem>>, vector<1x288x4xbf16>
    %38 = vector.shape_cast %37 : vector<1x288x4xbf16> to vector<288x4xbf16>
    %c6 = arith.constant 6 : index
    %c0_35 = arith.constant 0 : index
    %c0_36 = arith.constant 0 : index
    %39 = vector.load %arg2[%c6, %c0_35, %c0_36] : memref<9x4x4xbf16, #tpu.memory_space<vmem>>, vector<1x4x4xbf16>
    %40 = vector.shape_cast %39 : vector<1x4x4xbf16> to vector<4x4xbf16>
    %cst_37 = arith.constant dense<0.000000e+00> : vector<288x4xf32>
    %41 = tpu.matmul %38, %40, %cst_37 {dimension_numbers = #tpu.dot_dimension_numbers<[1], [0], [0], [1], [0, 0, 1, 1], [], []>} : vector<288x4xbf16>, vector<4x4xbf16>, vector<288x4xf32> -> vector<288x4xf32>
    %42 = arith.addf %36, %41 : vector<288x4xf32>
    %c0_38 = arith.constant 0 : index
    %c37 = arith.constant 37 : index
    %c0_39 = arith.constant 0 : index
    %43 = vector.load %arg1[%c0_38, %c37, %c0_39] : memref<1x342x4xbf16, #tpu.memory_space<vmem>>, vector<1x288x4xbf16>
    %44 = vector.shape_cast %43 : vector<1x288x4xbf16> to vector<288x4xbf16>
    %c7 = arith.constant 7 : index
    %c0_40 = arith.constant 0 : index
    %c0_41 = arith.constant 0 : index
    %45 = vector.load %arg2[%c7, %c0_40, %c0_41] : memref<9x4x4xbf16, #tpu.memory_space<vmem>>, vector<1x4x4xbf16>
    %46 = vector.shape_cast %45 : vector<1x4x4xbf16> to vector<4x4xbf16>
    %cst_42 = arith.constant dense<0.000000e+00> : vector<288x4xf32>
    %47 = tpu.matmul %44, %46, %cst_42 {dimension_numbers = #tpu.dot_dimension_numbers<[1], [0], [0], [1], [0, 0, 1, 1], [], []>} : vector<288x4xbf16>, vector<4x4xbf16>, vector<288x4xf32> -> vector<288x4xf32>
    %48 = arith.addf %42, %47 : vector<288x4xf32>
    %c0_43 = arith.constant 0 : index
    %c38 = arith.constant 38 : index
    %c0_44 = arith.constant 0 : index
    %49 = vector.load %arg1[%c0_43, %c38, %c0_44] : memref<1x342x4xbf16, #tpu.memory_space<vmem>>, vector<1x288x4xbf16>
    %50 = vector.shape_cast %49 : vector<1x288x4xbf16> to vector<288x4xbf16>
    %c8 = arith.constant 8 : index
    %c0_45 = arith.constant 0 : index
    %c0_46 = arith.constant 0 : index
    %51 = vector.load %arg2[%c8, %c0_45, %c0_46] : memref<9x4x4xbf16, #tpu.memory_space<vmem>>, vector<1x4x4xbf16>
    %52 = vector.shape_cast %51 : vector<1x4x4xbf16> to vector<4x4xbf16>
    %cst_47 = arith.constant dense<0.000000e+00> : vector<288x4xf32>
    %53 = tpu.matmul %50, %52, %cst_47 {dimension_numbers = #tpu.dot_dimension_numbers<[1], [0], [0], [1], [0, 0, 1, 1], [], []>} : vector<288x4xbf16>, vector<4x4xbf16>, vector<288x4xf32> -> vector<288x4xf32>
    %54 = arith.addf %48, %53 : vector<288x4xf32>
    %c0_48 = arith.constant 0 : index
    %c0_49 = arith.constant 0 : index
    %55 = vector.load %arg3[%c0_48, %c0_49] : memref<1x4xf32, #tpu.memory_space<vmem>>, vector<1x4xf32>
    %56 = vector.broadcast %55 : vector<1x4xf32> to vector<288x4xf32>
    %57 = arith.addf %54, %56 : vector<288x4xf32>
    %58 = arith.negf %57 : vector<288x4xf32>
    %59 = math.exp %58 : vector<288x4xf32>
    %cst_50 = arith.constant 1.000000e+00 : f32
    %60 = vector.broadcast %cst_50 : f32 to vector<288x4xf32>
    %61 = arith.addf %60, %59 : vector<288x4xf32>
    %62 = arith.divf %60, %61 : vector<288x4xf32>
    %63 = arith.mulf %57, %62 : vector<288x4xf32>
    %64 = arith.truncf %63 : vector<288x4xf32> to vector<288x4xbf16>
    %c0_51 = arith.constant 0 : index
    %c0_52 = arith.constant 0 : index
    %c0_53 = arith.constant 0 : index
    %65 = vector.load %arg4[%c0_51, %c0_52, %c0_53] : memref<1x288x4xbf16, #tpu.memory_space<vmem>>, vector<1x288x4xbf16>
    %66 = vector.shape_cast %65 : vector<1x288x4xbf16> to vector<288x4xbf16>
    %67 = vector.shape_cast %64 : vector<288x4xbf16> to vector<1x288x4xbf16>
    tpu.vector_store %arg4[%c0_51, %c0_52, %c0_53], %67 {strides = array<i32>} : memref<1x288x4xbf16, #tpu.memory_space<vmem>>, vector<1x288x4xbf16>,
    return
  }
  func.func @transform_0(%arg0: i32) -> (i32, i32, i32) {
    %c0_i32 = arith.constant 0 : i32
    %c0_i32_0 = arith.constant 0 : i32
    %c0_i32_1 = arith.constant 0 : i32
    return %arg0, %c0_i32, %c0_i32_0 : i32, i32, i32
  }
  func.func @transform_1(%arg0: i32) -> (i32, i32, i32) {
    %c0_i32 = arith.constant 0 : i32
    %c0_i32_0 = arith.constant 0 : i32
    %c0_i32_1 = arith.constant 0 : i32
    %c0_i32_2 = arith.constant 0 : i32
    return %c0_i32, %c0_i32_0, %c0_i32_1 : i32, i32, i32
  }
  func.func @transform_2(%arg0: i32) -> (i32, i32) {
    %c0_i32 = arith.constant 0 : i32
    %c0_i32_0 = arith.constant 0 : i32
    %c0_i32_1 = arith.constant 0 : i32
    return %c0_i32, %c0_i32_0 : i32, i32
  }
  func.func @transform_3(%arg0: i32) -> (i32, i32, i32) {
    %c0_i32 = arith.constant 0 : i32
    %c0_i32_0 = arith.constant 0 : i32
    %c0_i32_1 = arith.constant 0 : i32
    return %arg0, %c0_i32, %c0_i32_0 : i32, i32, i32
  }
}

module attributes {stable_mosaic.version = 11 : i64} {
  func.func @_split_k_1x1_kernel(%arg0: i32, %arg1: memref<256x4xbf16, #tpu.memory_space<vmem>>, %arg2: memref<256x4xbf16, #tpu.memory_space<vmem>>, %arg3: memref<4x8xbf16, #tpu.memory_space<vmem>>, %arg4: memref<4x8xbf16, #tpu.memory_space<vmem>>, %arg5: memref<1x8xf32, #tpu.memory_space<vmem>>, %arg6: memref<256x8xf32, #tpu.memory_space<vmem>>) attributes {dimension_semantics = [#tpu.dimension_semantics<parallel>], iteration_bounds = array<i64: 2>, scalar_prefetch = 0 : i64, scratch_operands = 0 : i64, tpu.core_type = #tpu.core_type<tc>, window_params = [{transform_indices = @transform_0, window_bounds = array<i64: 256, 4>}, {transform_indices = @transform_1, window_bounds = array<i64: 256, 4>}, {pipeline_mode = #tpu.pipeline_mode<synchronous>, transform_indices = @transform_2, window_bounds = array<i64: 4, 8>}, {pipeline_mode = #tpu.pipeline_mode<synchronous>, transform_indices = @transform_3, window_bounds = array<i64: 4, 8>}, {pipeline_mode = #tpu.pipeline_mode<synchronous>, transform_indices = @transform_4, window_bounds = array<i64: 1, 8>}, {transform_indices = @transform_5, window_bounds = array<i64: 256, 8>}]} {
    %c0 = arith.constant 0 : index
    %c0_0 = arith.constant 0 : index
    %0 = vector.load %arg1[%c0, %c0_0] : memref<256x4xbf16, #tpu.memory_space<vmem>>, vector<256x4xbf16>
    %c0_1 = arith.constant 0 : index
    %c0_2 = arith.constant 0 : index
    %1 = vector.load %arg3[%c0_1, %c0_2] : memref<4x8xbf16, #tpu.memory_space<vmem>>, vector<4x8xbf16>
    %cst = arith.constant dense<0.000000e+00> : vector<256x8xf32>
    %2 = tpu.matmul %0, %1, %cst {dimension_numbers = #tpu.dot_dimension_numbers<[1], [0], [0], [1], [0, 0, 1, 1], [], []>} : vector<256x4xbf16>, vector<4x8xbf16>, vector<256x8xf32> -> vector<256x8xf32>
    %c0_3 = arith.constant 0 : index
    %c0_4 = arith.constant 0 : index
    %3 = vector.load %arg2[%c0_3, %c0_4] : memref<256x4xbf16, #tpu.memory_space<vmem>>, vector<256x4xbf16>
    %c0_5 = arith.constant 0 : index
    %c0_6 = arith.constant 0 : index
    %4 = vector.load %arg4[%c0_5, %c0_6] : memref<4x8xbf16, #tpu.memory_space<vmem>>, vector<4x8xbf16>
    %cst_7 = arith.constant dense<0.000000e+00> : vector<256x8xf32>
    %5 = tpu.matmul %3, %4, %cst_7 {dimension_numbers = #tpu.dot_dimension_numbers<[1], [0], [0], [1], [0, 0, 1, 1], [], []>} : vector<256x4xbf16>, vector<4x8xbf16>, vector<256x8xf32> -> vector<256x8xf32>
    %6 = arith.addf %2, %5 : vector<256x8xf32>
    %c0_8 = arith.constant 0 : index
    %c0_9 = arith.constant 0 : index
    %7 = vector.load %arg5[%c0_8, %c0_9] : memref<1x8xf32, #tpu.memory_space<vmem>>, vector<1x8xf32>
    %8 = vector.broadcast %7 : vector<1x8xf32> to vector<256x8xf32>
    %9 = arith.addf %6, %8 : vector<256x8xf32>
    %10 = arith.negf %9 : vector<256x8xf32>
    %11 = math.exp %10 : vector<256x8xf32>
    %cst_10 = arith.constant 1.000000e+00 : f32
    %12 = vector.broadcast %cst_10 : f32 to vector<256x8xf32>
    %13 = arith.addf %12, %11 : vector<256x8xf32>
    %14 = arith.divf %12, %13 : vector<256x8xf32>
    %15 = arith.mulf %9, %14 : vector<256x8xf32>
    %c0_11 = arith.constant 0 : index
    %c0_12 = arith.constant 0 : index
    %16 = vector.load %arg6[%c0_11, %c0_12] : memref<256x8xf32, #tpu.memory_space<vmem>>, vector<256x8xf32>
    tpu.vector_store %arg6[%c0_11, %c0_12], %15 {strides = array<i32>} : memref<256x8xf32, #tpu.memory_space<vmem>>, vector<256x8xf32>,
    return
  }
  func.func @transform_0(%arg0: i32) -> (i32, i32) {
    %c0_i32 = arith.constant 0 : i32
    %c0_i32_0 = arith.constant 0 : i32
    return %arg0, %c0_i32 : i32, i32
  }
  func.func @transform_1(%arg0: i32) -> (i32, i32) {
    %c0_i32 = arith.constant 0 : i32
    %c0_i32_0 = arith.constant 0 : i32
    return %arg0, %c0_i32 : i32, i32
  }
  func.func @transform_2(%arg0: i32) -> (i32, i32) {
    %c0_i32 = arith.constant 0 : i32
    %c0_i32_0 = arith.constant 0 : i32
    %c0_i32_1 = arith.constant 0 : i32
    return %c0_i32, %c0_i32_0 : i32, i32
  }
  func.func @transform_3(%arg0: i32) -> (i32, i32) {
    %c0_i32 = arith.constant 0 : i32
    %c0_i32_0 = arith.constant 0 : i32
    %c0_i32_1 = arith.constant 0 : i32
    return %c0_i32, %c0_i32_0 : i32, i32
  }
  func.func @transform_4(%arg0: i32) -> (i32, i32) {
    %c0_i32 = arith.constant 0 : i32
    %c0_i32_0 = arith.constant 0 : i32
    %c0_i32_1 = arith.constant 0 : i32
    return %c0_i32, %c0_i32_0 : i32, i32
  }
  func.func @transform_5(%arg0: i32) -> (i32, i32) {
    %c0_i32 = arith.constant 0 : i32
    %c0_i32_0 = arith.constant 0 : i32
    return %arg0, %c0_i32 : i32, i32
  }
}

</mosaic_0001>

<bundles_post_ra>
// kernel: cspstage_forward.4
= control target key start
LH: loop header
LB: loop body
LE: loop exit
PB: predicated region body
PF: predicated region fallthrough
CT: control target
= control target key end

     0   :  { %s1537_s15 = smov 0   ;;  %s1958_s0 = inlined_call_operand.vmem [shape: bf16[512,8], index: 0, kind: input, shape index: {}]   ;;  %s1959_s1 = inlined_call_operand.vmem [shape: bf16[8,8], index: 1, kind: input, shape index: {}]   ;;  %s1960_s2 = inlined_call_operand.vmem [shape: f32[1,8], index: 2, kind: input, shape index: {}]   ;;  %s1961_s3 = inlined_call_operand.vmem [shape: bf16[512,4], index: 3, kind: output, shape index: {0}]   ;;  %s1962_s4 = inlined_call_operand.vmem [shape: bf16[512,4], index: 4, kind: output, shape index: {1}]  }
   0x1 LB: > { %s1153_s16 = sadd.s32 4294967295, %s1509_s15   ;;  %p1157_p0 = scmp.ge.s32.totalorder %s1509_s15, 1  ;;  %s1509_s15 = sphi %s1537_s15, %s15_s15  }
   0x2   : > { %p166_p1 = scmp.lt.s32.totalorder %s1509_s15, 3 }
   0x4   : > { %p167_p2 = pnand %p1157_p0, %p166_p1 }
   0x5   : > { %v248_v0 = vld [vmem:[%s1959_s1] sm:$0xf] (!%p167_p2)  ;;  %vm385_vm0 = vcmask (!%p167_p2), 1043456   ;;  %s1158_s19 = sshll.u32 (!%p167_p2), %s1153_s16, 5  ;;  %vm336_vm1 = vcmask (!%p167_p2), 64512   ;;  %vm902_vm2 = vcmask (!%p167_p2), 27648  }
   0x6   : > { %170 = sbr.rel (%p167_p2) target bundleno = 446 (0x1be), region = 32  ;;  %1348 = vmatprep.subr.msk.bf16.mxu0 (!%p167_p2), %vm385_vm0, %v248_v0  ;;  %1349 = vmatprep.subr.msk.bf16.mxu1 (!%p167_p2), %vm385_vm0, %v248_v0  ;;  %v387_v1 = vsel (!%p167_p2), %vm385_vm0, %v248_v0, 0  ;;  %p198_p3 = scmp.lt.s32.totalorder (!%p167_p2), %s1158_s19, 63  ;;  %v1591_v18 = vld [vmem:[%s1960_s2] ss:$0 sm:$0xff] (!%p167_p2) }
   0x7   : > { %1313 = vmatpush3.bf16.msra.mxu0 (!%p167_p2), %v387_v1  ;;  %1347 = vmatpush3.bf16.msra.mxu1 (!%p167_p2), %v387_v1  ;;  %s1511_s29 = smov (!%p167_p2), 124  }
   0xd   : > { %s1964_s19 = smov (!%p198_p3, %s1158_s19), 63 }
   0xe   : > { %s1548_s20 = sshll.u32 %s1964_s19, 2 }
   0xf   : > { %s1554_s23 = scalar_lea.vmem %s1958_s0, %s1548_s20  ;;  %s1705_s28 = scalar_lea.vmem %s1961_s3, %s1548_s20 }
  0x10   : > { %v1359_v2 = vld [vmem:[%s1554_s23] sm:$0xff]   ;;  %v1361_v4 = vld [vmem:[%s1554_s23 + $0x8] sm:$0xff]   ;;  %v1363_v6 = vld [vmem:[%s1554_s23 + $0x10] sm:$0xff]   ;;  %s1889_s6 = scalar_lea.vmem %s1962_s4, %s1548_s20 }
  0x11   : > { %v1360_v3 = vld [vmem:[%s1554_s23 + $0x40] sm:$0xff]   ;;  %1314 = vmatprep.mubr.msk.bf16.mxu0 %vm336_vm1, %v1359_v2  ;;  %v1362_v5 = vld [vmem:[%s1554_s23 + $0x48] sm:$0xff]   ;;  %v1364_v7 = vld [vmem:[%s1554_s23 + $0x50] sm:$0xff]  }
  0x12   : > { %1330 = vmatprep.mubr.msk.bf16.mxu1 %vm336_vm1, %v1360_v3  ;;  %1315 = vmatmul.mubr.msk.bf16.vlgmr.msra.gmra.mrb[0].mxu0 %vm336_vm1, %v1361_v4  ;;  %v1365_v8 = vld [vmem:[%s1554_s23 + $0x18] sm:$0xff]   ;;  %v1367_v10 = vld [vmem:[%s1554_s23 + $0x20] sm:$0xff]   ;;  %v1369_v12 = vld [vmem:[%s1554_s23 + $0x28] sm:$0xff]  }
  0x13   : > { %1331 = vmatmul.mubr.msk.bf16.vlgmr.msra.gmra.mrb[0].mxu1 %vm336_vm1, %v1362_v5  ;;  %1318 = vmatprep.mubr.msk.bf16.mxu0 %vm336_vm1, %v1363_v6  ;;  %v1366_v9 = vld [vmem:[%s1554_s23 + $0x58] sm:$0xff]   ;;  %v1368_v11 = vld [vmem:[%s1554_s23 + $0x60] sm:$0xff]   ;;  %v1370_v13 = vld [vmem:[%s1554_s23 + $0x68] sm:$0xff]  }
  0x14   : > { %1334 = vmatprep.mubr.msk.bf16.mxu1 %vm336_vm1, %v1364_v7  ;;  %v1371_v14 = vld [vmem:[%s1554_s23 + $0x30] sm:$0xff]   ;;  %v1373_v16 = vld [vmem:[%s1554_s23 + $0x38] sm:$0xff]  }
  0x15   : > { %v1372_v15 = vld [vmem:[%s1554_s23 + $0x70] sm:$0xff]   ;;  %v1374_v17 = vld [vmem:[%s1554_s23 + $0x78] sm:$0xff]  }
  0x1a   : > { %1319 = vmatmul.mubr.msk.bf16.gmra.mrb[4].mxu0 %vm336_vm1, %v1365_v8 }
  0x1b   : > { %1335 = vmatmul.mubr.msk.bf16.gmra.mrb[4].mxu1 %vm336_vm1, %v1366_v9  ;;  %1322 = vmatprep.mubr.msk.bf16.mxu0 %vm336_vm1, %v1367_v10 }
  0x1c   : > { %1338 = vmatprep.mubr.msk.bf16.mxu1 %vm336_vm1, %v1368_v11 }
  0x22   : > { %1323 = vmatmul.mubr.msk.bf16.gmra.mrb[8].mxu0 %vm336_vm1, %v1369_v12 }
  0x23   : > { %1339 = vmatmul.mubr.msk.bf16.gmra.mrb[8].mxu1 %vm336_vm1, %v1370_v13  ;;  %1326 = vmatprep.mubr.msk.bf16.mxu0 %vm336_vm1, %v1371_v14 }
  0x24   : > { %1342 = vmatprep.mubr.msk.bf16.mxu1 %vm336_vm1, %v1372_v15 }
  0x2a   : > { %1327 = vmatmul.mubr.msk.bf16.gmra.mrb[12].mxu0 %vm336_vm1, %v1373_v16 }
  0x2b   : > { %1343 = vmatmul.mubr.msk.bf16.gmra.mrb[12].mxu1 %vm336_vm1, %v1374_v17 }
  0xe5   : > { %v1316_v19 = vpop.f32.mrb[0].mxu0 }
  0xe6   : > { %v1594_v20 = vadd.f32 %v1316_v19, %v1591_v18  ;;  %v1332_v21 = vpop.f32.mrb[0].mxu1  ;;  %v423_v22 = vpop.f32.mrb[1].mxu0 }
  0xe7   : > { %v1597_v23 = vadd.f32 %v1332_v21, %v1591_v18  ;;  %v1600_v24 = vadd.f32 %v1591_v18, %v423_v22  ;;  %v487_v25 = vpop.f32.mrb[1].mxu1  ;;  %v1317_v26 = vpop.f32.mrb[2].mxu0 }
  0xe8   : > { %v1199_v27 = vmul.f32 -1.442695, %v1594_v20  ;;  %v1604_v28 = vadd.f32 %v1591_v18, %v487_v25  ;;  %v1607_v29 = vadd.f32 %v1317_v26, %v1591_v18  ;;  %v1333_v30 = vpop.f32.mrb[2].mxu1  ;;  %v426_v31 = vpop.f32.mrb[3].mxu0 }
  0xe9   : > { %v1215_v32 = vmul.f32 -1.442695, %v1597_v23  ;;  %v1197_v33 = vmul.f32 -1.442695, %v1600_v24  ;;  %v1612_v34 = vadd.f32 %v1333_v30, %v1591_v18  ;;  %v1615_v35 = vadd.f32 %v1591_v18, %v426_v31  ;;  %v490_v36 = vpop.f32.mrb[3].mxu1 }
  0xea   : > { %1375 = vpow2.f32 %v1199_v27  ;;  %v1213_v37 = vmul.f32 -1.442695, %v1604_v28  ;;  %v1200_v38 = vmul.f32 -1.442695, %v1607_v29  ;;  %v1620_v39 = vadd.f32 %v1591_v18, %v490_v36 }
  0xeb   : > { %1377 = vpow2.f32 %v1215_v32  ;;  %v1216_v40 = vmul.f32 -1.442695, %v1612_v34  ;;  %v1198_v41 = vmul.f32 -1.442695, %v1615_v35 }
  0xec   : > { %1379 = vpow2.f32 %v1197_v33  ;;  %v1214_v42 = vmul.f32 -1.442695, %v1620_v39 }
  0xed   : > { %1381 = vpow2.f32 %v1213_v37  ;;  %v1320_v43 = vpop.f32.mrb[4].mxu0 }
  0xee   : > { %1383 = vpow2.f32 %v1200_v38  ;;  %v1626_v44 = vadd.f32 %v1320_v43, %v1591_v18  ;;  %v1336_v45 = vpop.f32.mrb[4].mxu1  ;;  %v439_v46 = vpop.f32.mrb[5].mxu0 }
  0xef   : > { %1385 = vpow2.f32 %v1216_v40  ;;  %v1629_v47 = vadd.f32 %v1336_v45, %v1591_v18  ;;  %v1632_v48 = vadd.f32 %v1591_v18, %v439_v46  ;;  %v503_v49 = vpop.f32.mrb[5].mxu1  ;;  %v1321_v50 = vpop.f32.mrb[6].mxu0 }
  0xf0   : > { %1387 = vpow2.f32 %v1198_v41  ;;  %v1203_v51 = vmul.f32 -1.442695, %v1626_v44  ;;  %v1636_v52 = vadd.f32 %v1591_v18, %v503_v49  ;;  %v1639_v53 = vadd.f32 %v1321_v50, %v1591_v18  ;;  %v1337_v54 = vpop.f32.mrb[6].mxu1  ;;  %v442_v55 = vpop.f32.mrb[7].mxu0 }
  0xf1   : > { %1389 = vpow2.f32 %v1214_v42  ;;  %v1219_v56 = vmul.f32 -1.442695, %v1629_v47  ;;  %v1201_v57 = vmul.f32 -1.442695, %v1632_v48  ;;  %v506_v58 = vpop.f32.mrb[7].mxu1  ;;  %v1646_v11 = vadd.f32 %v1337_v54, %v1591_v18 }
  0xf2   : > { %1391 = vpow2.f32 %v1203_v51  ;;  %v1217_v59 = vmul.f32 -1.442695, %v1636_v52  ;;  %v1204_v60 = vmul.f32 -1.442695, %v1639_v53  ;;  %v1650_v30 = vadd.f32 %v1591_v18, %v442_v55 }
  0xf3   : > { %1393 = vpow2.f32 %v1219_v56  ;;  %v1220_v27 = vmul.f32 -1.442695, %v1646_v11  ;;  %v1653_v33 = vadd.f32 %v1591_v18, %v506_v58 }
  0xf4   : > { %v1376_v61 = vpop.eup %1375  ;;  %1395 = vpow2.f32 %v1201_v57  ;;  %v1202_v58 = vmul.f32 -1.442695, %v1650_v30 }
  0xf5   : > { %v1378_v62 = vpop.eup %1377  ;;  %v648_v63 = vadd.f32 1.0, %v1376_v61  ;;  %1397 = vpow2.f32 %v1217_v59  ;;  %v1324_v0 = vpop.f32.mrb[8].mxu0 }
  0xf6   : > { %v1380_v1 = vpop.eup %1379  ;;  %v664_v2 = vadd.f32 1.0, %v1378_v62  ;;  %1399 = vpow2.f32 %v1204_v60  ;;  %v1340_v3 = vpop.f32.mrb[8].mxu1  ;;  %v1656_v36 = vadd.f32 %v1324_v0, %v1591_v18  ;;  %v1218_v0 = vmul.f32 -1.442695, %v1653_v33 }
  0xf7   : > { %v455_v4 = vpop.f32.mrb[9].mxu0  ;;  %v1382_v5 = vpop.eup %1381  ;;  %1401 = vrcp.f32 %v648_v63  ;;  %v646_v6 = vadd.f32 1.0, %v1380_v1  ;;  %v1659_v41 = vadd.f32 %v1340_v3, %v1591_v18 }
  0xf8   : > { %v519_v7 = vpop.f32.mrb[9].mxu1  ;;  %v1325_v8 = vpop.f32.mrb[10].mxu0  ;;  %1403 = vrcp.f32 %v664_v2  ;;  %v662_v10 = vadd.f32 1.0, %v1382_v5  ;;  %v1662_v42 = vadd.f32 %v1591_v18, %v455_v4  ;;  %v1207_v4 = vmul.f32 -1.442695, %v1656_v36 }
  0xf9   : > { %v1384_v9 = vpop.eup %1383  ;;  %v1341_v12 = vpop.f32.mrb[10].mxu1  ;;  %1405 = vrcp.f32 %v646_v6  ;;  %v1667_v50 = vadd.f32 %v1591_v18, %v519_v7  ;;  %v1670_v51 = vadd.f32 %v1325_v8, %v1591_v18  ;;  %v1223_v5 = vmul.f32 -1.442695, %v1659_v41 }
  0xfa   : > { %v458_v13 = vpop.f32.mrb[11].mxu0  ;;  %v1386_v14 = vpop.eup %1385  ;;  %v649_v15 = vadd.f32 1.0, %v1384_v9  ;;  %1407 = vrcp.f32 %v662_v10  ;;  %v1678_v59 = vadd.f32 %v1341_v12, %v1591_v18  ;;  %v1205_v6 = vmul.f32 -1.442695, %v1662_v42 }
  0xfb   : > { %v522_v16 = vpop.f32.mrb[11].mxu1  ;;  %v1388_v17 = vpop.eup %1387  ;;  %v665_v19 = vadd.f32 1.0, %v1386_v14  ;;  %v1686_v1 = vadd.f32 %v1591_v18, %v458_v13  ;;  %v1221_v8 = vmul.f32 -1.442695, %v1667_v50  ;;  %v1208_v9 = vmul.f32 -1.442695, %v1670_v51 }
  0xfc   : > { %v1390_v21 = vpop.eup %1389  ;;  %1409 = vrcp.f32 %v649_v15  ;;  %v647_v22 = vadd.f32 1.0, %v1388_v17  ;;  %v1224_v14 = vmul.f32 -1.442695, %v1678_v59  ;;  %v1699_v15 = vadd.f32 %v1591_v18, %v522_v16 }
  0xfd   : > { %v1392_v25 = vpop.eup %1391  ;;  %1411 = vrcp.f32 %v665_v19  ;;  %v663_v26 = vadd.f32 1.0, %v1390_v21  ;;  %v1328_v37 = vpop.f32.mrb[12].mxu0 }
  0xfe   : > { %v1394_v31 = vpop.eup %1393  ;;  %1413 = vrcp.f32 %v647_v22  ;;  %v652_v32 = vadd.f32 1.0, %v1392_v25  ;;  %v1344_v43 = vpop.f32.mrb[12].mxu1 }
  0xff   : > { %v1396_v38 = vpop.eup %1395  ;;  %1415 = vrcp.f32 %v663_v26  ;;  %v668_v40 = vadd.f32 1.0, %v1394_v31  ;;  %v1664_v45 = vpop.f32.mrb[13].mxu0 }
 0x100   : > { %v1398_v46 = vpop.eup %1397  ;;  %1417 = vrcp.f32 %v652_v32  ;;  %v650_v49 = vadd.f32 1.0, %v1396_v38  ;;  %v1672_v54 = vpop.f32.mrb[13].mxu1 }
 0x101   : > { %v1674_v55 = vpop.f32.mrb[14].mxu0  ;;  %v1400_v56 = vpop.eup %1399  ;;  %1419 = vrcp.f32 %v668_v40  ;;  %v666_v57 = vadd.f32 1.0, %v1398_v46 }
 0x102   : > { %v1680_v60 = vpop.f32.mrb[14].mxu1  ;;  %v1682_v61 = vpop.f32.mrb[15].mxu0  ;;  %1421 = vrcp.f32 %v650_v49  ;;  %v653_v63 = vadd.f32 1.0, %v1400_v56  ;;  %v1222_v56 = vmul.f32 -1.442695, %v1699_v15 }
 0x103   : > { %v1402_v62 = vpop.eup %1401  ;;  %v1688_v2 = vpop.f32.mrb[15].mxu1  ;;  %1423 = vrcp.f32 %v666_v57 }
 0x104   : > { %v1404_v3 = vpop.eup %1403  ;;  %1425 = vrcp.f32 %v653_v63 }
 0x105   : > { %v1406_v7 = vpop.eup %1405  ;;  %v760_v10 = vmul.f32 %v1404_v3, %v1597_v23  ;;  %1427 = vpow2.f32 %v1220_v27  ;;  %v1206_v23 = vmul.f32 -1.442695, %v1686_v1 }
 0x106   : > { %v1408_v12 = vpop.eup %1407  ;;  %v742_v13 = vmul.f32 %v1406_v7, %v1600_v24  ;;  %1429 = vpow2.f32 %v1202_v58  ;;  %v1710_v24 = vadd.f32 %v1328_v37, %v1591_v18 }
 0x107   : > { %v1410_v17 = vpop.eup %1409  ;;  %v758_v19 = vmul.f32 %v1408_v12, %v1604_v28  ;;  %1431 = vpow2.f32 %v1218_v0  ;;  %v1281_v25 = vpack.c.bf16 %v760_v10, %v760_v10  ;;  %v744_v28 = vmul.f32 %v1402_v62, %v1594_v20 }
 0x108   : > { %v1412_v21 = vpop.eup %1411  ;;  %v1263_v22 = vpack.c.bf16 %v742_v13, %v742_v13  ;;  %v745_v16 = vmul.f32 %v1410_v17, %v1607_v29  ;;  %1433 = vpow2.f32 %v1207_v4  ;;  %v1719_v29 = vadd.f32 %v1344_v43, %v1591_v18 }
 0x109   : > { %v1414_v26 = vpop.eup %1413  ;;  %v1279_v27 = vpack.c.bf16 %v758_v19, %v758_v19  ;;  %v761_v31 = vmul.f32 %v1412_v21, %v1612_v34  ;;  %1435 = vpow2.f32 %v1223_v5  ;;  %971 = vrot.lane.b32.xlu0 %v1281_v25, %s1511_s29  ;;  %921 = vst.msk [vmem:[%s1705_s28 + $0x48] sm:$0xf] %vm902_vm2, %v1281_v25  ;;  %v1265_v46 = vpack.c.bf16 %v744_v28, %v744_v28 }
 0x10a   : > { %v1416_v32 = vpop.eup %1415  ;;  %903 = vst.msk [vmem:[%s1705_s28] sm:$0xf] %vm902_vm2, %v1263_v22  ;;  %v1266_v37 = vpack.c.bf16 %v745_v16, %v745_v16  ;;  %v743_v38 = vmul.f32 %v1414_v26, %v1615_v35  ;;  %1437 = vpow2.f32 %v1205_v6  ;;  %v1211_v62 = vmul.f32 -1.442695, %v1710_v24 }
 0x10b   : > { %v1418_v34 = vpop.eup %1417  ;;  %919 = vst.msk [vmem:[%s1705_s28 + $0x40] sm:$0xf] %vm902_vm2, %v1279_v27  ;;  %v1282_v20 = vpack.c.bf16 %v761_v31, %v761_v31  ;;  %v759_v40 = vmul.f32 %v1416_v32, %v1620_v39  ;;  %1439 = vpow2.f32 %v1221_v8  ;;  %939 = vrot.lane.b32.xlu1 %v1265_v46, %s1511_s29  ;;  %905 = vst.msk [vmem:[%s1705_s28 + $0x8] sm:$0xf] %vm902_vm2, %v1265_v46  ;;  %v1227_v3 = vmul.f32 -1.442695, %v1719_v29 }
 0x10c   : > { %v1420_v35 = vpop.eup %1419  ;;  %906 = vst.msk [vmem:[%s1705_s28 + $0xc] sm:$0xf] %vm902_vm2, %v1266_v37  ;;  %v1264_v43 = vpack.c.bf16 %v743_v38, %v743_v38  ;;  %v748_v49 = vmul.f32 %v1418_v34, %v1626_v44  ;;  %1441 = vpow2.f32 %v1208_v9  ;;  %v1772_v28 = vadd.f32 %v1591_v18, %v1664_v45 }
 0x10d   : > { %v1422_v57 = vpop.eup %1421  ;;  %922 = vst.msk [vmem:[%s1705_s28 + $0x4c] sm:$0xf] %vm902_vm2, %v1282_v20  ;;  %v1280_v58 = vpack.c.bf16 %v759_v40, %v759_v40  ;;  %v764_v39 = vmul.f32 %v1420_v35, %v1629_v47  ;;  %1443 = vpow2.f32 %v1224_v14  ;;  %935 = vrot.lane.b32.xlu0 %v1263_v22, %s1511_s29  ;;  %v1776_v38 = vadd.f32 %v1591_v18, %v1672_v54 }
 0x10e   : > { %v1424_v63 = vpop.eup %1423  ;;  %904 = vst.msk [vmem:[%s1705_s28 + $0x4] sm:$0xf] %vm902_vm2, %v1264_v43  ;;  %v1269_v44 = vpack.c.bf16 %v748_v49, %v748_v49  ;;  %v746_v0 = vmul.f32 %v1422_v57, %v1632_v48  ;;  %1445 = vpow2.f32 %v1206_v23  ;;  %v1781_v40 = vadd.f32 %v1674_v55, %v1591_v18 }
 0x10f   : > { %v1426_v47 = vpop.eup %1425  ;;  %920 = vst.msk [vmem:[%s1705_s28 + $0x44] sm:$0xf] %vm902_vm2, %v1280_v58  ;;  %v1745_v4 = vpack.c.bf16 %v764_v39, %v764_v39  ;;  %v762_v5 = vmul.f32 %v1424_v63, %v1636_v52  ;;  %1447 = vpow2.f32 %v1222_v56  ;;  %941 = vrot.lane.b32.xlu1 %v1266_v37, %s1511_s29  ;;  %v1786_v35 = vadd.f32 %v1680_v60, %v1591_v18 }
 0x110   : > { %v1428_v6 = vpop.eup %1427  ;;  %909 = vst.msk [vmem:[%s1705_s28 + $0x18] sm:$0xf] %vm902_vm2, %v1269_v44  ;;  %v1750_v7 = vpack.c.bf16 %v746_v0, %v746_v0  ;;  %v749_v48 = vmul.f32 %v1426_v47, %v1639_v53  ;;  %1449 = vpow2.f32 %v1211_v62  ;;  %v1209_v49 = vmul.f32 -1.442695, %v1772_v28 }
 0x111   : > { %v1430_v8 = vpop.eup %1429  ;;  %925 = vst.msk [vmem:[%s1705_s28 + $0x58] sm:$0xf] %vm902_vm2, %v1745_v4  ;;  %v1756_v9 = vpack.c.bf16 %v762_v5, %v762_v5  ;;  %v669_v10 = vadd.f32 1.0, %v1428_v6  ;;  %1451 = vpow2.f32 %v1227_v3  ;;  %967 = vrot.lane.b32.xlu0 %v1279_v27, %s1511_s29  ;;  %v1791_v56 = vadd.f32 %v1591_v18, %v1682_v61 }
 0x112   : > { %v1432_v52 = vpop.eup %1431  ;;  %907 = vst.msk [vmem:[%s1705_s28 + $0x10] sm:$0xf] %vm902_vm2, %v1750_v7  ;;  %v1270_v12 = vpack.c.bf16 %v749_v48, %v749_v48  ;;  %v651_v13 = vadd.f32 1.0, %v1430_v8  ;;  %v1796_v39 = vadd.f32 %v1591_v18, %v1688_v2  ;;  %v1212_v63 = vmul.f32 -1.442695, %v1781_v40 }
 0x113   : > { %v1434_v53 = vpop.eup %1433  ;;  %923 = vst.msk [vmem:[%s1705_s28 + $0x50] sm:$0xf] %vm902_vm2, %v1756_v9  ;;  %1453 = vrcp.f32 %v669_v10  ;;  %v667_v14 = vadd.f32 1.0, %v1432_v52  ;;  %973 = vrot.lane.b32.xlu1 %v1282_v20, %s1511_s29  ;;  %v1228_v0 = vmul.f32 -1.442695, %v1786_v35 }
 0x114   : > { %v1436_v17 = vpop.eup %1435  ;;  %910 = vst.msk [vmem:[%s1705_s28 + $0x1c] sm:$0xf] %vm902_vm2, %v1270_v12  ;;  %1455 = vrcp.f32 %v651_v13  ;;  %v656_v19 = vadd.f32 1.0, %v1434_v53 }
 0x115   : > { %v1438_v23 = vpop.eup %1437  ;;  %1457 = vrcp.f32 %v667_v14  ;;  %v672_v21 = vadd.f32 1.0, %v1436_v17  ;;  %937 = vrot.lane.b32.xlu0 %v1264_v43, %s1511_s29 }
 0x116   : > { %v1440_v22 = vpop.eup %1439  ;;  %1459 = vrcp.f32 %v656_v19  ;;  %v654_v16 = vadd.f32 1.0, %v1438_v23 }
 0x117   : > { %v1442_v25 = vpop.eup %1441  ;;  %1461 = vrcp.f32 %v672_v21  ;;  %v670_v26 = vadd.f32 1.0, %v1440_v22  ;;  %969 = vrot.lane.b32.xlu1 %v1280_v58, %s1511_s29  ;;  %v1225_v58 = vmul.f32 -1.442695, %v1776_v38 }
 0x118   : > { %v1444_v27 = vpop.eup %1443  ;;  %1463 = vrcp.f32 %v654_v16  ;;  %v657_v31 = vadd.f32 1.0, %v1442_v25 }
 0x119   : > { %v1446_v32 = vpop.eup %1445  ;;  %1465 = vrcp.f32 %v670_v26  ;;  %v673_v37 = vadd.f32 1.0, %v1444_v27  ;;  %947 = vrot.lane.b32.xlu0 %v1269_v44, %s1511_s29 }
 0x11a   : > { %v1448_v34 = vpop.eup %1447  ;;  %1467 = vrcp.f32 %v657_v31  ;;  %v655_v20 = vadd.f32 1.0, %v1446_v32 }
 0x11b   : > { %v1450_v45 = vpop.eup %1449  ;;  %1469 = vrcp.f32 %v673_v37  ;;  %v671_v46 = vadd.f32 1.0, %v1448_v34  ;;  %949 = vrot.lane.b32.xlu1 %v1270_v12, %s1511_s29 }
 0x11c   : > { %v1452_v54 = vpop.eup %1451  ;;  %1471 = vrcp.f32 %v655_v20  ;;  %v660_v43 = vadd.f32 1.0, %v1450_v45 }
 0x11d   : > { %v1454_v55 = vpop.eup %1453  ;;  %1473 = vrcp.f32 %v671_v46  ;;  %v676_v57 = vadd.f32 1.0, %v1452_v54  ;;  %979 = vrot.lane.b32.xlu0 %v1745_v4, %s1511_s29  ;;  %v1226_v4 = vmul.f32 -1.442695, %v1796_v39 }
 0x11e   : > { %v1456_v60 = vpop.eup %1455  ;;  %v765_v62 = vmul.f32 %v1454_v55, %v1646_v11  ;;  %1475 = vrcp.f32 %v660_v43  ;;  %v1210_v11 = vmul.f32 -1.442695, %v1791_v56 }
 0x11f   : > { %v1458_v61 = vpop.eup %1457  ;;  %v747_v44 = vmul.f32 %v1456_v60, %v1650_v30  ;;  %1477 = vrcp.f32 %v676_v57 }
 0x120   : > { %v1460_v18 = vpop.eup %1459  ;;  %v1286_v2 = vpack.c.bf16 %v765_v62, %v765_v62  ;;  %v763_v3 = vmul.f32 %v1458_v61, %v1653_v33  ;;  %1479 = vpow2.f32 %v1209_v49 }
 0x121   : > { %v1462_v47 = vpop.eup %1461  ;;  %v1268_v5 = vpack.c.bf16 %v747_v44, %v747_v44  ;;  %v752_v6 = vmul.f32 %v1460_v18, %v1656_v36  ;;  %1481 = vpow2.f32 %v1225_v58  ;;  %943 = vrot.lane.b32.xlu0 %v1750_v7, %s1511_s29 }
 0x122   : > { %v1464_v30 = vpop.eup %1463  ;;  %926 = vst.msk [vmem:[%s1705_s28 + $0x5c] sm:$0xf] %vm902_vm2, %v1286_v2  ;;  %v1284_v48 = vpack.c.bf16 %v763_v3, %v763_v3  ;;  %v768_v8 = vmul.f32 %v1462_v47, %v1659_v41  ;;  %1483 = vpow2.f32 %v1212_v63  ;;  %981 = vrot.lane.b32.xlu1 %v1286_v2, %s1511_s29 }
 0x123   : > { %v1466_v33 = vpop.eup %1465  ;;  %908 = vst.msk [vmem:[%s1705_s28 + $0x14] sm:$0xf] %vm902_vm2, %v1268_v5  ;;  %v1273_v36 = vpack.c.bf16 %v752_v6, %v752_v6  ;;  %v750_v10 = vmul.f32 %v1464_v30, %v1662_v42  ;;  %1485 = vpow2.f32 %v1228_v0 }
 0x124   : > { %v1468_v52 = vpop.eup %1467  ;;  %924 = vst.msk [vmem:[%s1705_s28 + $0x54] sm:$0xf] %vm902_vm2, %v1284_v48  ;;  %v1289_v12 = vpack.c.bf16 %v768_v8, %v768_v8  ;;  %v766_v41 = vmul.f32 %v1466_v33, %v1667_v50  ;;  %1487 = vpow2.f32 %v1210_v11 }
 0x125   : > { %v1470_v13 = vpop.eup %1469  ;;  %913 = vst.msk [vmem:[%s1705_s28 + $0x28] sm:$0xf] %vm902_vm2, %v1273_v36  ;;  %v1271_v7 = vpack.c.bf16 %v750_v10, %v750_v10  ;;  %v753_v53 = vmul.f32 %v1468_v52, %v1670_v51  ;;  %1489 = vpow2.f32 %v1226_v4  ;;  %975 = vrot.lane.b32.xlu0 %v1756_v9, %s1511_s29 }
 0x126   : > { %v1472_v14 = vpop.eup %1471  ;;  %929 = vst.msk [vmem:[%s1705_s28 + $0x68] sm:$0xf] %vm902_vm2, %v1289_v12  ;;  %v1287_v42 = vpack.c.bf16 %v766_v41, %v766_v41  ;;  %v769_v17 = vmul.f32 %v1470_v13, %v1678_v59  ;;  %945 = vrot.lane.b32.xlu1 %v1268_v5, %s1511_s29 }
 0x127   : > { %v1474_v50 = vpop.eup %1473  ;;  %911 = vst.msk [vmem:[%s1705_s28 + $0x20] sm:$0xf] %vm902_vm2, %v1271_v7  ;;  %v1274_v19 = vpack.c.bf16 %v753_v53, %v753_v53  ;;  %v751_v51 = vmul.f32 %v1472_v14, %v1686_v1 }
 0x128   : > { %v1476_v23 = vpop.eup %1475  ;;  %927 = vst.msk [vmem:[%s1705_s28 + $0x60] sm:$0xf] %vm902_vm2, %v1287_v42  ;;  %v1290_v21 = vpack.c.bf16 %v769_v17, %v769_v17  ;;  %v767_v22 = vmul.f32 %v1474_v50, %v1699_v15 }
 0x129   : > { %v1478_v59 = vpop.eup %1477  ;;  %914 = vst.msk [vmem:[%s1705_s28 + $0x2c] sm:$0xf] %vm902_vm2, %v1274_v19  ;;  %v1272_v16 = vpack.c.bf16 %v751_v51, %v751_v51  ;;  %v756_v9 = vmul.f32 %v1476_v23, %v1710_v24  ;;  %955 = vrot.lane.b32.xlu0 %v1273_v36, %s1511_s29 }
 0x12a   : > { %v1480_v25 = vpop.eup %1479  ;;  %930 = vst.msk [vmem:[%s1705_s28 + $0x6c] sm:$0xf] %vm902_vm2, %v1290_v21  ;;  %v1288_v26 = vpack.c.bf16 %v767_v22, %v767_v22  ;;  %v772_v1 = vmul.f32 %v1478_v59, %v1719_v29  ;;  %977 = vrot.lane.b32.xlu1 %v1284_v48, %s1511_s29 }
 0x12b   : > { %v1482_v15 = vpop.eup %1481  ;;  %912 = vst.msk [vmem:[%s1705_s28 + $0x24] sm:$0xf] %vm902_vm2, %v1272_v16  ;;  %v1277_v27 = vpack.c.bf16 %v756_v9, %v756_v9  ;;  %v658_v31 = vadd.f32 1.0, %v1480_v25 }
 0x12c   : > { %v1484_v32 = vpop.eup %1483  ;;  %928 = vst.msk [vmem:[%s1705_s28 + $0x64] sm:$0xf] %vm902_vm2, %v1288_v26  ;;  %v1293_v24 = vpack.c.bf16 %v772_v1, %v772_v1  ;;  %v674_v37 = vadd.f32 1.0, %v1482_v15 }
 0x12d   : > { %v1486_v34 = vpop.eup %1485  ;;  %917 = vst.msk [vmem:[%s1705_s28 + $0x38] sm:$0xf] %vm902_vm2, %v1277_v27  ;;  %1491 = vrcp.f32 %v658_v31  ;;  %v661_v29 = vadd.f32 1.0, %v1484_v32  ;;  %987 = vrot.lane.b32.xlu0 %v1289_v12, %s1511_s29 }
 0x12e   : > { %v1488_v20 = vpop.eup %1487  ;;  %933 = vst.msk [vmem:[%s1705_s28 + $0x78] sm:$0xf] %vm902_vm2, %v1293_v24  ;;  %1493 = vrcp.f32 %v674_v37  ;;  %v677_v45 = vadd.f32 1.0, %v1486_v34  ;;  %957 = vrot.lane.b32.xlu1 %v1274_v19, %s1511_s29 }
 0x12f   : > { %v1490_v46 = vpop.eup %1489  ;;  %1495 = vrcp.f32 %v661_v29  ;;  %v659_v54 = vadd.f32 1.0, %v1488_v20 }
 0x130   : > { %1497 = vrcp.f32 %v677_v45  ;;  %v675_v43 = vadd.f32 1.0, %v1490_v46 }
 0x131   : > { %1499 = vrcp.f32 %v659_v54  ;;  %951 = vrot.lane.b32.xlu0 %v1271_v7, %s1511_s29 }
 0x132   : > { %1501 = vrcp.f32 %v675_v43  ;;  %989 = vrot.lane.b32.xlu1 %v1290_v21, %s1511_s29 }
 0x135   : > { %983 = vrot.lane.b32.xlu0 %v1287_v42, %s1511_s29 }
 0x136   : > { %953 = vrot.lane.b32.xlu1 %v1272_v16, %s1511_s29 }
 0x137   : > { %v1492_v49 = vpop.eup %1491 }
 0x138   : > { %v1494_v55 = vpop.eup %1493  ;;  %v754_v57 = vmul.f32 %v1492_v49, %v1772_v28 }
 0x139   : > { %v1496_v58 = vpop.eup %1495  ;;  %v770_v60 = vmul.f32 %v1494_v55, %v1776_v38  ;;  %963 = vrot.lane.b32.xlu0 %v1277_v27, %s1511_s29 }
 0x13a   : > { %v1498_v62 = vpop.eup %1497  ;;  %v1275_v63 = vpack.c.bf16 %v754_v57, %v754_v57  ;;  %v757_v61 = vmul.f32 %v1496_v58, %v1781_v40  ;;  %985 = vrot.lane.b32.xlu1 %v1288_v26, %s1511_s29 }
 0x13b   : > { %v1500_v44 = vpop.eup %1499  ;;  %v1291_v0 = vpack.c.bf16 %v770_v60, %v770_v60  ;;  %v773_v18 = vmul.f32 %v1498_v62, %v1786_v35 }
 0x13c   : > { %v1502_v28 = vpop.eup %1501  ;;  %915 = vst.msk [vmem:[%s1705_s28 + $0x30] sm:$0xf] %vm902_vm2, %v1275_v63  ;;  %v1278_v38 = vpack.c.bf16 %v757_v61, %v757_v61  ;;  %v755_v2 = vmul.f32 %v1500_v44, %v1791_v56 }
 0x13d   : > { %931 = vst.msk [vmem:[%s1705_s28 + $0x70] sm:$0xf] %vm902_vm2, %v1291_v0  ;;  %v1294_v40 = vpack.c.bf16 %v773_v18, %v773_v18  ;;  %v771_v3 = vmul.f32 %v1502_v28, %v1796_v39  ;;  %959 = vrot.lane.b32.xlu0 %v1275_v63, %s1511_s29 }
 0x13e   : > { %918 = vst.msk [vmem:[%s1705_s28 + $0x3c] sm:$0xf] %vm902_vm2, %v1278_v38  ;;  %v1276_v11 = vpack.c.bf16 %v755_v2, %v755_v2  ;;  %965 = vrot.lane.b32.xlu1 %v1278_v38, %s1511_s29 }
 0x13f   : > { %934 = vst.msk [vmem:[%s1705_s28 + $0x7c] sm:$0xf] %vm902_vm2, %v1294_v40  ;;  %v1292_v35 = vpack.c.bf16 %v771_v3, %v771_v3 }
 0x140   : > { %916 = vst.msk [vmem:[%s1705_s28 + $0x34] sm:$0xf] %vm902_vm2, %v1276_v11 }
 0x141   : > { %932 = vst.msk [vmem:[%s1705_s28 + $0x74] sm:$0xf] %vm902_vm2, %v1292_v35  ;;  %991 = vrot.lane.b32.xlu0 %v1291_v0, %s1511_s29 }
 0x142   : > { %961 = vrot.lane.b32.xlu1 %v1276_v11, %s1511_s29 }
 0x145   : > { %995 = vrot.lane.b32.xlu0 %v1293_v24, %s1511_s29 }
 0x146   : > { %993 = vrot.lane.b32.xlu1 %v1292_v35, %s1511_s29 }
 0x14a   : > { %997 = vrot.lane.b32.xlu1 %v1294_v40, %s1511_s29 }
 0x17b   : > { %v972_v56 = vpop.permute.xlu0 %971 }
 0x17c   : > { %1049 = vst.msk [vmem:[%s1889_s6 + $0x48] sm:$0xf] %vm902_vm2, %v972_v56 }
 0x17d   : > { %v940_v39 = vpop.permute.xlu1 %939 }
 0x17e   : > { %1033 = vst.msk [vmem:[%s1889_s6 + $0x8] sm:$0xf] %vm902_vm2, %v940_v39 }
 0x17f   : > { %v936_v47 = vpop.permute.xlu0 %935 }
 0x180   : > { %1031 = vst.msk [vmem:[%s1889_s6] sm:$0xf] %vm902_vm2, %v936_v47 }
 0x181   : > { %v942_v5 = vpop.permute.xlu1 %941 }
 0x182   : > { %1034 = vst.msk [vmem:[%s1889_s6 + $0xc] sm:$0xf] %vm902_vm2, %v942_v5 }
 0x183   : > { %v968_v6 = vpop.permute.xlu0 %967 }
 0x184   : > { %1047 = vst.msk [vmem:[%s1889_s6 + $0x40] sm:$0xf] %vm902_vm2, %v968_v6 }
 0x185   : > { %v974_v4 = vpop.permute.xlu1 %973 }
 0x186   : > { %1050 = vst.msk [vmem:[%s1889_s6 + $0x4c] sm:$0xf] %vm902_vm2, %v974_v4 }
 0x187   : > { %v938_v30 = vpop.permute.xlu0 %937 }
 0x188   : > { %1032 = vst.msk [vmem:[%s1889_s6 + $0x4] sm:$0xf] %vm902_vm2, %v938_v30 }
 0x189   : > { %v970_v48 = vpop.permute.xlu1 %969 }
 0x18a   : > { %1048 = vst.msk [vmem:[%s1889_s6 + $0x44] sm:$0xf] %vm902_vm2, %v970_v48 }
 0x18b   : > { %v948_v8 = vpop.permute.xlu0 %947 }
 0x18c   : > { %1037 = vst.msk [vmem:[%s1889_s6 + $0x18] sm:$0xf] %vm902_vm2, %v948_v8 }
 0x18d   : > { %v950_v33 = vpop.permute.xlu1 %949 }
 0x18e   : > { %1038 = vst.msk [vmem:[%s1889_s6 + $0x1c] sm:$0xf] %vm902_vm2, %v950_v33 }
 0x18f   : > { %v980_v36 = vpop.permute.xlu0 %979 }
 0x190   : > { %1053 = vst.msk [vmem:[%s1889_s6 + $0x58] sm:$0xf] %vm902_vm2, %v980_v36 }
 0x193   : > { %v944_v52 = vpop.permute.xlu0 %943 }
 0x194   : > { %v982_v10 = vpop.permute.xlu1 %981  ;;  %1035 = vst.msk [vmem:[%s1889_s6 + $0x10] sm:$0xf] %vm902_vm2, %v944_v52 }
 0x195   : > { %1054 = vst.msk [vmem:[%s1889_s6 + $0x5c] sm:$0xf] %vm902_vm2, %v982_v10 }
 0x197   : > { %v976_v41 = vpop.permute.xlu0 %975 }
 0x198   : > { %v946_v12 = vpop.permute.xlu1 %945  ;;  %1051 = vst.msk [vmem:[%s1889_s6 + $0x50] sm:$0xf] %vm902_vm2, %v976_v41 }
 0x199   : > { %1036 = vst.msk [vmem:[%s1889_s6 + $0x14] sm:$0xf] %vm902_vm2, %v946_v12 }
 0x19b   : > { %v956_v7 = vpop.permute.xlu0 %955 }
 0x19c   : > { %v978_v13 = vpop.permute.xlu1 %977  ;;  %1041 = vst.msk [vmem:[%s1889_s6 + $0x28] sm:$0xf] %vm902_vm2, %v956_v7 }
 0x19d   : > { %1052 = vst.msk [vmem:[%s1889_s6 + $0x54] sm:$0xf] %vm902_vm2, %v978_v13 }
 0x19f   : > { %v988_v14 = vpop.permute.xlu0 %987 }
 0x1a0   : > { %v958_v53 = vpop.permute.xlu1 %957  ;;  %1057 = vst.msk [vmem:[%s1889_s6 + $0x68] sm:$0xf] %vm902_vm2, %v988_v14 }
 0x1a1   : > { %1042 = vst.msk [vmem:[%s1889_s6 + $0x2c] sm:$0xf] %vm902_vm2, %v958_v53 }
 0x1a3   : > { %v952_v17 = vpop.permute.xlu0 %951 }
 0x1a4   : > { %v990_v42 = vpop.permute.xlu1 %989  ;;  %1039 = vst.msk [vmem:[%s1889_s6 + $0x20] sm:$0xf] %vm902_vm2, %v952_v17 }
 0x1a5   : > { %1058 = vst.msk [vmem:[%s1889_s6 + $0x6c] sm:$0xf] %vm902_vm2, %v990_v42 }
 0x1a7   : > { %v984_v19 = vpop.permute.xlu0 %983 }
 0x1a8   : > { %v954_v50 = vpop.permute.xlu1 %953  ;;  %1055 = vst.msk [vmem:[%s1889_s6 + $0x60] sm:$0xf] %vm902_vm2, %v984_v19 }
 0x1a9   : > { %1040 = vst.msk [vmem:[%s1889_s6 + $0x24] sm:$0xf] %vm902_vm2, %v954_v50 }
 0x1ab   : > { %v964_v23 = vpop.permute.xlu0 %963 }
 0x1ac   : > { %v986_v51 = vpop.permute.xlu1 %985  ;;  %1045 = vst.msk [vmem:[%s1889_s6 + $0x38] sm:$0xf] %vm902_vm2, %v964_v23 }
 0x1ad   : > { %1056 = vst.msk [vmem:[%s1889_s6 + $0x64] sm:$0xf] %vm902_vm2, %v986_v51 }
 0x1af   : > { %v960_v22 = vpop.permute.xlu0 %959 }
 0x1b0   : > { %v966_v21 = vpop.permute.xlu1 %965  ;;  %1043 = vst.msk [vmem:[%s1889_s6 + $0x30] sm:$0xf] %vm902_vm2, %v960_v22 }
 0x1b1   : > { %1046 = vst.msk [vmem:[%s1889_s6 + $0x3c] sm:$0xf] %vm902_vm2, %v966_v21 }
 0x1b3   : > { %v992_v16 = vpop.permute.xlu0 %991 }
 0x1b4   : > { %v962_v59 = vpop.permute.xlu1 %961  ;;  %1059 = vst.msk [vmem:[%s1889_s6 + $0x70] sm:$0xf] %vm902_vm2, %v992_v16 }
 0x1b5   : > { %1044 = vst.msk [vmem:[%s1889_s6 + $0x34] sm:$0xf] %vm902_vm2, %v962_v59 }
 0x1b7   : > { %v996_v25 = vpop.permute.xlu0 %995 }
 0x1b8   : > { %v994_v9 = vpop.permute.xlu1 %993  ;;  %1061 = vst.msk [vmem:[%s1889_s6 + $0x78] sm:$0xf] %vm902_vm2, %v996_v25 }
 0x1b9   : > { %1060 = vst.msk [vmem:[%s1889_s6 + $0x74] sm:$0xf] %vm902_vm2, %v994_v9 }
 0x1bc   : > { %v998_v26 = vpop.permute.xlu1 %997 }
 0x1bd   : > { %1062 = vst.msk [vmem:[%s1889_s6 + $0x7c] sm:$0xf] %vm902_vm2, %v998_v26 }
 0x1be PF: > { %s15_s15 = sadd.s32 1, %s1509_s15  }
 0x1bf   : > { %p12_p4 = scmp.ge.s32.totalorder %s15_s15, 4  }
 0x1c1   :  { %14 = sbr.rel (!%p12_p4) target bundleno = 1 (0x1), region = 74 }

// kernel: cspstage_forward.7
= control target key start
LH: loop header
LB: loop body
LE: loop exit
PB: predicated region body
PF: predicated region fallthrough
CT: control target
= control target key end

     0   :  { %s1719_s18 = smov 0   ;;  %s2048_s0 = inlined_call_operand.vmem [shape: bf16[512,4], index: 0, kind: input, shape index: {}]   ;;  %s2049_s1 = inlined_call_operand.vmem [shape: bf16[512,4], index: 1, kind: input, shape index: {}]   ;;  %s2050_s2 = inlined_call_operand.vmem [shape: bf16[4,8], index: 2, kind: input, shape index: {}]   ;;  %s2051_s3 = inlined_call_operand.vmem [shape: bf16[4,8], index: 3, kind: input, shape index: {}]   ;;  %s2052_s4 = inlined_call_operand.vmem [shape: f32[1,8], index: 4, kind: input, shape index: {}]   ;;  %s2053_s5 = inlined_call_operand.vmem [shape: f32[512,8], index: 5, kind: output, shape index: {}]  }
   0x1 LB: > { %s1267_s19 = sadd.s32 4294967295, %s1687_s18   ;;  %p1271_p0 = scmp.ge.s32.totalorder %s1687_s18, 1  ;;  %s1687_s18 = sphi %s1719_s18, %s15_s18  }
   0x2   : > { %p199_p1 = scmp.lt.s32.totalorder %s1687_s18, 3 }
   0x4   : > { %p200_p2 = pnand %p1271_p0, %p199_p1 }
   0x5   : > { %v316_v0 = vld [vmem:[%s2051_s3] sm:$0x3] (!%p200_p2)  ;;  %vm446_vm0 = vcmask (!%p200_p2), 1041408   ;;  %s1272_s24 = sshll.u32 (!%p200_p2), %s1267_s19, 5  ;;  %vm397_vm1 = vcmask (!%p200_p2), 31744   ;;  %vm1166_vm2 = vcmask (!%p200_p2), 64512  }
   0x6   : > { %203 = sbr.rel (%p200_p2) target bundleno = 328 (0x148), region = 40  ;;  %v283_v1 = vld [vmem:[%s2050_s2] sm:$0x3] (!%p200_p2)  ;;  %1511 = vmatprep.subr.msk.bf16.mxu1 (!%p200_p2), %vm446_vm0, %v316_v0  ;;  %v448_v2 = vsel (!%p200_p2), %vm446_vm0, %v316_v0, 0  ;;  %p233_p3 = scmp.lt.s32.totalorder (!%p200_p2), %s1272_s24, 63 }
   0x7   : > { %1512 = vmatprep.subr.msk.bf16.mxu0 (!%p200_p2), %vm446_vm0, %v283_v1  ;;  %v740_v3 = vsel (!%p200_p2), %vm446_vm0, %v283_v1, 0  ;;  %1412 = vmatpush3.bf16.msra.mxu1 (!%p200_p2), %v448_v2  ;;  %v1813_v38 = vld [vmem:[%s2052_s4] ss:$0 sm:$0xff] (!%p200_p2) }
   0x8   : > { %1446 = vmatpush3.bf16.msra.mxu0 (!%p200_p2), %v740_v3 }
   0xd   : > { %s2055_s24 = smov (!%p233_p3, %s1272_s24), 63 }
   0xe   : > { %s1273_s25 = sshll.u32 %s2055_s24, 2  ;;  %s1277_s9 = sshll.u32 %s2055_s24, 3 }
   0xf   : > { %s1739_s28 = scalar_lea.vmem %s2049_s1, %s1273_s25  ;;  %s1745_s6 = scalar_lea.vmem %s2048_s0, %s1273_s25 }
  0x10   : > { %v1521_v4 = vld [vmem:[%s1739_s28] sm:$0xff]   ;;  %v1523_v6 = vld [vmem:[%s1739_s28 + $0x8] sm:$0xff]   ;;  %v1525_v8 = vld [vmem:[%s1739_s28 + $0x10] sm:$0xff]   ;;  %s1877_s12 = scalar_lea.vmem %s2053_s5, %s1277_s9 }
  0x11   : > { %v1522_v5 = vld [vmem:[%s1745_s6] sm:$0xff]   ;;  %1413 = vmatprep.mubr.msk.bf16.mxu1 %vm397_vm1, %v1521_v4  ;;  %v1524_v7 = vld [vmem:[%s1745_s6 + $0x8] sm:$0xff]   ;;  %v1526_v9 = vld [vmem:[%s1745_s6 + $0x10] sm:$0xff]  }
  0x12   : > { %1447 = vmatprep.mubr.msk.bf16.mxu0 %vm397_vm1, %v1522_v5  ;;  %1414 = vmatmul.mubr.msk.bf16.vlgmr.msra.gmra.mrb[0].mxu1 %vm397_vm1, %v1523_v6  ;;  %v1527_v10 = vld [vmem:[%s1739_s28 + $0x18] sm:$0xff]   ;;  %v1529_v12 = vld [vmem:[%s1739_s28 + $0x20] sm:$0xff]   ;;  %v1531_v14 = vld [vmem:[%s1739_s28 + $0x28] sm:$0xff]  }
  0x13   : > { %1448 = vmatmul.mubr.msk.bf16.vlgmr.msra.gmra.mrb[0].mxu0 %vm397_vm1, %v1524_v7  ;;  %1417 = vmatprep.mubr.msk.bf16.mxu1 %vm397_vm1, %v1525_v8  ;;  %v1528_v11 = vld [vmem:[%s1745_s6 + $0x18] sm:$0xff]   ;;  %v1530_v13 = vld [vmem:[%s1745_s6 + $0x20] sm:$0xff]   ;;  %v1532_v15 = vld [vmem:[%s1745_s6 + $0x28] sm:$0xff]  }
  0x14   : > { %1451 = vmatprep.mubr.msk.bf16.mxu0 %vm397_vm1, %v1526_v9  ;;  %v1533_v16 = vld [vmem:[%s1739_s28 + $0x30] sm:$0xff]   ;;  %v1535_v18 = vld [vmem:[%s1739_s28 + $0x38] sm:$0xff]   ;;  %v1537_v20 = vld [vmem:[%s1739_s28 + $0x40] sm:$0xff]  }
  0x15   : > { %v1534_v17 = vld [vmem:[%s1745_s6 + $0x30] sm:$0xff]   ;;  %v1536_v19 = vld [vmem:[%s1745_s6 + $0x38] sm:$0xff]   ;;  %v1538_v21 = vld [vmem:[%s1745_s6 + $0x40] sm:$0xff]  }
  0x16   : > { %v1539_v22 = vld [vmem:[%s1739_s28 + $0x48] sm:$0xff]   ;;  %v1541_v24 = vld [vmem:[%s1739_s28 + $0x50] sm:$0xff]   ;;  %v1543_v26 = vld [vmem:[%s1739_s28 + $0x58] sm:$0xff]  }
  0x17   : > { %v1540_v23 = vld [vmem:[%s1745_s6 + $0x48] sm:$0xff]   ;;  %v1542_v25 = vld [vmem:[%s1745_s6 + $0x50] sm:$0xff]   ;;  %v1544_v27 = vld [vmem:[%s1745_s6 + $0x58] sm:$0xff]  }
  0x18   : > { %v1545_v28 = vld [vmem:[%s1739_s28 + $0x60] sm:$0xff]   ;;  %v1547_v30 = vld [vmem:[%s1739_s28 + $0x68] sm:$0xff]   ;;  %v1549_v32 = vld [vmem:[%s1739_s28 + $0x70] sm:$0xff]  }
  0x19   : > { %v1546_v29 = vld [vmem:[%s1745_s6 + $0x60] sm:$0xff]   ;;  %v1548_v31 = vld [vmem:[%s1745_s6 + $0x68] sm:$0xff]   ;;  %v1550_v33 = vld [vmem:[%s1745_s6 + $0x70] sm:$0xff]  }
  0x1a   : > { %1418 = vmatmul.mubr.msk.bf16.gmra.mrb[4].mxu1 %vm397_vm1, %v1527_v10  ;;  %v1551_v34 = vld [vmem:[%s1739_s28 + $0x78] sm:$0xff]  }
  0x1b   : > { %1452 = vmatmul.mubr.msk.bf16.gmra.mrb[4].mxu0 %vm397_vm1, %v1528_v11  ;;  %1421 = vmatprep.mubr.msk.bf16.mxu1 %vm397_vm1, %v1529_v12  ;;  %v1552_v35 = vld [vmem:[%s1745_s6 + $0x78] sm:$0xff]  }
  0x1c   : > { %1455 = vmatprep.mubr.msk.bf16.mxu0 %vm397_vm1, %v1530_v13 }
  0x22   : > { %1422 = vmatmul.mubr.msk.bf16.gmra.mrb[8].mxu1 %vm397_vm1, %v1531_v14 }
  0x23   : > { %1456 = vmatmul.mubr.msk.bf16.gmra.mrb[8].mxu0 %vm397_vm1, %v1532_v15  ;;  %1425 = vmatprep.mubr.msk.bf16.mxu1 %vm397_vm1, %v1533_v16 }
  0x24   : > { %1459 = vmatprep.mubr.msk.bf16.mxu0 %vm397_vm1, %v1534_v17 }
  0x2a   : > { %1426 = vmatmul.mubr.msk.bf16.gmra.mrb[12].mxu1 %vm397_vm1, %v1535_v18 }
  0x2b   : > { %1460 = vmatmul.mubr.msk.bf16.gmra.mrb[12].mxu0 %vm397_vm1, %v1536_v19  ;;  %1429 = vmatprep.mubr.msk.bf16.mxu1 %vm397_vm1, %v1537_v20 }
  0x2c   : > { %1463 = vmatprep.mubr.msk.bf16.mxu0 %vm397_vm1, %v1538_v21 }
  0x32   : > { %1430 = vmatmul.mubr.msk.bf16.gmra.mrb[16].mxu1 %vm397_vm1, %v1539_v22 }
  0x33   : > { %1464 = vmatmul.mubr.msk.bf16.gmra.mrb[16].mxu0 %vm397_vm1, %v1540_v23  ;;  %1433 = vmatprep.mubr.msk.bf16.mxu1 %vm397_vm1, %v1541_v24 }
  0x34   : > { %1467 = vmatprep.mubr.msk.bf16.mxu0 %vm397_vm1, %v1542_v25 }
  0x3a   : > { %1434 = vmatmul.mubr.msk.bf16.gmra.mrb[20].mxu1 %vm397_vm1, %v1543_v26 }
  0x3b   : > { %1468 = vmatmul.mubr.msk.bf16.gmra.mrb[20].mxu0 %vm397_vm1, %v1544_v27  ;;  %1437 = vmatprep.mubr.msk.bf16.mxu1 %vm397_vm1, %v1545_v28 }
  0x3c   : > { %1471 = vmatprep.mubr.msk.bf16.mxu0 %vm397_vm1, %v1546_v29 }
  0x42   : > { %1438 = vmatmul.mubr.msk.bf16.gmra.mrb[24].mxu1 %vm397_vm1, %v1547_v30 }
  0x43   : > { %1472 = vmatmul.mubr.msk.bf16.gmra.mrb[24].mxu0 %vm397_vm1, %v1548_v31  ;;  %1441 = vmatprep.mubr.msk.bf16.mxu1 %vm397_vm1, %v1549_v32 }
  0x44   : > { %1475 = vmatprep.mubr.msk.bf16.mxu0 %vm397_vm1, %v1550_v33 }
  0x4a   : > { %1442 = vmatmul.mubr.msk.bf16.gmra.mrb[28].mxu1 %vm397_vm1, %v1551_v34 }
  0x4b   : > { %1476 = vmatmul.mubr.msk.bf16.gmra.mrb[28].mxu0 %vm397_vm1, %v1552_v35 }
  0xe5   : > { %v1415_v36 = vpop.f32.mrb[0].mxu1 }
  0xe6   : > { %v1449_v37 = vpop.f32.mrb[0].mxu0  ;;  %v484_v39 = vpop.f32.mrb[1].mxu1 }
  0xe7   : > { %v785_v40 = vadd.f32 %v1449_v37, %v1415_v36  ;;  %v776_v41 = vpop.f32.mrb[1].mxu0  ;;  %v1416_v42 = vpop.f32.mrb[2].mxu1 }
  0xe8   : > { %v777_v43 = vadd.f32 %v776_v41, %v484_v39  ;;  %v1450_v44 = vpop.f32.mrb[2].mxu0  ;;  %v487_v45 = vpop.f32.mrb[3].mxu1 }
  0xe9   : > { %v1816_v46 = vadd.f32 %v1813_v38, %v785_v40  ;;  %v788_v47 = vadd.f32 %v1450_v44, %v1416_v42  ;;  %v779_v48 = vpop.f32.mrb[3].mxu0 }
  0xea   : > { %v1819_v49 = vadd.f32 %v1813_v38, %v777_v43  ;;  %v780_v50 = vadd.f32 %v779_v48, %v487_v45 }
  0xeb   : > { %v1345_v51 = vmul.f32 -1.442695, %v1816_v46  ;;  %v1823_v52 = vadd.f32 %v1813_v38, %v788_v47 }
  0xec   : > { %v1343_v53 = vmul.f32 -1.442695, %v1819_v49  ;;  %v1827_v54 = vadd.f32 %v1813_v38, %v780_v50 }
  0xed   : > { %1553 = vpow2.f32 %v1345_v51  ;;  %v1346_v55 = vmul.f32 -1.442695, %v1823_v52  ;;  %v1419_v56 = vpop.f32.mrb[4].mxu1 }
  0xee   : > { %1555 = vpow2.f32 %v1343_v53  ;;  %v1344_v57 = vmul.f32 -1.442695, %v1827_v54  ;;  %v1453_v58 = vpop.f32.mrb[4].mxu0  ;;  %v500_v59 = vpop.f32.mrb[5].mxu1 }
  0xef   : > { %1557 = vpow2.f32 %v1346_v55  ;;  %v801_v60 = vadd.f32 %v1453_v58, %v1419_v56  ;;  %v792_v61 = vpop.f32.mrb[5].mxu0  ;;  %v1420_v62 = vpop.f32.mrb[6].mxu1 }
  0xf0   : > { %1559 = vpow2.f32 %v1344_v57  ;;  %v793_v63 = vadd.f32 %v792_v61, %v500_v59  ;;  %v1454_v0 = vpop.f32.mrb[6].mxu0  ;;  %v503_v1 = vpop.f32.mrb[7].mxu1 }
  0xf1   : > { %v1832_v2 = vadd.f32 %v1813_v38, %v801_v60  ;;  %v804_v3 = vadd.f32 %v1454_v0, %v1420_v62  ;;  %v795_v4 = vpop.f32.mrb[7].mxu0 }
  0xf2   : > { %v1835_v5 = vadd.f32 %v1813_v38, %v793_v63  ;;  %v796_v6 = vadd.f32 %v795_v4, %v503_v1 }
  0xf3   : > { %v1349_v7 = vmul.f32 -1.442695, %v1832_v2  ;;  %v1839_v8 = vadd.f32 %v1813_v38, %v804_v3 }
  0xf4   : > { %v1347_v9 = vmul.f32 -1.442695, %v1835_v5  ;;  %v1843_v10 = vadd.f32 %v1813_v38, %v796_v6 }
  0xf5   : > { %1561 = vpow2.f32 %v1349_v7  ;;  %v1350_v11 = vmul.f32 -1.442695, %v1839_v8  ;;  %v1423_v12 = vpop.f32.mrb[8].mxu1 }
  0xf6   : > { %1563 = vpow2.f32 %v1347_v9  ;;  %v1348_v13 = vmul.f32 -1.442695, %v1843_v10  ;;  %v1457_v14 = vpop.f32.mrb[8].mxu0  ;;  %v516_v15 = vpop.f32.mrb[9].mxu1 }
  0xf7   : > { %v1554_v16 = vpop.eup %1553  ;;  %1565 = vpow2.f32 %v1350_v11  ;;  %v817_v17 = vadd.f32 %v1457_v14, %v1423_v12  ;;  %v808_v18 = vpop.f32.mrb[9].mxu0 }
  0xf8   : > { %v1424_v19 = vpop.f32.mrb[10].mxu1  ;;  %v1556_v20 = vpop.eup %1555  ;;  %v1040_v21 = vadd.f32 1.0, %v1554_v16  ;;  %1567 = vpow2.f32 %v1348_v13  ;;  %v809_v22 = vadd.f32 %v808_v18, %v516_v15 }
  0xf9   : > { %v1458_v23 = vpop.f32.mrb[10].mxu0  ;;  %v519_v24 = vpop.f32.mrb[11].mxu1  ;;  %v1038_v26 = vadd.f32 1.0, %v1556_v20  ;;  %v1848_v27 = vadd.f32 %v1813_v38, %v817_v17 }
  0xfa   : > { %v1558_v25 = vpop.eup %1557  ;;  %v820_v28 = vadd.f32 %v1458_v23, %v1424_v19  ;;  %v811_v29 = vpop.f32.mrb[11].mxu0  ;;  %1569 = vrcp.f32 %v1040_v21  ;;  %v1851_v32 = vadd.f32 %v1813_v38, %v809_v22 }
  0xfb   : > { %v1560_v30 = vpop.eup %1559  ;;  %v1041_v31 = vadd.f32 1.0, %v1558_v25  ;;  %v812_v33 = vadd.f32 %v811_v29, %v519_v24  ;;  %1571 = vrcp.f32 %v1038_v26  ;;  %v1353_v35 = vmul.f32 -1.442695, %v1848_v27 }
  0xfc   : > { %v1039_v34 = vadd.f32 1.0, %v1560_v30  ;;  %v1855_v36 = vadd.f32 %v1813_v38, %v820_v28  ;;  %v1351_v37 = vmul.f32 -1.442695, %v1851_v32 }
  0xfd   : > { %1573 = vrcp.f32 %v1041_v31  ;;  %v1859_v39 = vadd.f32 %v1813_v38, %v812_v33  ;;  %v1427_v41 = vpop.f32.mrb[12].mxu1 }
  0xfe   : > { %1575 = vrcp.f32 %v1039_v34  ;;  %v1354_v40 = vmul.f32 -1.442695, %v1855_v36  ;;  %v1461_v43 = vpop.f32.mrb[12].mxu0  ;;  %v532_v44 = vpop.f32.mrb[13].mxu1 }
  0xff   : > { %1577 = vpow2.f32 %v1353_v35  ;;  %v1352_v42 = vmul.f32 -1.442695, %v1859_v39  ;;  %v1562_v45 = vpop.eup %1561  ;;  %v833_v47 = vadd.f32 %v1461_v43, %v1427_v41  ;;  %v824_v48 = vpop.f32.mrb[13].mxu0 }
 0x100   : > { %1579 = vpow2.f32 %v1351_v37  ;;  %v1428_v50 = vpop.f32.mrb[14].mxu1  ;;  %v1564_v51 = vpop.eup %1563  ;;  %v1044_v53 = vadd.f32 1.0, %v1562_v45  ;;  %v825_v55 = vadd.f32 %v824_v48, %v532_v44 }
 0x101   : > { %1581 = vpow2.f32 %v1354_v40  ;;  %v1462_v56 = vpop.f32.mrb[14].mxu0  ;;  %v535_v57 = vpop.f32.mrb[15].mxu1  ;;  %v1042_v59 = vadd.f32 1.0, %v1564_v51  ;;  %v1865_v60 = vadd.f32 %v1813_v38, %v833_v47 }
 0x102   : > { %v1566_v58 = vpop.eup %1565  ;;  %1583 = vpow2.f32 %v1352_v42  ;;  %v836_v61 = vadd.f32 %v1462_v56, %v1428_v50  ;;  %v827_v62 = vpop.f32.mrb[15].mxu0  ;;  %v1868_v1 = vadd.f32 %v1813_v38, %v825_v55 }
 0x103   : > { %v1568_v63 = vpop.eup %1567  ;;  %1585 = vrcp.f32 %v1044_v53  ;;  %v1045_v0 = vadd.f32 1.0, %v1566_v58  ;;  %v828_v3 = vadd.f32 %v827_v62, %v535_v57  ;;  %v1357_v6 = vmul.f32 -1.442695, %v1865_v60 }
 0x104   : > { %1587 = vrcp.f32 %v1042_v59  ;;  %v1043_v4 = vadd.f32 1.0, %v1568_v63  ;;  %v1872_v7 = vadd.f32 %v1813_v38, %v836_v61  ;;  %v1570_v9 = vpop.eup %1569  ;;  %v1355_v11 = vmul.f32 -1.442695, %v1868_v1 }
 0x105   : > { %1589 = vrcp.f32 %v1045_v0  ;;  %v1881_v12 = vadd.f32 %v1813_v38, %v828_v3  ;;  %v1572_v13 = vpop.eup %1571  ;;  %v1136_v14 = vmul.f32 %v1570_v9, %v1816_v46  ;;  %v1431_v16 = vpop.f32.mrb[16].mxu1 }
 0x106   : > { %1591 = vrcp.f32 %v1043_v4  ;;  %v1358_v15 = vmul.f32 -1.442695, %v1872_v7  ;;  %v1134_v18 = vmul.f32 %v1572_v13, %v1819_v49  ;;  %v1465_v20 = vpop.f32.mrb[16].mxu0  ;;  %v548_v21 = vpop.f32.mrb[17].mxu1 }
 0x107   : > { %v1574_v17 = vpop.eup %1573  ;;  %1593 = vpow2.f32 %v1357_v6  ;;  %v1356_v19 = vmul.f32 -1.442695, %v1881_v12  ;;  %1169 = vst.msk [vmem:[%s1877_s12 + $0x10] sm:$0xff] %vm1166_vm2, %v1136_v14  ;;  %v849_v46 = vadd.f32 %v1465_v20, %v1431_v16  ;;  %v840_v24 = vpop.f32.mrb[17].mxu0 }
 0x108   : > { %v1576_v22 = vpop.eup %1575  ;;  %v1137_v23 = vmul.f32 %v1574_v17, %v1823_v52  ;;  %1595 = vpow2.f32 %v1355_v11  ;;  %v1432_v25 = vpop.f32.mrb[18].mxu1  ;;  %1167 = vst.msk [vmem:[%s1877_s12] sm:$0xff] %vm1166_vm2, %v1134_v18  ;;  %v841_v28 = vadd.f32 %v840_v24, %v548_v21 }
 0x109   : > { %v1578_v26 = vpop.eup %1577  ;;  %v1135_v49 = vmul.f32 %v1576_v22, %v1827_v54  ;;  %1597 = vpow2.f32 %v1358_v15  ;;  %v1466_v29 = vpop.f32.mrb[18].mxu0  ;;  %v1896_v52 = vadd.f32 %v1813_v38, %v849_v46 }
 0x10a   : > { %v551_v30 = vpop.f32.mrb[19].mxu1  ;;  %v1580_v31 = vpop.eup %1579  ;;  %1170 = vst.msk [vmem:[%s1877_s12 + $0x18] sm:$0xff] %vm1166_vm2, %v1137_v23  ;;  %v1048_v33 = vadd.f32 1.0, %v1578_v26  ;;  %1599 = vpow2.f32 %v1356_v19  ;;  %v852_v34 = vadd.f32 %v1466_v29, %v1432_v25  ;;  %v1901_v54 = vadd.f32 %v1813_v38, %v841_v28 }
 0x10b   : > { %v843_v35 = vpop.f32.mrb[19].mxu0  ;;  %v1582_v37 = vpop.eup %1581  ;;  %1168 = vst.msk [vmem:[%s1877_s12 + $0x8] sm:$0xff] %vm1166_vm2, %v1135_v49  ;;  %v1046_v40 = vadd.f32 1.0, %v1580_v31  ;;  %v1361_v44 = vmul.f32 -1.442695, %v1896_v52 }
 0x10c   : > { %v844_v41 = vadd.f32 %v843_v35, %v551_v30  ;;  %v1584_v42 = vpop.eup %1583  ;;  %1601 = vrcp.f32 %v1048_v33  ;;  %v1049_v43 = vadd.f32 1.0, %v1582_v37  ;;  %v1905_v45 = vadd.f32 %v1813_v38, %v852_v34 }
 0x10d   : > { %v1586_v47 = vpop.eup %1585  ;;  %1603 = vrcp.f32 %v1046_v40  ;;  %v1047_v48 = vadd.f32 1.0, %v1584_v42  ;;  %v1359_v50 = vmul.f32 -1.442695, %v1901_v54  ;;  %v1435_v57 = vpop.f32.mrb[20].mxu1 }
 0x10e   : > { %v1909_v51 = vadd.f32 %v1813_v38, %v844_v41  ;;  %v1588_v53 = vpop.eup %1587  ;;  %v1140_v55 = vmul.f32 %v1586_v47, %v1832_v2  ;;  %1605 = vrcp.f32 %v1049_v43  ;;  %v1362_v56 = vmul.f32 -1.442695, %v1905_v45  ;;  %v1469_v62 = vpop.f32.mrb[20].mxu0 }
 0x10f   : > { %v1590_v58 = vpop.eup %1589  ;;  %v1138_v59 = vmul.f32 %v1588_v53, %v1835_v5  ;;  %1607 = vrcp.f32 %v1047_v48  ;;  %v564_v63 = vpop.f32.mrb[21].mxu1  ;;  %v865_v2 = vadd.f32 %v1469_v62, %v1435_v57 }
 0x110   : > { %v1360_v61 = vmul.f32 -1.442695, %v1909_v51  ;;  %v1592_v0 = vpop.eup %1591  ;;  %1173 = vst.msk [vmem:[%s1877_s12 + $0x30] sm:$0xff] %vm1166_vm2, %v1140_v55  ;;  %v1141_v3 = vmul.f32 %v1590_v58, %v1839_v8  ;;  %1609 = vpow2.f32 %v1361_v44  ;;  %v856_v4 = vpop.f32.mrb[21].mxu0 }
 0x111   : > { %v1436_v6 = vpop.f32.mrb[22].mxu1  ;;  %v1594_v9 = vpop.eup %1593  ;;  %1171 = vst.msk [vmem:[%s1877_s12 + $0x20] sm:$0xff] %vm1166_vm2, %v1138_v59  ;;  %v1139_v5 = vmul.f32 %v1592_v0, %v1843_v10  ;;  %1611 = vpow2.f32 %v1359_v50  ;;  %v857_v11 = vadd.f32 %v856_v4, %v564_v63  ;;  %v1924_v8 = vadd.f32 %v1813_v38, %v865_v2 }
 0x112   : > { %v1470_v13 = vpop.f32.mrb[22].mxu0  ;;  %v567_v14 = vpop.f32.mrb[23].mxu1  ;;  %1174 = vst.msk [vmem:[%s1877_s12 + $0x38] sm:$0xff] %vm1166_vm2, %v1141_v3  ;;  %v1052_v16 = vadd.f32 1.0, %v1594_v9  ;;  %1613 = vpow2.f32 %v1362_v56 }
 0x113   : > { %v1596_v15 = vpop.eup %1595  ;;  %v868_v17 = vadd.f32 %v1470_v13, %v1436_v6  ;;  %v859_v18 = vpop.f32.mrb[23].mxu0  ;;  %1172 = vst.msk [vmem:[%s1877_s12 + $0x28] sm:$0xff] %vm1166_vm2, %v1139_v5  ;;  %1615 = vpow2.f32 %v1360_v61  ;;  %v1929_v10 = vadd.f32 %v1813_v38, %v857_v11  ;;  %v1365_v46 = vmul.f32 -1.442695, %v1924_v8 }
 0x114   : > { %v1598_v19 = vpop.eup %1597  ;;  %v1050_v20 = vadd.f32 1.0, %v1596_v15  ;;  %v860_v21 = vadd.f32 %v859_v18, %v567_v14  ;;  %1617 = vrcp.f32 %v1052_v16 }
 0x115   : > { %v1600_v22 = vpop.eup %1599  ;;  %v1053_v23 = vadd.f32 1.0, %v1598_v19  ;;  %v1933_v24 = vadd.f32 %v1813_v38, %v868_v17  ;;  %v1363_v26 = vmul.f32 -1.442695, %v1929_v10  ;;  %v1439_v30 = vpop.f32.mrb[24].mxu1 }
 0x116   : > { %1619 = vrcp.f32 %v1050_v20  ;;  %v1051_v25 = vadd.f32 1.0, %v1600_v22  ;;  %v1937_v49 = vadd.f32 %v1813_v38, %v860_v21  ;;  %v1602_v28 = vpop.eup %1601  ;;  %v1473_v35 = vpop.f32.mrb[24].mxu0 }
 0x117   : > { %1621 = vrcp.f32 %v1053_v23  ;;  %v1366_v29 = vmul.f32 -1.442695, %v1933_v24  ;;  %v1604_v31 = vpop.eup %1603  ;;  %v1144_v33 = vmul.f32 %v1602_v28, %v1848_v27  ;;  %v580_v37 = vpop.f32.mrb[25].mxu1  ;;  %v881_v42 = vadd.f32 %v1473_v35, %v1439_v30 }
 0x118   : > { %1623 = vrcp.f32 %v1051_v25  ;;  %v1364_v34 = vmul.f32 -1.442695, %v1937_v49  ;;  %v1606_v40 = vpop.eup %1605  ;;  %v1142_v41 = vmul.f32 %v1604_v31, %v1851_v32  ;;  %v872_v43 = vpop.f32.mrb[25].mxu0 }
 0x119   : > { %1625 = vpow2.f32 %v1365_v46  ;;  %v1440_v44 = vpop.f32.mrb[26].mxu1  ;;  %v1608_v47 = vpop.eup %1607  ;;  %1177 = vst.msk [vmem:[%s1877_s12 + $0x50] sm:$0xff] %vm1166_vm2, %v1144_v33  ;;  %v1145_v48 = vmul.f32 %v1606_v40, %v1855_v36  ;;  %v873_v27 = vadd.f32 %v872_v43, %v580_v37  ;;  %v1950_v56 = vadd.f32 %v1813_v38, %v881_v42 }
 0x11a   : > { %1627 = vpow2.f32 %v1363_v26  ;;  %v1474_v50 = vpop.f32.mrb[26].mxu0  ;;  %v583_v53 = vpop.f32.mrb[27].mxu1  ;;  %1175 = vst.msk [vmem:[%s1877_s12 + $0x40] sm:$0xff] %vm1166_vm2, %v1142_v41  ;;  %v1143_v32 = vmul.f32 %v1608_v47, %v1859_v39 }
 0x11b   : > { %v1610_v55 = vpop.eup %1609  ;;  %1629 = vpow2.f32 %v1366_v29  ;;  %v884_v57 = vadd.f32 %v1474_v50, %v1440_v44  ;;  %v875_v58 = vpop.f32.mrb[27].mxu0  ;;  %1178 = vst.msk [vmem:[%s1877_s12 + $0x58] sm:$0xff] %vm1166_vm2, %v1145_v48  ;;  %v1955_v61 = vadd.f32 %v1813_v38, %v873_v27  ;;  %v1369_v4 = vmul.f32 -1.442695, %v1950_v56 }
 0x11c   : > { %v1612_v59 = vpop.eup %1611  ;;  %v1056_v36 = vadd.f32 1.0, %v1610_v55  ;;  %1631 = vpow2.f32 %v1364_v34  ;;  %v876_v62 = vadd.f32 %v875_v58, %v583_v53  ;;  %1176 = vst.msk [vmem:[%s1877_s12 + $0x48] sm:$0xff] %vm1166_vm2, %v1143_v32 }
 0x11d   : > { %v1614_v63 = vpop.eup %1613  ;;  %v1054_v0 = vadd.f32 1.0, %v1612_v59  ;;  %v1960_v39 = vadd.f32 %v1813_v38, %v884_v57  ;;  %v1367_v11 = vmul.f32 -1.442695, %v1955_v61  ;;  %v1443_v13 = vpop.f32.mrb[28].mxu1 }
 0x11e   : > { %v1616_v3 = vpop.eup %1615  ;;  %1633 = vrcp.f32 %v1056_v36  ;;  %v1057_v2 = vadd.f32 1.0, %v1614_v63  ;;  %v1964_v6 = vadd.f32 %v1813_v38, %v876_v62  ;;  %v1477_v17 = vpop.f32.mrb[28].mxu0 }
 0x11f   : > { %v1618_v9 = vpop.eup %1617  ;;  %1635 = vrcp.f32 %v1054_v0  ;;  %v1055_v5 = vadd.f32 1.0, %v1616_v3  ;;  %v1370_v16 = vmul.f32 -1.442695, %v1960_v39  ;;  %v596_v18 = vpop.f32.mrb[29].mxu1  ;;  %v897_v22 = vadd.f32 %v1477_v17, %v1443_v13 }
 0x120   : > { %v1620_v14 = vpop.eup %1619  ;;  %v1148_v15 = vmul.f32 %v1618_v9, %v1865_v60  ;;  %1637 = vrcp.f32 %v1057_v2  ;;  %v1368_v21 = vmul.f32 -1.442695, %v1964_v6  ;;  %v888_v23 = vpop.f32.mrb[29].mxu0 }
 0x121   : > { %v1622_v19 = vpop.eup %1621  ;;  %v1146_v20 = vmul.f32 %v1620_v14, %v1868_v1  ;;  %1639 = vrcp.f32 %v1055_v5  ;;  %v1444_v46 = vpop.f32.mrb[30].mxu1  ;;  %v889_v26 = vadd.f32 %v888_v23, %v596_v18  ;;  %v1978_v31 = vadd.f32 %v1813_v38, %v897_v22 }
 0x122   : > { %v1624_v25 = vpop.eup %1623  ;;  %1181 = vst.msk [vmem:[%s1877_s12 + $0x70] sm:$0xff] %vm1166_vm2, %v1148_v15  ;;  %v1149_v60 = vmul.f32 %v1622_v19, %v1872_v7  ;;  %1641 = vpow2.f32 %v1369_v4  ;;  %v1478_v28 = vpop.f32.mrb[30].mxu0 }
 0x123   : > { %v599_v29 = vpop.f32.mrb[31].mxu1  ;;  %v1626_v30 = vpop.eup %1625  ;;  %1179 = vst.msk [vmem:[%s1877_s12 + $0x60] sm:$0xff] %vm1166_vm2, %v1146_v20  ;;  %v1147_v1 = vmul.f32 %v1624_v25, %v1881_v12  ;;  %1643 = vpow2.f32 %v1367_v11  ;;  %v900_v33 = vadd.f32 %v1478_v28, %v1444_v46  ;;  %v1983_v37 = vadd.f32 %v1813_v38, %v889_v26 }
 0x124   : > { %v891_v34 = vpop.f32.mrb[31].mxu0  ;;  %v1628_v35 = vpop.eup %1627  ;;  %1182 = vst.msk [vmem:[%s1877_s12 + $0x78] sm:$0xff] %vm1166_vm2, %v1149_v60  ;;  %v1060_v7 = vadd.f32 1.0, %v1626_v30  ;;  %1645 = vpow2.f32 %v1370_v16  ;;  %v1373_v47 = vmul.f32 -1.442695, %v1978_v31 }
 0x125   : > { %v892_v40 = vadd.f32 %v891_v34, %v599_v29  ;;  %v1630_v41 = vpop.eup %1629  ;;  %1180 = vst.msk [vmem:[%s1877_s12 + $0x68] sm:$0xff] %vm1166_vm2, %v1147_v1  ;;  %v1058_v42 = vadd.f32 1.0, %v1628_v35  ;;  %1647 = vpow2.f32 %v1368_v21  ;;  %v1988_v12 = vadd.f32 %v1813_v38, %v900_v33 }
 0x126   : > { %v1632_v43 = vpop.eup %1631  ;;  %1649 = vrcp.f32 %v1060_v7  ;;  %v1061_v44 = vadd.f32 1.0, %v1630_v41  ;;  %v1371_v50 = vmul.f32 -1.442695, %v1983_v37 }
 0x127   : > { %v1992_v48 = vadd.f32 %v1813_v38, %v892_v40  ;;  %1651 = vrcp.f32 %v1058_v42  ;;  %v1059_v27 = vadd.f32 1.0, %v1632_v43  ;;  %v1374_v55 = vmul.f32 -1.442695, %v1988_v12 }
 0x128   : > { %v1634_v53 = vpop.eup %1633  ;;  %1653 = vrcp.f32 %v1061_v44 }
 0x129   : > { %v1636_v32 = vpop.eup %1635  ;;  %v1152_v57 = vmul.f32 %v1634_v53, %v1896_v52  ;;  %1655 = vrcp.f32 %v1059_v27  ;;  %v1372_v58 = vmul.f32 -1.442695, %v1992_v48 }
 0x12a   : > { %v1638_v59 = vpop.eup %1637  ;;  %v1150_v38 = vmul.f32 %v1636_v32, %v1901_v54  ;;  %1657 = vpow2.f32 %v1373_v47 }
 0x12b   : > { %v1640_v36 = vpop.eup %1639  ;;  %1185 = vst.msk [vmem:[%s1877_s12 + $0x90] sm:$0xff] %vm1166_vm2, %v1152_v57  ;;  %v1153_v62 = vmul.f32 %v1638_v59, %v1905_v45  ;;  %1659 = vpow2.f32 %v1371_v50 }
 0x12c   : > { %v1642_v63 = vpop.eup %1641  ;;  %1183 = vst.msk [vmem:[%s1877_s12 + $0x80] sm:$0xff] %vm1166_vm2, %v1150_v38  ;;  %v1151_v0 = vmul.f32 %v1640_v36, %v1909_v51  ;;  %1661 = vpow2.f32 %v1374_v55 }
 0x12d   : > { %v1644_v52 = vpop.eup %1643  ;;  %1186 = vst.msk [vmem:[%s1877_s12 + $0x98] sm:$0xff] %vm1166_vm2, %v1153_v62  ;;  %v1064_v3 = vadd.f32 1.0, %v1642_v63  ;;  %1663 = vpow2.f32 %v1372_v58 }
 0x12e   : > { %v1646_v2 = vpop.eup %1645  ;;  %1184 = vst.msk [vmem:[%s1877_s12 + $0x88] sm:$0xff] %vm1166_vm2, %v1151_v0  ;;  %v1062_v54 = vadd.f32 1.0, %v1644_v52 }
 0x12f   : > { %v1648_v4 = vpop.eup %1647  ;;  %1665 = vrcp.f32 %v1064_v3  ;;  %v1065_v45 = vadd.f32 1.0, %v1646_v2 }
 0x130   : > { %v1650_v9 = vpop.eup %1649  ;;  %1667 = vrcp.f32 %v1062_v54  ;;  %v1063_v5 = vadd.f32 1.0, %v1648_v4 }
 0x131   : > { %v1652_v51 = vpop.eup %1651  ;;  %v1156_v11 = vmul.f32 %v1650_v9, %v1924_v8  ;;  %1669 = vrcp.f32 %v1065_v45 }
 0x132   : > { %v1654_v13 = vpop.eup %1653  ;;  %v1154_v14 = vmul.f32 %v1652_v51, %v1929_v10  ;;  %1671 = vrcp.f32 %v1063_v5 }
 0x133   : > { %v1656_v15 = vpop.eup %1655  ;;  %1189 = vst.msk [vmem:[%s1877_s12 + $0xb0] sm:$0xff] %vm1166_vm2, %v1156_v11  ;;  %v1157_v16 = vmul.f32 %v1654_v13, %v1933_v24 }
 0x134   : > { %v1658_v17 = vpop.eup %1657  ;;  %1187 = vst.msk [vmem:[%s1877_s12 + $0xa0] sm:$0xff] %vm1166_vm2, %v1154_v14  ;;  %v1155_v18 = vmul.f32 %v1656_v15, %v1937_v49 }
 0x135   : > { %v1660_v19 = vpop.eup %1659  ;;  %1190 = vst.msk [vmem:[%s1877_s12 + $0xb8] sm:$0xff] %vm1166_vm2, %v1157_v16  ;;  %v1068_v20 = vadd.f32 1.0, %v1658_v17 }
 0x136   : > { %v1662_v8 = vpop.eup %1661  ;;  %1188 = vst.msk [vmem:[%s1877_s12 + $0xa8] sm:$0xff] %vm1166_vm2, %v1155_v18  ;;  %v1066_v10 = vadd.f32 1.0, %v1660_v19 }
 0x137   : > { %v1664_v21 = vpop.eup %1663  ;;  %1673 = vrcp.f32 %v1068_v20  ;;  %v1069_v22 = vadd.f32 1.0, %v1662_v8 }
 0x138   : > { %1675 = vrcp.f32 %v1066_v10  ;;  %v1067_v24 = vadd.f32 1.0, %v1664_v21 }
 0x139   : > { %v1666_v23 = vpop.eup %1665  ;;  %1677 = vrcp.f32 %v1069_v22 }
 0x13a   : > { %v1668_v49 = vpop.eup %1667  ;;  %v1160_v46 = vmul.f32 %v1666_v23, %v1950_v56  ;;  %1679 = vrcp.f32 %v1067_v24 }
 0x13b   : > { %v1670_v25 = vpop.eup %1669  ;;  %v1158_v60 = vmul.f32 %v1668_v49, %v1955_v61 }
 0x13c   : > { %v1672_v26 = vpop.eup %1671  ;;  %1193 = vst.msk [vmem:[%s1877_s12 + $0xd0] sm:$0xff] %vm1166_vm2, %v1160_v46  ;;  %v1161_v28 = vmul.f32 %v1670_v25, %v1960_v39 }
 0x13d   : > { %1191 = vst.msk [vmem:[%s1877_s12 + $0xc0] sm:$0xff] %vm1166_vm2, %v1158_v60  ;;  %v1159_v29 = vmul.f32 %v1672_v26, %v1964_v6 }
 0x13e   : > { %1194 = vst.msk [vmem:[%s1877_s12 + $0xd8] sm:$0xff] %vm1166_vm2, %v1161_v28 }
 0x13f   : > { %1192 = vst.msk [vmem:[%s1877_s12 + $0xc8] sm:$0xff] %vm1166_vm2, %v1159_v29 }
 0x141   : > { %v1674_v56 = vpop.eup %1673 }
 0x142   : > { %v1676_v30 = vpop.eup %1675  ;;  %v1164_v61 = vmul.f32 %v1674_v56, %v1978_v31 }
 0x143   : > { %v1678_v1 = vpop.eup %1677  ;;  %v1162_v33 = vmul.f32 %v1676_v30, %v1983_v37 }
 0x144   : > { %v1680_v34 = vpop.eup %1679  ;;  %1197 = vst.msk [vmem:[%s1877_s12 + $0xf0] sm:$0xff] %vm1166_vm2, %v1164_v61  ;;  %v1165_v39 = vmul.f32 %v1678_v1, %v1988_v12 }
 0x145   : > { %1195 = vst.msk [vmem:[%s1877_s12 + $0xe0] sm:$0xff] %vm1166_vm2, %v1162_v33  ;;  %v1163_v6 = vmul.f32 %v1680_v34, %v1992_v48 }
 0x146   : > { %1198 = vst.msk [vmem:[%s1877_s12 + $0xf8] sm:$0xff] %vm1166_vm2, %v1165_v39 }
 0x147   : > { %1196 = vst.msk [vmem:[%s1877_s12 + $0xe8] sm:$0xff] %vm1166_vm2, %v1163_v6 }
 0x148 PF: > { %s15_s18 = sadd.s32 1, %s1687_s18  }
 0x149   : > { %p12_p4 = scmp.ge.s32.totalorder %s15_s18, 4  }
 0x14b   :  { %14 = sbr.rel (!%p12_p4) target bundleno = 1 (0x1), region = 73 }

// kernel: cspstage_forward.5
= control target key start
LH: loop header
LB: loop body
LE: loop exit
PB: predicated region body
PF: predicated region fallthrough
CT: control target
= control target key end

     0   :  { %s5569_s12 = smov 0   ;;  %s6724_s0 = inlined_call_operand.vmem [shape: bf16[2,342,4], index: 0, kind: input, shape index: {}]   ;;  %s6725_s1 = inlined_call_operand.vmem [shape: bf16[9,4,4], index: 1, kind: input, shape index: {}]   ;;  %s6726_s2 = inlined_call_operand.vmem [shape: f32[1,4], index: 2, kind: input, shape index: {}]   ;;  %s6727_s3 = inlined_call_operand.vmem [shape: bf16[2,288,4], index: 3, kind: output, shape index: {}]  }
   0x1 LB: > { %s4151_s13 = sadd.s32 4294967295, %s5547_s12   ;;  %p4155_p0 = scmp.ge.s32.totalorder %s5547_s12, 1  ;;  %s5547_s12 = sphi %s5569_s12, %s13_s12  }
   0x2   : > { %p137_p1 = scmp.lt.s32.totalorder %s5547_s12, 3 }
   0x4   : > { %p138_p2 = pnand %p4155_p0, %p137_p1 }
   0x5   : > { %vm509_vm0 = vcmask (!%p138_p2), 1041408   ;;  %v4272_v0 = vld [vmem:[%s6725_s1 + $0x8] sm:$0x3] (!%p138_p2)  ;;  %v4158_v1 = vld [vmem:[%s6725_s1 + $0x2] sm:$0x3] (!%p138_p2)  ;;  %p161_p3 = scmp.lt.s32.totalorder (!%p138_p2), %s4151_s13, 1 }
   0x6   : > { %141 = sbr.rel (%p138_p2) target bundleno = 605 (0x25d), region = 32  ;;  %5308 = vmatprep.subr.msk.bf16.mxu0 (!%p138_p2), %vm509_vm0, %v4272_v0  ;;  %5304 = vmatprep.subr.msk.bf16.mxu1 (!%p138_p2), %vm509_vm0, %v4158_v1  ;;  %v5586_v2 = vsel (!%p138_p2), %vm509_vm0, %v4272_v0, 0  ;;  %v511_v3 = vsel (!%p138_p2), %vm509_vm0, %v4158_v1, 0  ;;  %v4292_v4 = vld [vmem:[%s6725_s1 + $0xa] sm:$0x3] (!%p138_p2)  ;;  %vm454_vm2 = vcmask (!%p138_p2), 31744  }
   0x7   : > { %4825 = vmatpush3.bf16.msra.mxu0 (!%p138_p2), %v5586_v2  ;;  %4673 = vmatpush3.bf16.msra.mxu1 (!%p138_p2), %v511_v3  ;;  %v208_v5 = vld [vmem:[%s6725_s1] sm:$0x3] (!%p138_p2)  ;;  %vm305_vm1 = vsmask.f32 (!%p138_p2), 7424  ;;  %v5607_v6 = vsel (!%p138_p2), %vm509_vm0, %v4292_v4, 0  ;;  %vm2112_vm4 = vcmask (!%p138_p2), 1045504  }
   0x8   : > { %5310 = vmatprep.subr.msk.bf16.mxu0 (!%p138_p2), %vm509_vm0, %v4292_v4  ;;  %5305 = vmatprep.subr.msk.bf16.mxu1 (!%p138_p2), %vm509_vm0, %v208_v5  ;;  %vm1665_vm3 = vsmask.f32 (!%p138_p2), 6400  ;;  %v727_v12 = vsel (!%p138_p2), %vm509_vm0, %v208_v5, 0  ;;  %v5655_v39 = vld [vmem:[%s6725_s1 + $0x4] sm:$0x3] (!%p138_p2)  ;;  %vm912_vm5 = vcmask (!%p138_p2), 1046528  }
   0x9   : > { %v5689_v1 = vld [vmem:[%s6725_s1 + $0xc] sm:$0x3] (!%p138_p2)  ;;  %vm2865_vm6 = vsmask.f32 (!%p138_p2), 5376  ;;  %vm3312_vm7 = vcmask (!%p138_p2), 1044480   ;;  %vm4059_vm8 = vcmask (!%p138_p2), 27648  }
   0xd   : > { %s6729_s13 = smov (!%p161_p3, %s4151_s13), 1 }
   0xe   : > { %s5314_s22 = smul.u32 172, %s6729_s13 }
   0xf   : > { %s5315_s15 = smul.u32 144, %s6729_s13 }
  0x10   : > { %s5604_s25 = scalar_lea.vmem %s6724_s0, %s5314_s22 }
  0x11   : > { %v172_v7 = vld [vmem:[%s5604_s25] sm:$0xf]  ;;  %v5611_v8 = vld [vmem:[%s5604_s25 + $0x4] sm:$0xf]  ;;  %v5617_v10 = vld [vmem:[%s5604_s25 + $0x8] sm:$0xff]   ;;  %s6487_s17 = scalar_lea.vmem %s6727_s3, %s5315_s15 }
  0x12   : > { %v5614_v9 = vcombine.low %v172_v7, %v5611_v8  ;;  %v1220_v11 = vld [vmem:[%s5604_s25 + $0x8] sm:$0xe]  ;;  %v5622_v13 = vld [vmem:[%s5604_s25 + $0xc] sm:$0xf]  ;;  %v314_v16 = vshll.u32 %v5617_v10, 16  ;;  %v318_v17 = vshrl.u32 %v5617_v10, 16 }
  0x13   : > { %v5629_v18 = vld [vmem:[%s5604_s25 + $0x10] sm:$0xff]   ;;  %v5635_v20 = vcombine.low %v1220_v11, %v5622_v13  ;;  %v5643_v28 = vld [vmem:[%s5604_s25 + $0x18] sm:$0xff]   ;;  %v5649_v34 = vld [vmem:[%s5604_s25 + $0x20] sm:$0xff]  }
  0x14   : > { %v307_v14 = vshrl.u32 %v5614_v9, 16  ;;  %v309_v15 = vshll.u32 %v5614_v9, 16  ;;  %v5632_v19 = vld [vmem:[%s5604_s25 + $0x10] sm:$0xff]   ;;  %v316_v22 = vrot.slane %v314_v16, 1  ;;  %v1675_v23 = vshrl.u32 %v5629_v18, 16  ;;  %v5646_v33 = vld [vmem:[%s5604_s25 + $0x18] sm:$0xff]  }
  0x15   : > { %v1678_v24 = vshll.u32 %v5629_v18, 16  ;;  %v1667_v25 = vshrl.u32 %v5635_v20, 16  ;;  %v1670_v26 = vshll.u32 %v5635_v20, 16  ;;  %v322_v27 = vshll.u32 %v5632_v19, 16  ;;  %v5664_v48 = vld [vmem:[%s5604_s25 + $0x20] sm:$0xff]   ;;  %v5667_v49 = vld [vmem:[%s5604_s25 + $0x28] sm:$0xff]  }
  0x16   : > { %v311_v21 = vrot.slane %v309_v15, 1  ;;  %v320_v30 = vor.u32 %v318_v17, %v316_v22  ;;  %v1677_v31 = vrot.slane %v1675_v23, 1  ;;  %v1684_v38 = vshrl.u32 %v5643_v28, 16  ;;  %v5673_v54 = vld [vmem:[%s5604_s25 + $0x28] sm:$0xff]   ;;  %v5679_v59 = vld [vmem:[%s5604_s25 + $0x30] sm:$0xff]   ;;  %v5703_v23 = vld [vmem:[%s5604_s25 + $0x38] sm:$0xff]  }
  0x17   : > { %v1680_v32 = vrot.slane %v1678_v24, 2  ;;  %v1669_v35 = vrot.slane %v1667_v25, 1  ;;  %v1672_v36 = vrot.slane %v1670_v26, 2  ;;  %v324_v37 = vrot.slane %v322_v27, 1  ;;  %v5684_v0 = vld [vmem:[%s5604_s25 + $0x30] sm:$0xff]  }
  0x18   : > { %v312_v29 = vor.u32 %v311_v21, %v307_v14  ;;  %v1687_v42 = vshll.u32 %v5643_v28, 16  ;;  %v326_v43 = vshrl.u32 %v5632_v19, 16  ;;  %v1686_v46 = vrot.slane %v1684_v38, 1 }
  0x19   : > { %v1681_v41 = vor.u32 %v1680_v32, %v1677_v31  ;;  %v1673_v44 = vor.u32 %v1672_v36, %v1669_v35  ;;  %v325_v45 = vsel %vm305_vm1, %v320_v30, %v324_v37  ;;  %v330_v47 = vshll.u32 %v5646_v33, 16  ;;  %v5712_v35 = vld [vmem:[%s5604_s25 + $0x38] sm:$0xff]  }
  0x1a   : > { %v317_v40 = vsel %vm305_vm1, %v312_v29, %v316_v22  ;;  %v1689_v50 = vrot.slane %v1687_v42, 2  ;;  %v328_v51 = vor.u32 %v326_v43, %v324_v37  ;;  %v1693_v52 = vshrl.u32 %v5649_v34, 16 }
  0x1b   : > { %4674 = vmatprep.mubr.msk.bf16.mxu1 %vm454_vm2, %v317_v40  ;;  %v1696_v53 = vshll.u32 %v5649_v34, 16  ;;  %v1682_v55 = vsel %vm1665_vm3, %v1673_v44, %v1681_v41  ;;  %v332_v56 = vrot.slane %v330_v47, 1  ;;  %v334_v57 = vshrl.u32 %v5646_v33, 16  ;;  %v5723_v44 = vld [vmem:[%s5604_s25 + $0x40] sm:$0xff]  }
  0x1c   : > { %4675 = vmatmul.mubr.msk.bf16.vlgmr.msra.gmra.mrb[0].mxu1 %vm454_vm2, %v325_v45  ;;  %v338_v58 = vshll.u32 %v5664_v48, 16  ;;  %4826 = vmatprep.mubr.msk.bf16.mxu0 %vm454_vm2, %v1682_v55  ;;  %v1690_v60 = vor.u32 %v1689_v50, %v1686_v46  ;;  %v1695_v61 = vrot.slane %v1693_v52, 1  ;;  %v1702_v63 = vshrl.u32 %v5667_v49, 16 }
  0x1d   : > { %4711 = vmatpush3.bf16.msra.mxu1 %v727_v12  ;;  %v1698_v62 = vrot.slane %v1696_v53, 2  ;;  %v333_v3 = vsel %vm305_vm1, %v328_v51, %v332_v56  ;;  %v336_v4 = vor.u32 %v334_v57, %v332_v56  ;;  %v1705_v7 = vshll.u32 %v5667_v49, 16  ;;  %v5728_v51 = vld [vmem:[%s5604_s25 + $0x40] sm:$0xff]  }
  0x1e   : > { %5306 = vmatprep.subr.msk.bf16.mxu1 %vm509_vm0, %v5655_v39  ;;  %v340_v5 = vrot.slane %v338_v58, 1  ;;  %v1691_v11 = vsel %vm1665_vm3, %v1681_v41, %v1690_v60  ;;  %4678 = vmatprep.mubr.msk.bf16.mxu1 %vm454_vm2, %v333_v3  ;;  %v1704_v14 = vrot.slane %v1702_v63, 1  ;;  %v342_v15 = vshrl.u32 %v5664_v48, 16  ;;  %v5739_v63 = vld [vmem:[%s5604_s25 + $0x48] sm:$0xff]  }
  0x1f   : > { %v1699_v12 = vor.u32 %v1698_v62, %v1695_v61  ;;  %4827 = vmatmul.mubr.msk.bf16.vlgmr.msra.gmra.mrb[0].mxu0 %vm454_vm2, %v1691_v11  ;;  %v1707_v17 = vrot.slane %v1705_v7, 2  ;;  %v346_v21 = vshll.u32 %v5673_v54, 16  ;;  %v1711_v22 = vshrl.u32 %v5679_v59, 16  ;;  %v5736_v62 = vld [vmem:[%s5604_s25 + $0x48] sm:$0xff]  }
  0x20   : > { %v341_v16 = vsel %vm305_vm1, %v336_v4, %v340_v5  ;;  %4863 = vmatpush3.bf16.msra.mxu0 %v5607_v6  ;;  %v344_v25 = vor.u32 %v342_v15, %v340_v5  ;;  %v1714_v26 = vshll.u32 %v5679_v59, 16  ;;  %v350_v27 = vshrl.u32 %v5673_v54, 16 }
  0x21   : > { %v1700_v24 = vsel %vm1665_vm3, %v1690_v60, %v1699_v12  ;;  %v1708_v29 = vor.u32 %v1707_v17, %v1704_v14  ;;  %v348_v30 = vrot.slane %v346_v21, 1  ;;  %v1713_v31 = vrot.slane %v1711_v22, 1  ;;  %5311 = vmatprep.subr.msk.bf16.mxu0 %vm509_vm0, %v5689_v1  ;;  %v5748_v14 = vld [vmem:[%s5604_s25 + $0x50] sm:$0xff]  }
  0x22   : > { %4830 = vmatprep.mubr.msk.bf16.mxu0 %vm454_vm2, %v1700_v24  ;;  %v354_v32 = vshll.u32 %v5684_v0, 16  ;;  %v1716_v6 = vrot.slane %v1714_v26, 2  ;;  %v1720_v36 = vshrl.u32 %v5703_v23, 16  ;;  %v1723_v37 = vshll.u32 %v5703_v23, 16 }
  0x23   : > { %v358_v38 = vshrl.u32 %v5684_v0, 16  ;;  %v1709_v40 = vsel %vm1665_vm3, %v1699_v12, %v1708_v29  ;;  %v349_v41 = vsel %vm305_vm1, %v344_v25, %v348_v30  ;;  %v352_v42 = vor.u32 %v350_v27, %v348_v30  ;;  %v5756_v25 = vld [vmem:[%s5604_s25 + $0x50] sm:$0xff]  }
  0x24   : > { %4679 = vmatmul.mubr.msk.bf16.gmra.mrb[4].mxu1 %vm454_vm2, %v341_v16  ;;  %v356_v43 = vrot.slane %v354_v32, 1  ;;  %v1717_v45 = vor.u32 %v1716_v6, %v1713_v31  ;;  %v1722_v46 = vrot.slane %v1720_v36, 1  ;;  %v1725_v47 = vrot.slane %v1723_v37, 2 }
  0x25   : > { %4682 = vmatprep.mubr.msk.bf16.mxu1 %vm454_vm2, %v349_v41  ;;  %v362_v50 = vshll.u32 %v5712_v35, 16  ;;  %v1729_v55 = vshrl.u32 %v5723_v44, 16  ;;  %v1732_v56 = vshll.u32 %v5723_v44, 16  ;;  %v366_v61 = vshrl.u32 %v5712_v35, 16  ;;  %v5766_v41 = vld [vmem:[%s5604_s25 + $0x58] sm:$0xff]  }
  0x26   : > { %v357_v52 = vsel %vm305_vm1, %v352_v42, %v356_v43  ;;  %v360_v53 = vor.u32 %v358_v38, %v356_v43  ;;  %v1718_v57 = vsel %vm1665_vm3, %v1708_v29, %v1717_v45  ;;  %v1726_v58 = vor.u32 %v1725_v47, %v1722_v46  ;;  %v5761_v29 = vld [vmem:[%s5604_s25 + $0x58] sm:$0xff]  }
  0x27   : > { %v364_v60 = vrot.slane %v362_v50, 1  ;;  %4831 = vmatmul.mubr.msk.bf16.gmra.mrb[4].mxu0 %vm454_vm2, %v1709_v40  ;;  %v1731_v3 = vrot.slane %v1729_v55, 1  ;;  %v1734_v4 = vrot.slane %v1732_v56, 2  ;;  %v370_v5 = vshll.u32 %v5728_v51, 16 }
  0x28   : > { %v374_v7 = vshrl.u32 %v5728_v51, 16  ;;  %4834 = vmatprep.mubr.msk.bf16.mxu0 %vm454_vm2, %v1718_v57  ;;  %v1738_v12 = vshrl.u32 %v5736_v62, 16  ;;  %v1741_v16 = vshll.u32 %v5736_v62, 16  ;;  %v378_v17 = vshll.u32 %v5739_v63, 16  ;;  %v2106_v57 = vld [vmem:[%s5604_s25 + $0x8] sm:$0xc] }
  0x29   : > { %v365_v11 = vsel %vm305_vm1, %v360_v53, %v364_v60  ;;  %v1735_v15 = vor.u32 %v1734_v4, %v1731_v3  ;;  %v372_v21 = vrot.slane %v370_v5, 1  ;;  %v1747_v22 = vshrl.u32 %v5748_v14, 16 }
  0x2a   : > { %v1750_v24 = vshll.u32 %v5748_v14, 16  ;;  %v1727_v26 = vsel %vm1665_vm3, %v1717_v45, %v1726_v58  ;;  %v368_v27 = vor.u32 %v366_v61, %v364_v60  ;;  %v1740_v30 = vrot.slane %v1738_v12, 1 }
  0x2b   : > { %v1743_v31 = vrot.slane %v1741_v16, 2  ;;  %v376_v32 = vor.u32 %v374_v7, %v372_v21  ;;  %v380_v6 = vrot.slane %v378_v17, 1  ;;  %v1736_v36 = vsel %vm1665_vm3, %v1726_v58, %v1735_v15  ;;  %v5780_v58 = vld [vmem:[%s5604_s25 + $0x60] sm:$0xff]  }
  0x2c   : > { %4683 = vmatmul.mubr.msk.bf16.gmra.mrb[8].mxu1 %vm454_vm2, %v357_v52  ;;  %v1749_v37 = vrot.slane %v1747_v22, 1  ;;  %v1752_v38 = vrot.slane %v1750_v24, 2  ;;  %v386_v40 = vshll.u32 %v5756_v25, 16  ;;  %v373_v42 = vsel %vm305_vm1, %v368_v27, %v372_v21 }
  0x2d   : > { %4686 = vmatprep.mubr.msk.bf16.mxu1 %vm454_vm2, %v365_v11  ;;  %v382_v43 = vshrl.u32 %v5739_v63, 16  ;;  %v1756_v45 = vshrl.u32 %v5761_v29, 16  ;;  %v1759_v46 = vshll.u32 %v5761_v29, 16  ;;  %v1744_v47 = vor.u32 %v1743_v31, %v1740_v30  ;;  %v5785_v11 = vld [vmem:[%s5604_s25 + $0x68] sm:$0xff]  }
  0x2e   : > { %v381_v50 = vsel %vm305_vm1, %v376_v32, %v380_v6  ;;  %v390_v52 = vshrl.u32 %v5756_v25, 16  ;;  %v394_v53 = vshll.u32 %v5766_v41, 16  ;;  %v1753_v55 = vor.u32 %v1752_v38, %v1749_v37  ;;  %v5802_v32 = vld [vmem:[%s5604_s25 + $0x70] sm:$0xff]  }
  0x2f   : > { %4835 = vmatmul.mubr.msk.bf16.gmra.mrb[8].mxu0 %vm454_vm2, %v1727_v26  ;;  %v388_v56 = vrot.slane %v386_v40, 1  ;;  %v384_v60 = vor.u32 %v382_v43, %v380_v6  ;;  %v1758_v61 = vrot.slane %v1756_v45, 1  ;;  %v1761_v3 = vrot.slane %v1759_v46, 2  ;;  %v5808_v40 = vld [vmem:[%s5604_s25 + $0x78] sm:$0xff]  }
  0x30   : > { %4838 = vmatprep.mubr.msk.bf16.mxu0 %vm454_vm2, %v1736_v36  ;;  %v1745_v4 = vsel %vm1665_vm3, %v1735_v15, %v1744_v47  ;;  %v396_v7 = vrot.slane %v394_v53, 1  ;;  %v1754_v12 = vsel %vm1665_vm3, %v1744_v47, %v1753_v55  ;;  %v4293_v16 = vcombine.low %v2106_v57, %v5622_v13 }
  0x31   : > { %v392_v5 = vor.u32 %v390_v52, %v388_v56  ;;  %v402_v17 = vshll.u32 %v5780_v58, 16  ;;  %v389_v21 = vsel %vm305_vm1, %v384_v60, %v388_v56  ;;  %v398_v22 = vshrl.u32 %v5766_v41, 16  ;;  %v5823_v56 = vld [vmem:[%s5604_s25 + $0x80] sm:$0xff]  }
  0x32   : > { %v5794_v15 = vor.u32 %v1761_v3, %v1758_v61  ;;  %v406_v26 = vshrl.u32 %v5780_v58, 16  ;;  %v410_v27 = vshll.u32 %v5785_v11, 16  ;;  %v2113_v13 = vrot.slane %v4293_v16, 2 }
  0x33   : > { %v397_v24 = vsel %vm305_vm1, %v392_v5, %v396_v7  ;;  %v2114_v30 = vrot.slane %v5629_v18, 2  ;;  %v404_v31 = vrot.slane %v402_v17, 1  ;;  %v400_v6 = vor.u32 %v398_v22, %v396_v7 }
  0x34   : > { %4687 = vmatmul.mubr.msk.bf16.gmra.mrb[12].mxu1 %vm454_vm2, %v373_v42  ;;  %v1763_v36 = vsel %vm1665_vm3, %v1753_v55, %v5794_v15  ;;  %v412_v38 = vrot.slane %v410_v27, 1  ;;  %v418_v18 = vshll.u32 %v5802_v32, 16  ;;  %v2116_v45 = vrot.slane %v5643_v28, 2  ;;  %v5853_v27 = vld [vmem:[%s5604_s25 + $0x90] ss:$0 sps:$4 sm:$0x11]  }
  0x35   : > { %4690 = vmatprep.mubr.msk.bf16.mxu1 %vm454_vm2, %v381_v50  ;;  %v408_v37 = vor.u32 %v406_v26, %v404_v31  ;;  %v2115_v42 = vsel %vm2112_vm4, %v2113_v13, %v2114_v30  ;;  %v405_v43 = vsel %vm305_vm1, %v400_v6, %v404_v31  ;;  %v414_v46 = vshrl.u32 %v5785_v11, 16 }
  0x36   : > { %v422_v50 = vshrl.u32 %v5802_v32, 16  ;;  %v426_v52 = vshll.u32 %v5808_v40, 16  ;;  %v2118_v53 = vrot.slane %v5649_v34, 2  ;;  %v420_v55 = vrot.slane %v418_v18, 1  ;;  %v5836_v34 = vld [vmem:[%s6725_s1 + $0xe] sm:$0x3] }
  0x37   : > { %4839 = vmatmul.mubr.msk.bf16.gmra.mrb[12].mxu0 %vm454_vm2, %v1745_v4  ;;  %v413_v47 = vsel %vm305_vm1, %v408_v37, %v412_v38  ;;  %v2644_v28 = vsel %vm509_vm0, %v5689_v1, 0  ;;  %v416_v57 = vor.u32 %v414_v46, %v412_v38  ;;  %v2117_v60 = vsel %vm2112_vm4, %v2114_v30, %v2116_v45  ;;  %v5830_v4 = vld [vmem:[%s5604_s25 + $0x88] sm:$0xff]  }
  0x38   : > { %4842 = vmatprep.mubr.msk.bf16.mxu0 %vm454_vm2, %v1754_v12  ;;  %v424_v61 = vor.u32 %v422_v50, %v420_v55  ;;  %v428_v3 = vrot.slane %v426_v52, 1  ;;  %v2119_v5 = vsel %vm2112_vm4, %v2116_v45, %v2118_v53  ;;  %v434_v7 = vshll.u32 %v5823_v56, 16 }
  0x39   : > { %v421_v1 = vsel %vm305_vm1, %v416_v57, %v420_v55  ;;  %v2120_v12 = vrot.slane %v5667_v49, 2  ;;  %v430_v16 = vshrl.u32 %v5808_v40, 16  ;;  %v442_v22 = vshll.u32 %v5830_v4, 16  ;;  %v5880_v55 = vld [vmem:[%s5604_s25 + $0x60] sm:$0xff]   ;;  %v5899_v57 = vld [vmem:[%s5604_s25 + $0x68] sm:$0xff]  }
  0x3a   : > { %v429_v17 = vsel %vm305_vm1, %v424_v61, %v428_v3  ;;  %v436_v26 = vrot.slane %v434_v7, 1  ;;  %v450_v37 = vshll.u32 %v5853_v27, 16  ;;  %v2124_v38 = vrot.slane %v5703_v23, 2  ;;  %v5917_v7 = vld [vmem:[%s5604_s25 + $0x78] sm:$0xff]  }
  0x3b   : > { %v432_v49 = vor.u32 %v430_v16, %v428_v3  ;;  %v2121_v13 = vsel %vm2112_vm4, %v2118_v53, %v2120_v12  ;;  %v444_v31 = vrot.slane %v442_v22, 1  ;;  %v2126_v18 = vrot.slane %v5723_v44, 2  ;;  %v5933_v22 = vld [vmem:[%s5604_s25 + $0x88] sm:$0xff]  }
  0x3c   : > { %4691 = vmatmul.mubr.msk.bf16.gmra.mrb[16].mxu1 %vm454_vm2, %v389_v21  ;;  %v438_v21 = vshrl.u32 %v5823_v56, 16  ;;  %v452_v45 = vrot.slane %v450_v37, 1  ;;  %v2128_v23 = vrot.slane %v5736_v62, 2  ;;  %v2130_v44 = vrot.slane %v5748_v14, 2 }
  0x3d   : > { %4694 = vmatprep.mubr.msk.bf16.mxu1 %vm454_vm2, %v397_v24  ;;  %v2122_v24 = vrot.slane %v5679_v59, 2  ;;  %v437_v59 = vsel %vm305_vm1, %v432_v49, %v436_v26  ;;  %v2132_v62 = vrot.slane %v5761_v29, 2  ;;  %v1005_v14 = vsel %vm509_vm0, %v5655_v39, 0 }
  0x3e   : > { %v440_v30 = vor.u32 %v438_v21, %v436_v26  ;;  %v2129_v52 = vsel %vm2112_vm4, %v2126_v18, %v2128_v23  ;;  %v2131_v53 = vsel %vm2112_vm4, %v2128_v23, %v2130_v44  ;;  %v2136_v61 = vrot.slane %v5899_v57, 2  ;;  %v5937_v26 = vld [vmem:[%s5604_s25 + $0x90] sm:$0xff]  }
  0x3f   : > { %4843 = vmatmul.mubr.msk.bf16.gmra.mrb[16].mxu0 %vm454_vm2, %v1763_v36  ;;  %v2123_v6 = vsel %vm2112_vm4, %v2120_v12, %v2122_v24  ;;  %v446_v36 = vshrl.u32 %v5830_v4, 16  ;;  %v2125_v46 = vsel %vm2112_vm4, %v2122_v24, %v2124_v38  ;;  %v2133_v29 = vsel %vm2112_vm4, %v2130_v44, %v2132_v62  ;;  %v5921_v12 = vld [vmem:[%s5604_s25 + $0x80] sm:$0xff]  }
  0x40   : > { %4864 = vmatprep.mubr.msk.bf16.mxu0 %vm454_vm2, %v2115_v42  ;;  %v445_v42 = vsel %vm305_vm1, %v440_v30, %v444_v31  ;;  %v2140_v16 = vrot.slane %v5917_v7, 2  ;;  %v2144_v49 = vrot.slane %v5933_v22, 2  ;;  %v2420_v30 = vld [vmem:[%s5604_s25 + $0x10] sm:$0xc] }
  0x44   : > { %4695 = vmatmul.mubr.msk.bf16.gmra.mrb[20].mxu1 %vm454_vm2, %v405_v43  ;;  %v448_v43 = vor.u32 %v446_v36, %v444_v31  ;;  %v5947_v31 = vld [vmem:[%s5604_s25 + $0x14] sm:$0xf] }
  0x45   : > { %4698 = vmatprep.mubr.msk.bf16.mxu1 %vm454_vm2, %v413_v47  ;;  %v2127_v47 = vsel %vm2112_vm4, %v2124_v38, %v2126_v18  ;;  %v5957_v37 = vcombine.low %v2420_v30, %v5947_v31  ;;  %v5960_v38 = vld [vmem:[%s5604_s25 + $0x18] sm:$0xff]  }
  0x46   : > { %v453_v50 = vsel %vm305_vm1, %v448_v43, %v452_v45  ;;  %v2553_v43 = vrot.slane %v5960_v38, 2 }
  0x47   : > { %4865 = vmatmul.mubr.msk.bf16.vlgmr.msra.gmra.mrb[0].mxu0 %vm454_vm2, %v2117_v60  ;;  %v5905_v60 = vld [vmem:[%s5604_s25 + $0x70] sm:$0xff]   ;;  %v2552_v18 = vrot.slane %v5957_v37, 2 }
  0x48   : > { %4901 = vmatpush3.bf16.msra.mxu0 %v2644_v28  ;;  %4868 = vmatprep.mubr.msk.bf16.mxu0 %vm454_vm2, %v2119_v5  ;;  %v2134_v28 = vrot.slane %v5880_v55, 2  ;;  %v2138_v3 = vrot.slane %v5905_v60, 2 }
  0x49   : > { %5312 = vmatprep.subr.msk.bf16.mxu0 %vm509_vm0, %v5836_v34 }
  0x4a   : > { %v2135_v39 = vsel %vm2112_vm4, %v2132_v62, %v2134_v28  ;;  %v2137_v5 = vsel %vm2112_vm4, %v2134_v28, %v2136_v61  ;;  %v2141_v21 = vsel %vm2112_vm4, %v2138_v3, %v2140_v16  ;;  %v3091_v62 = vsel %vm509_vm0, %v5836_v34, 0  ;;  %v5995_v28 = vld [vmem:[%s5604_s25 + $0x38] sm:$0xff]  }
  0x4c   : > { %4699 = vmatmul.mubr.msk.bf16.gmra.mrb[24].mxu1 %vm454_vm2, %v421_v1  ;;  %v2139_v1 = vsel %vm2112_vm4, %v2136_v61, %v2138_v3  ;;  %v2561_v61 = vrot.slane %v5995_v28, 2  ;;  %v6014_v3 = vld [vmem:[%s5604_s25 + $0x40] sm:$0xff]  }
  0x4d   : > { %4702 = vmatprep.mubr.msk.bf16.mxu1 %vm454_vm2, %v429_v17  ;;  %v2142_v17 = vrot.slane %v5921_v12, 2 }
  0x4f   : > { %4869 = vmatmul.mubr.msk.bf16.gmra.mrb[4].mxu0 %vm454_vm2, %v2121_v13  ;;  %v2143_v24 = vsel %vm2112_vm4, %v2140_v16, %v2142_v17  ;;  %v2146_v13 = vrot.slane %v5937_v26, 2  ;;  %v906_v16 = vld [vmem:[%s5604_s25] sm:$0xe] }
  0x50   : > { %4872 = vmatprep.mubr.msk.bf16.mxu0 %vm454_vm2, %v2123_v6  ;;  %v2145_v6 = vsel %vm2112_vm4, %v2142_v17, %v2144_v49  ;;  %v2563_v17 = vrot.slane %v6014_v3, 2 }
  0x51   : > { %v2147_v36 = vsel %vm2112_vm4, %v2144_v49, %v2146_v13 }
  0x52   : > { %v2564_v49 = vsel %vm2112_vm4, %v2561_v61, %v2563_v17 }
  0x54   : > { %4703 = vmatmul.mubr.msk.bf16.gmra.mrb[28].mxu1 %vm454_vm2, %v437_v59  ;;  %v5953_v59 = vld [vmem:[%s5604_s25 + $0x98] ss:$0 sps:$4 sm:$0x33]  }
  0x55   : > { %4706 = vmatprep.mubr.msk.bf16.mxu1 %vm454_vm2, %v445_v42  ;;  %v2148_v42 = vrot.slane %v5953_v59, 2 }
  0x57   : > { %4873 = vmatmul.mubr.msk.bf16.gmra.mrb[8].mxu0 %vm454_vm2, %v2125_v46  ;;  %v2149_v45 = vsel %vm2112_vm4, %v2146_v13, %v2148_v42  ;;  %v5973_v46 = vld [vmem:[%s5604_s25 + $0x20] sm:$0xff]   ;;  %v6032_v13 = vld [vmem:[%s5604_s25 + $0x50] sm:$0xff]  }
  0x58   : > { %4876 = vmatprep.mubr.msk.bf16.mxu0 %vm454_vm2, %v2127_v47  ;;  %v2554_v47 = vsel %vm2112_vm4, %v2552_v18, %v2553_v43  ;;  %v2555_v23 = vrot.slane %v5973_v46, 2  ;;  %v2567_v42 = vrot.slane %v6032_v13, 2 }
  0x5c   : > { %4707 = vmatmul.mubr.msk.bf16.gmra.mrb[32].mxu1 %vm454_vm2, %v453_v50  ;;  %v5977_v50 = vld [vmem:[%s5604_s25 + $0x28] sm:$0xff]  }
  0x5d   : > { %4712 = vmatprep.mubr.msk.bf16.mxu1 %vm454_vm2, %v5614_v9  ;;  %v5891_v9 = vld [vmem:[%s6725_s1 + $0x6] sm:$0x3]  ;;  %v2557_v44 = vrot.slane %v5977_v50, 2 }
  0x5f   : > { %4877 = vmatmul.mubr.msk.bf16.gmra.mrb[12].mxu0 %vm454_vm2, %v2129_v52  ;;  %v2556_v52 = vsel %vm2112_vm4, %v2553_v43, %v2555_v23 }
  0x60   : > { %4880 = vmatprep.mubr.msk.bf16.mxu0 %vm454_vm2, %v2131_v53  ;;  %v5989_v53 = vld [vmem:[%s5604_s25 + $0x30] sm:$0xff]  }
  0x64   : > { %4713 = vmatmul.mubr.msk.bf16.vlgmr.msra.gmra.mrb[0].mxu1 %vm454_vm2, %v5617_v10 }
  0x65   : > { %4716 = vmatprep.mubr.msk.bf16.mxu1 %vm454_vm2, %v5632_v19  ;;  %4749 = vmatpush3.bf16.msra.mxu1 %v1005_v14  ;;  %v2558_v14 = vsel %vm2112_vm4, %v2555_v23, %v2557_v44  ;;  %v918_v23 = vrot.slane %v5646_v33, 1 }
  0x66   : > { %5307 = vmatprep.subr.msk.bf16.mxu1 %vm509_vm0, %v5891_v9 }
  0x67   : > { %4881 = vmatmul.mubr.msk.bf16.gmra.mrb[16].mxu0 %vm454_vm2, %v2133_v29  ;;  %v6000_v29 = vld [vmem:[%s6725_s1 + $0x10] sm:$0x3] }
  0x68   : > { %4884 = vmatprep.mubr.msk.bf16.mxu0 %vm454_vm2, %v2135_v39  ;;  %v2559_v39 = vrot.slane %v5989_v53, 2 }
  0x6a   : > { %v2560_v34 = vsel %vm2112_vm4, %v2557_v44, %v2559_v39 }
  0x6c   : > { %4717 = vmatmul.mubr.msk.bf16.gmra.mrb[4].mxu1 %vm454_vm2, %v5646_v33 }
  0x6d   : > { %4720 = vmatprep.mubr.msk.bf16.mxu1 %vm454_vm2, %v5664_v48 }
  0x6f   : > { %4885 = vmatmul.mubr.msk.bf16.gmra.mrb[20].mxu0 %vm454_vm2, %v2137_v5  ;;  %v2562_v5 = vsel %vm2112_vm4, %v2559_v39, %v2561_v61  ;;  %v1444_v39 = vsel %vm509_vm0, %v5891_v9, 0  ;;  %v920_v61 = vrot.slane %v5664_v48, 1  ;;  %v5530_v9 = vld [vmem:[%s6725_s1 + $0x8] sm:$0x3] }
  0x70   : > { %4888 = vmatprep.mubr.msk.bf16.mxu0 %vm454_vm2, %v2139_v1  ;;  %v6018_v1 = vld [vmem:[%s5604_s25 + $0x48] sm:$0xff]  }
  0x71   : > { %v921_v48 = vsel %vm912_vm5, %v918_v23, %v920_v61 }
  0x74   : > { %4721 = vmatmul.mubr.msk.bf16.gmra.mrb[8].mxu1 %vm454_vm2, %v5673_v54 }
  0x75   : > { %4724 = vmatprep.mubr.msk.bf16.mxu1 %vm454_vm2, %v5684_v0 }
  0x77   : > { %4889 = vmatmul.mubr.msk.bf16.gmra.mrb[24].mxu0 %vm454_vm2, %v2141_v21  ;;  %v4215_v21 = vcombine.low %v906_v16, %v5611_v8  ;;  %v6037_v8 = vld [vmem:[%s5604_s25 + $0x58] sm:$0xff]   ;;  %v922_v16 = vrot.slane %v5673_v54, 1 }
  0x78   : > { %4892 = vmatprep.mubr.msk.bf16.mxu0 %vm454_vm2, %v2143_v24  ;;  %v2565_v24 = vrot.slane %v6018_v1, 2  ;;  %v2569_v43 = vrot.slane %v6037_v8, 2 }
  0x79   : > { %v913_v30 = vrot.slane %v4215_v21, 1  ;;  %v6079_v21 = vld [vmem:[%s5604_s25 + $0x78] sm:$0xff]   ;;  %v923_v54 = vsel %vm912_vm5, %v920_v61, %v922_v16 }
  0x7a   : > { %v2570_v44 = vsel %vm2112_vm4, %v2567_v42, %v2569_v43 }
  0x7c   : > { %4725 = vmatmul.mubr.msk.bf16.gmra.mrb[12].mxu1 %vm454_vm2, %v5712_v35 }
  0x7d   : > { %4728 = vmatprep.mubr.msk.bf16.mxu1 %vm454_vm2, %v5728_v51 }
  0x7f   : > { %4893 = vmatmul.mubr.msk.bf16.gmra.mrb[28].mxu0 %vm454_vm2, %v2145_v6  ;;  %v914_v6 = vrot.slane %v5617_v10, 1  ;;  %v916_v10 = vrot.slane %v5632_v19, 1 }
  0x80   : > { %4896 = vmatprep.mubr.msk.bf16.mxu0 %vm454_vm2, %v2147_v36  ;;  %v2566_v36 = vsel %vm2112_vm4, %v2563_v17, %v2565_v24 }
  0x81   : > { %v915_v18 = vsel %vm912_vm5, %v913_v30, %v914_v6  ;;  %v924_v30 = vrot.slane %v5684_v0, 1 }
  0x84   : > { %4729 = vmatmul.mubr.msk.bf16.gmra.mrb[16].mxu1 %vm454_vm2, %v5739_v63 }
  0x85   : > { %4732 = vmatprep.mubr.msk.bf16.mxu1 %vm454_vm2, %v5756_v25 }
  0x87   : > { %4897 = vmatmul.mubr.msk.bf16.gmra.mrb[32].mxu0 %vm454_vm2, %v2149_v45  ;;  %v2568_v45 = vsel %vm2112_vm4, %v2565_v24, %v2567_v42  ;;  %v926_v42 = vrot.slane %v5712_v35, 1  ;;  %v928_v35 = vrot.slane %v5728_v51, 1 }
  0x88   : > { %4902 = vmatprep.mubr.msk.bf16.mxu0 %vm454_vm2, %v2554_v47  ;;  %v6050_v47 = vld [vmem:[%s5604_s25 + $0x60] sm:$0xff]  }
  0x89   : > { %v2571_v19 = vrot.slane %v6050_v47, 2 }
  0x8c   : > { %4733 = vmatmul.mubr.msk.bf16.gmra.mrb[20].mxu1 %vm454_vm2, %v5766_v41 }
  0x8d   : > { %4736 = vmatprep.mubr.msk.bf16.mxu1 %vm454_vm2, %v5780_v58 }
  0x8f   : > { %4903 = vmatmul.mubr.msk.bf16.vlgmr.msra.gmra.mrb[0].mxu0 %vm454_vm2, %v2556_v52  ;;  %v6055_v52 = vld [vmem:[%s5604_s25 + $0x68] sm:$0xff]  }
  0x90   : > { %4939 = vmatpush3.bf16.msra.mxu0 %v3091_v62  ;;  %4906 = vmatprep.mubr.msk.bf16.mxu0 %vm454_vm2, %v2558_v14  ;;  %v917_v62 = vsel %vm912_vm5, %v914_v6, %v916_v10  ;;  %v919_v14 = vsel %vm912_vm5, %v916_v10, %v918_v23  ;;  %v2573_v33 = vrot.slane %v6055_v52, 2  ;;  %v925_v10 = vsel %vm912_vm5, %v922_v16, %v924_v30 }
  0x91   : > { %5313 = vmatprep.subr.msk.bf16.mxu0 %vm509_vm0, %v6000_v29  ;;  %v2867_v16 = vshrl.u32 %v5957_v37, 16 }
  0x92   : > { %v2574_v17 = vsel %vm2112_vm4, %v2571_v19, %v2573_v33 }
  0x94   : > { %4737 = vmatmul.mubr.msk.bf16.gmra.mrb[24].mxu1 %vm454_vm2, %v5785_v11 }
  0x95   : > { %4740 = vmatprep.mubr.msk.bf16.mxu1 %vm454_vm2, %v5802_v32 }
  0x97   : > { %4907 = vmatmul.mubr.msk.bf16.gmra.mrb[4].mxu0 %vm454_vm2, %v2560_v34  ;;  %v2572_v34 = vsel %vm2112_vm4, %v2569_v43, %v2571_v19  ;;  %v6097_v43 = vld [vmem:[%s5604_s25 + $0x88] sm:$0xff]   ;;  %v930_v19 = vrot.slane %v5739_v63, 1  ;;  %v2870_v63 = vshll.u32 %v5957_v37, 16 }
  0x98   : > { %4910 = vmatprep.mubr.msk.bf16.mxu0 %vm454_vm2, %v2562_v5  ;;  %v6070_v5 = vld [vmem:[%s5604_s25 + $0x70] sm:$0xff]   ;;  %v2581_v23 = vrot.slane %v6097_v43, 2 }
  0x99   : > { %v2575_v24 = vrot.slane %v6070_v5, 2  ;;  %v931_v51 = vsel %vm912_vm5, %v928_v35, %v930_v19 }
  0x9b   : > { %v2576_v6 = vsel %vm2112_vm4, %v2573_v33, %v2575_v24  ;;  %v929_v33 = vsel %vm912_vm5, %v926_v42, %v928_v35 }
  0x9c   : > { %4741 = vmatmul.mubr.msk.bf16.gmra.mrb[28].mxu1 %vm454_vm2, %v5808_v40 }
  0x9d   : > { %4744 = vmatprep.mubr.msk.bf16.mxu1 %vm454_vm2, %v5823_v56 }
  0x9f   : > { %4911 = vmatmul.mubr.msk.bf16.gmra.mrb[8].mxu0 %vm454_vm2, %v2564_v49  ;;  %v2577_v49 = vrot.slane %v6079_v21, 2 }
  0xa0   : > { %4914 = vmatprep.mubr.msk.bf16.mxu0 %vm454_vm2, %v2566_v36  ;;  %v6092_v36 = vld [vmem:[%s5604_s25 + $0x80] sm:$0xff]  }
  0xa1   : > { %v2579_v0 = vrot.slane %v6092_v36, 2 }
  0xa4   : > { %4745 = vmatmul.mubr.msk.bf16.gmra.mrb[32].mxu1 %vm454_vm2, %v5830_v4 }
  0xa5   : > { %4750 = vmatprep.mubr.msk.bf16.mxu1 %vm454_vm2, %v915_v18  ;;  %v2578_v18 = vsel %vm2112_vm4, %v2575_v24, %v2577_v49 }
  0xa7   : > { %4915 = vmatmul.mubr.msk.bf16.gmra.mrb[12].mxu0 %vm454_vm2, %v2568_v45  ;;  %v927_v45 = vsel %vm912_vm5, %v924_v30, %v926_v42  ;;  %v934_v30 = vrot.slane %v5766_v41, 1  ;;  %v2872_v42 = vrot.slane %v2870_v63, 3  ;;  %v2893_v41 = vshrl.u32 %v5977_v50, 16 }
  0xa8   : > { %4918 = vmatprep.mubr.msk.bf16.mxu0 %vm454_vm2, %v2570_v44  ;;  %v2580_v44 = vsel %vm2112_vm4, %v2577_v49, %v2579_v0  ;;  %v5382_v49 = vld [vmem:[%s5604_s25 + $0xa0] ss:$0 sps:$4 sm:$0x33]  }
  0xac   : > { %4751 = vmatmul.mubr.msk.bf16.vlgmr.msra.gmra.mrb[0].mxu1 %vm454_vm2, %v917_v62  ;;  %v6110_v62 = vld [vmem:[%s5604_s25 + $0x90] sm:$0xff]  }
  0xad   : > { %4754 = vmatprep.mubr.msk.bf16.mxu1 %vm454_vm2, %v919_v14  ;;  %4787 = vmatpush3.bf16.msra.mxu1 %v1444_v39  ;;  %v6114_v14 = vld [vmem:[%s5604_s25 + $0x98] sm:$0xff]   ;;  %v2582_v39 = vsel %vm2112_vm4, %v2579_v0, %v2581_v23  ;;  %v2583_v61 = vrot.slane %v6110_v62, 2  ;;  %v2587_v0 = vrot.slane %v5382_v49, 2 }
  0xae   : > { %5309 = vmatprep.subr.msk.bf16.mxu1 %vm509_vm0, %v5530_v9  ;;  %v2875_v9 = vshrl.u32 %v5960_v38, 16 }
  0xaf   : > { %4919 = vmatmul.mubr.msk.bf16.gmra.mrb[16].mxu0 %vm454_vm2, %v2572_v34  ;;  %v2585_v34 = vrot.slane %v6114_v14, 2  ;;  %v2584_v24 = vsel %vm2112_vm4, %v2581_v23, %v2583_v61  ;;  %v2887_v23 = vshll.u32 %v5973_v46, 16 }
  0xb0   : > { %4922 = vmatprep.mubr.msk.bf16.mxu0 %vm454_vm2, %v2574_v17  ;;  %v2878_v17 = vshll.u32 %v5960_v38, 16  ;;  %v2877_v37 = vrot.slane %v2875_v9, 2  ;;  %v2895_v9 = vrot.slane %v2893_v41, 2  ;;  %v2920_v41 = vshrl.u32 %v6014_v3, 16 }
  0xb4   : > { %4755 = vmatmul.mubr.msk.bf16.gmra.mrb[4].mxu1 %vm454_vm2, %v921_v48  ;;  %v932_v48 = vrot.slane %v5756_v25, 1 }
  0xb5   : > { %4758 = vmatprep.mubr.msk.bf16.mxu1 %vm454_vm2, %v923_v54  ;;  %v2586_v54 = vsel %vm2112_vm4, %v2583_v61, %v2585_v34 }
  0xb6   : > { %v935_v25 = vsel %vm912_vm5, %v932_v48, %v934_v30 }
  0xb7   : > { %4923 = vmatmul.mubr.msk.bf16.gmra.mrb[20].mxu0 %vm454_vm2, %v2576_v6  ;;  %v2869_v6 = vrot.slane %v2867_v16, 2  ;;  %v938_v16 = vrot.slane %v5785_v11, 1  ;;  %v2911_v11 = vshrl.u32 %v5995_v28, 16 }
  0xb8   : > { %4926 = vmatprep.mubr.msk.bf16.mxu0 %vm454_vm2, %v2578_v18  ;;  %v2880_v18 = vrot.slane %v2878_v17, 3 }
  0xb9   : > { %v2873_v35 = vor.u32 %v2872_v42, %v2869_v6  ;;  %v2914_v6 = vshll.u32 %v5995_v28, 16 }
  0xbc   : > { %4759 = vmatmul.mubr.msk.bf16.gmra.mrb[8].mxu1 %vm454_vm2, %v925_v10  ;;  %v933_v10 = vsel %vm912_vm5, %v930_v19, %v932_v48  ;;  %v936_v19 = vrot.slane %v5780_v58, 1  ;;  %v2902_v58 = vshrl.u32 %v5989_v53, 16 }
  0xbd   : > { %4762 = vmatprep.mubr.msk.bf16.mxu1 %vm454_vm2, %v927_v45  ;;  %v2884_v45 = vshrl.u32 %v5973_v46, 16 }
  0xbe   : > { %v937_v48 = vsel %vm912_vm5, %v934_v30, %v936_v19  ;;  %v940_v30 = vrot.slane %v5802_v32, 1  ;;  %v2923_v32 = vshll.u32 %v6014_v3, 16 }
  0xbf   : > { %4927 = vmatmul.mubr.msk.bf16.gmra.mrb[24].mxu0 %vm454_vm2, %v2580_v44  ;;  %v2881_v44 = vor.u32 %v2880_v18, %v2877_v37  ;;  %v2886_v61 = vrot.slane %v2884_v45, 2  ;;  %v2904_v37 = vrot.slane %v2902_v58, 2  ;;  %v2913_v45 = vrot.slane %v2911_v11, 2 }
  0xc0   : > { %4930 = vmatprep.mubr.msk.bf16.mxu0 %vm454_vm2, %v2582_v39  ;;  %v2896_v39 = vshll.u32 %v5977_v50, 16  ;;  %v2938_v58 = vshrl.u32 %v6032_v13, 16  ;;  %v2950_v11 = vshll.u32 %v6037_v8, 16 }
  0xc1   : > { %v2882_v63 = vsel %vm2865_vm6, %v2873_v35, %v2881_v44  ;;  %v941_v35 = vsel %vm912_vm5, %v938_v16, %v940_v30 }
  0xc2   : > { %v2898_v17 = vrot.slane %v2896_v39, 3 }
  0xc4   : > { %4763 = vmatmul.mubr.msk.bf16.gmra.mrb[12].mxu1 %vm454_vm2, %v929_v33  ;;  %v2588_v33 = vsel %vm2112_vm4, %v2585_v34, %v2587_v0  ;;  %v2905_v34 = vshll.u32 %v5989_v53, 16  ;;  %v2899_v49 = vor.u32 %v2898_v17, %v2895_v9  ;;  %v3405_v0 = vsel %vm509_vm0, %v6000_v29, 0 }
  0xc5   : > { %4766 = vmatprep.mubr.msk.bf16.mxu1 %vm454_vm2, %v931_v51  ;;  %v2889_v51 = vrot.slane %v2887_v23, 3  ;;  %v2916_v23 = vrot.slane %v2914_v6, 3  ;;  %v2929_v29 = vshrl.u32 %v6018_v1, 16 }
  0xc6   : > { %v2907_v18 = vrot.slane %v2905_v34, 3  ;;  %v2941_v34 = vshll.u32 %v6032_v13, 16 }
  0xc7   : > { %4931 = vmatmul.mubr.msk.bf16.gmra.mrb[28].mxu0 %vm454_vm2, %v2584_v24  ;;  %v2890_v24 = vor.u32 %v2889_v51, %v2886_v61  ;;  %v2917_v39 = vor.u32 %v2916_v23, %v2913_v45  ;;  %v2922_v61 = vrot.slane %v2920_v41, 2  ;;  %v2925_v51 = vrot.slane %v2923_v32, 3 }
  0xc8   : > { %4934 = vmatprep.mubr.msk.bf16.mxu0 %vm454_vm2, %v2586_v54  ;;  %v939_v54 = vsel %vm912_vm5, %v936_v19, %v938_v16  ;;  %v2932_v19 = vshll.u32 %v6018_v1, 16  ;;  %v2931_v17 = vrot.slane %v2929_v29, 2  ;;  %v2952_v23 = vrot.slane %v2950_v11, 3  ;;  %v5532_v29 = vld [vmem:[%s5604_s25 + $0x18] sm:$0xff]  }
  0xc9   : > { %v2891_v42 = vsel %vm2865_vm6, %v2881_v44, %v2890_v24  ;;  %v2908_v44 = vor.u32 %v2907_v18, %v2904_v37  ;;  %v2943_v37 = vrot.slane %v2941_v34, 3  ;;  %v1352_v18 = vrot.slane %v5635_v20, 1 }
  0xca   : > { %v2956_v32 = vshrl.u32 %v6050_v47, 16  ;;  %v2959_v20 = vshll.u32 %v6050_v47, 16  ;;  %v2977_v34 = vshll.u32 %v6070_v5, 16  ;;  %v2986_v11 = vshll.u32 %v6079_v21, 16 }
  0xcb   : > { %v2909_v16 = vsel %vm2865_vm6, %v2899_v49, %v2908_v44  ;;  %v2918_v9 = vsel %vm2865_vm6, %v2908_v44, %v2917_v39 }
  0xcc   : > { %4767 = vmatmul.mubr.msk.bf16.gmra.mrb[16].mxu1 %vm454_vm2, %v933_v10  ;;  %v942_v10 = vrot.slane %v5808_v40, 1 }
  0xcd   : > { %4770 = vmatprep.mubr.msk.bf16.mxu1 %vm454_vm2, %v935_v25  ;;  %v2900_v25 = vsel %vm2865_vm6, %v2890_v24, %v2899_v49 }
  0xce   : > { %v943_v40 = vsel %vm912_vm5, %v940_v30, %v942_v10  ;;  %v948_v30 = vrot.slane %v5853_v27, 1 }
  0xcf   : > { %4935 = vmatmul.mubr.msk.bf16.gmra.mrb[32].mxu0 %vm454_vm2, %v2588_v33  ;;  %v944_v33 = vrot.slane %v5823_v56, 1 }
  0xd0   : > { %4940 = vmatprep.mubr.msk.bf16.mxu0 %vm454_vm2, %v2882_v63  ;;  %v946_v63 = vrot.slane %v5830_v4, 1  ;;  %v2947_v4 = vshrl.u32 %v6037_v8, 16 }
  0xd1   : > { %v945_v24 = vsel %vm912_vm5, %v942_v10, %v944_v33  ;;  %v5531_v10 = vld [vmem:[%s5604_s25 + $0x10] sm:$0xff]  }
  0xd2   : > { %v947_v56 = vsel %vm912_vm5, %v944_v33, %v946_v63  ;;  %v2949_v45 = vrot.slane %v2947_v4, 2  ;;  %v2983_v4 = vshrl.u32 %v6079_v21, 16 }
  0xd4   : > { %4771 = vmatmul.mubr.msk.bf16.gmra.mrb[20].mxu1 %vm454_vm2, %v937_v48  ;;  %v2934_v48 = vrot.slane %v2932_v19, 3  ;;  %v2953_v44 = vor.u32 %v2952_v23, %v2949_v45  ;;  %v1355_v19 = vrot.slane %v5532_v29, 1  ;;  %v2985_v45 = vrot.slane %v2983_v4, 2 }
  0xd5   : > { %4774 = vmatprep.mubr.msk.bf16.mxu1 %vm454_vm2, %v939_v54  ;;  %v2926_v54 = vor.u32 %v2925_v51, %v2922_v61  ;;  %v2958_v61 = vrot.slane %v2956_v32, 2  ;;  %v2961_v51 = vrot.slane %v2959_v20, 3  ;;  %v2988_v23 = vrot.slane %v2986_v11, 3  ;;  %v5538_v11 = vld [vmem:[%s5604_s25 + $0x48] sm:$0xff]  }
  0xd6   : > { %v2935_v49 = vor.u32 %v2934_v48, %v2931_v17  ;;  %v2995_v32 = vshll.u32 %v6092_v36, 16  ;;  %v3022_v4 = vshll.u32 %v6114_v14, 16 }
  0xd7   : > { %4941 = vmatmul.mubr.msk.bf16.vlgmr.msra.gmra.mrb[0].mxu0 %vm454_vm2, %v2891_v42  ;;  %v2927_v6 = vsel %vm2865_vm6, %v2917_v39, %v2926_v54  ;;  %v2940_v42 = vrot.slane %v2938_v58, 2  ;;  %v2968_v39 = vshll.u32 %v6055_v52, 16  ;;  %v2974_v58 = vshrl.u32 %v6070_v5, 16 }
  0xd8   : > { %4977 = vmatpush3.bf16.msra.mxu0 %v3405_v0  ;;  %4944 = vmatprep.mubr.msk.bf16.mxu0 %vm454_vm2, %v2900_v25  ;;  %v1353_v0 = vrot.slane %v5531_v10, 1  ;;  %v2936_v25 = vsel %vm2865_vm6, %v2926_v54, %v2935_v49  ;;  %v2962_v54 = vor.u32 %v2961_v51, %v2958_v61  ;;  %v5535_v10 = vld [vmem:[%s5604_s25 + $0x30] sm:$0xff]   ;;  %v2989_v20 = vor.u32 %v2988_v23, %v2985_v45  ;;  %v5537_v51 = vld [vmem:[%s5604_s25 + $0x40] sm:$0xff]  }
  0xd9   : > { %v2944_v41 = vor.u32 %v2943_v37, %v2940_v42  ;;  %v2970_v48 = vrot.slane %v2968_v39, 3  ;;  %v2976_v37 = vrot.slane %v2974_v58, 2  ;;  %v5536_v39 = vld [vmem:[%s5604_s25 + $0x38] sm:$0xff]   ;;  %v2997_v61 = vrot.slane %v2995_v32, 3 }
  0xda   : > { %v1354_v27 = vsel %vm912_vm5, %v1352_v18, %v1353_v0  ;;  %v2963_v42 = vsel %vm2865_vm6, %v2953_v44, %v2962_v54  ;;  %v2979_v18 = vrot.slane %v2977_v34, 3  ;;  %v1363_v29 = vrot.slane %v5536_v39, 1 }
  0xdb   : > { %v2945_v33 = vsel %vm2865_vm6, %v2935_v49, %v2944_v41  ;;  %v3013_v58 = vshll.u32 %v6110_v62, 16  ;;  %v3024_v23 = vrot.slane %v3022_v4, 3  ;;  %v3318_v4 = vrot.slane %v5977_v50, 3 }
  0xdc   : > { %4775 = vmatmul.mubr.msk.bf16.gmra.mrb[24].mxu1 %vm454_vm2, %v941_v35  ;;  %v949_v35 = vsel %vm912_vm5, %v946_v63, %v948_v30  ;;  %v3320_v50 = vrot.slane %v5989_v53, 3 }
  0xdd   : > { %4778 = vmatprep.mubr.msk.bf16.mxu1 %vm454_vm2, %v943_v40  ;;  %v2965_v40 = vshrl.u32 %v6055_v52, 16 }
  0xdf   : > { %4945 = vmatmul.mubr.msk.bf16.gmra.mrb[4].mxu0 %vm454_vm2, %v2909_v16  ;;  %v5533_v16 = vld [vmem:[%s5604_s25 + $0x20] sm:$0xff]   ;;  %v2967_v17 = vrot.slane %v2965_v40, 2  ;;  %v3004_v40 = vshll.u32 %v6097_v43, 16 }
  0xe0   : > { %4948 = vmatprep.mubr.msk.bf16.mxu0 %vm454_vm2, %v2918_v9  ;;  %v1357_v63 = vrot.slane %v5533_v16, 1  ;;  %v2954_v9 = vsel %vm2865_vm6, %v2944_v41, %v2953_v44  ;;  %v2980_v41 = vor.u32 %v2979_v18, %v2976_v37  ;;  %v3001_v44 = vshrl.u32 %v6097_v43, 16  ;;  %v5539_v18 = vld [vmem:[%s5604_s25 + $0x50] sm:$0xff]  }
  0xe1   : > { %v2971_v49 = vor.u32 %v2970_v48, %v2967_v17  ;;  %v1365_v16 = vrot.slane %v5537_v51, 1  ;;  %v3006_v17 = vrot.slane %v3004_v40, 3  ;;  %v3015_v37 = vrot.slane %v3013_v58, 3  ;;  %v5540_v40 = vld [vmem:[%s5604_s25 + $0x58] sm:$0xff]  }
  0xe2   : > { %v1371_v39 = vrot.slane %v5540_v40, 1  ;;  %v1774_v40 = vshrl.u32 %v5899_v57, 16 }
  0xe4   : > { %4779 = vmatmul.mubr.msk.bf16.gmra.mrb[28].mxu1 %vm454_vm2, %v945_v24  ;;  %v1356_v24 = vsel %vm912_vm5, %v1353_v0, %v1355_v19  ;;  %v1361_v0 = vrot.slane %v5535_v10, 1  ;;  %v1369_v10 = vrot.slane %v5539_v18, 1  ;;  %v3322_v18 = vrot.slane %v5995_v28, 3 }
  0xe5   : > { %4782 = vmatprep.mubr.msk.bf16.mxu1 %vm454_vm2, %v947_v56  ;;  %v1358_v56 = vsel %vm912_vm5, %v1355_v19, %v1357_v63  ;;  %v2981_v19 = vsel %vm2865_vm6, %v2971_v49, %v2980_v41 }
  0xe6   : > { %v1364_v48 = vsel %vm912_vm5, %v1361_v0, %v1363_v29  ;;  %v3323_v53 = vsel %vm3312_vm7, %v3320_v50, %v3322_v18 }
  0xe7   : > { %4949 = vmatmul.mubr.msk.bf16.gmra.mrb[8].mxu0 %vm454_vm2, %v2927_v6  ;;  %v5534_v6 = vld [vmem:[%s5604_s25 + $0x28] sm:$0xff]  }
  0xe8   : > { %4952 = vmatprep.mubr.msk.bf16.mxu0 %vm454_vm2, %v2936_v25  ;;  %v1359_v30 = vrot.slane %v5534_v6, 1  ;;  %v2972_v25 = vsel %vm2865_vm6, %v2962_v54, %v2971_v49  ;;  %v1366_v54 = vsel %vm912_vm5, %v1363_v29, %v1365_v16  ;;  %v3019_v49 = vshrl.u32 %v6114_v14, 16 }
  0xe9   : > { %v1367_v6 = vrot.slane %v5538_v11, 1  ;;  %v1379_v11 = vrot.slane %v5917_v7, 1 }
  0xea   : > { %v3021_v45 = vrot.slane %v3019_v49, 2 }
  0xec   : > { %4783 = vmatmul.mubr.msk.bf16.gmra.mrb[32].mxu1 %vm454_vm2, %v949_v35  ;;  %v1360_v35 = vsel %vm912_vm5, %v1357_v63, %v1359_v30  ;;  %v2990_v63 = vsel %vm2865_vm6, %v2980_v41, %v2989_v20 }
  0xed   : > { %4788 = vmatprep.mubr.msk.bf16.mxu1 %vm454_vm2, %v1354_v27  ;;  %v2992_v27 = vshrl.u32 %v6092_v36, 16 }
  0xef   : > { %4953 = vmatmul.mubr.msk.bf16.gmra.mrb[12].mxu0 %vm454_vm2, %v2945_v33  ;;  %v2994_v33 = vrot.slane %v2992_v27, 2 }
  0xf0   : > { %4956 = vmatprep.mubr.msk.bf16.mxu0 %vm454_vm2, %v2954_v9  ;;  %v3003_v9 = vrot.slane %v3001_v44, 2  ;;  %v3306_v44 = vld [vmem:[%s5604_s25 + $0x10] sm:$0x8] }
  0xf2   : > { %v3007_v34 = vor.u32 %v3006_v17, %v3003_v9 }
  0xf4   : > { %4789 = vmatmul.mubr.msk.bf16.vlgmr.msra.gmra.mrb[0].mxu1 %vm454_vm2, %v1356_v24  ;;  %v2998_v24 = vor.u32 %v2997_v61, %v2994_v33  ;;  %v1373_v61 = vrot.slane %v5880_v55, 1 }
  0xf5   : > { %4792 = vmatprep.mubr.msk.bf16.mxu1 %vm454_vm2, %v1358_v56  ;;  %5015 = vmatpush3.bf16.msra.mxu1 %v5586_v2  ;;  %v1362_v2 = vsel %vm912_vm5, %v1359_v30, %v1361_v0  ;;  %v3010_v56 = vshrl.u32 %v6110_v62, 16  ;;  %v6250_v0 = vld [vmem:[%s5604_s25 + $0xa0] ss:$0 sps:$4 sm:$0x77]  }
  0xf6   : > { %v2999_v30 = vsel %vm2865_vm6, %v2989_v20, %v2998_v24  ;;  %v3028_v27 = vshrl.u32 %v6250_v0, 16  ;;  %v3031_v32 = vshll.u32 %v6250_v0, 16  ;;  %v3025_v20 = vor.u32 %v3024_v23, %v3021_v45 }
  0xf7   : > { %4957 = vmatmul.mubr.msk.bf16.gmra.mrb[16].mxu0 %vm454_vm2, %v2963_v42  ;;  %v3012_v42 = vrot.slane %v3010_v56, 2  ;;  %v1374_v17 = vsel %vm912_vm5, %v1371_v39, %v1373_v61  ;;  %v1377_v56 = vrot.slane %v5905_v60, 1  ;;  %v1385_v45 = vrot.slane %v5937_v26, 1 }
  0xf8   : > { %4960 = vmatprep.mubr.msk.bf16.mxu0 %vm454_vm2, %v2972_v25  ;;  %v3008_v25 = vsel %vm2865_vm6, %v2998_v24, %v3007_v34  ;;  %v3033_v33 = vrot.slane %v3031_v32, 3  ;;  %v3314_v24 = vrot.slane %v5960_v38, 3  ;;  %v3316_v38 = vrot.slane %v5973_v46, 3 }
  0xf9   : > { %v3016_v41 = vor.u32 %v3015_v37, %v3012_v42  ;;  %v1380_v46 = vsel %vm912_vm5, %v1377_v56, %v1379_v11  ;;  %v1765_v23 = vshrl.u32 %v5880_v55, 16 }
  0xfa   : > { %v3319_v42 = vsel %vm3312_vm7, %v3316_v38, %v3318_v4 }
  0xfb   : > { %v3017_v29 = vsel %vm2865_vm6, %v3007_v34, %v3016_v41  ;;  %v3026_v51 = vsel %vm2865_vm6, %v3016_v41, %v3025_v20  ;;  %v5385_v41 = vld [vmem:[%s5604_s25 + $0x98] ss:$0 sps:$4 sm:$0x11]   ;;  %v1767_v32 = vrot.slane %v1765_v23, 1 }
  0xfc   : > { %4793 = vmatmul.mubr.msk.bf16.gmra.mrb[4].mxu1 %vm454_vm2, %v1360_v35  ;;  %v1368_v35 = vsel %vm912_vm5, %v1365_v16, %v1367_v6  ;;  %v4371_v16 = vcombine.low %v3306_v44, %v5947_v31  ;;  %v3326_v44 = vrot.slane %v6018_v1, 3 }
  0xfd   : > { %4796 = vmatprep.mubr.msk.bf16.mxu1 %vm454_vm2, %v1362_v2  ;;  %v1370_v2 = vsel %vm912_vm5, %v1367_v6, %v1369_v10  ;;  %v3317_v6 = vsel %vm3312_vm7, %v3314_v24, %v3316_v38 }
  0xff   : > { %4961 = vmatmul.mubr.msk.bf16.gmra.mrb[20].mxu0 %vm454_vm2, %v2981_v19  ;;  %v3030_v19 = vrot.slane %v3028_v27, 2 }
 0x100   : > { %4964 = vmatprep.mubr.msk.bf16.mxu0 %vm454_vm2, %v2990_v63  ;;  %v1372_v63 = vsel %vm912_vm5, %v1369_v10, %v1371_v39  ;;  %v1383_v10 = vrot.slane %v5933_v22, 1  ;;  %v1777_v39 = vshll.u32 %v5899_v57, 16 }
 0x101   : > { %v3034_v9 = vor.u32 %v3033_v33, %v3030_v19  ;;  %v1786_v33 = vshll.u32 %v5905_v60, 16 }
 0x102   : > { %v1386_v27 = vsel %vm912_vm5, %v1383_v10, %v1385_v45 }
 0x103   : > { %v3035_v31 = vsel %vm2865_vm6, %v3025_v20, %v3034_v9 }
 0x104   : > { %4797 = vmatmul.mubr.msk.bf16.gmra.mrb[8].mxu1 %vm454_vm2, %v1364_v48  ;;  %v3313_v48 = vrot.slane %v4371_v16, 3  ;;  %v1779_v16 = vrot.slane %v1777_v39, 2 }
 0x105   : > { %4800 = vmatprep.mubr.msk.bf16.mxu1 %vm454_vm2, %v1366_v54  ;;  %v1375_v54 = vrot.slane %v5899_v57, 1 }
 0x106   : > { %v3315_v58 = vsel %vm3312_vm7, %v3313_v48, %v3314_v24  ;;  %v3330_v48 = vrot.slane %v6037_v8, 3  ;;  %v1792_v24 = vshrl.u32 %v5917_v7, 16 }
 0x107   : > { %4965 = vmatmul.mubr.msk.bf16.gmra.mrb[24].mxu0 %vm454_vm2, %v2999_v30  ;;  %v1376_v34 = vsel %vm912_vm5, %v1373_v61, %v1375_v54  ;;  %v1378_v49 = vsel %vm912_vm5, %v1375_v54, %v1377_v56  ;;  %v1381_v30 = vrot.slane %v5921_v12, 1  ;;  %v1795_v54 = vshll.u32 %v5917_v7, 16 }
 0x108   : > { %4968 = vmatprep.mubr.msk.bf16.mxu0 %vm454_vm2, %v3008_v25  ;;  %v3321_v25 = vsel %vm3312_vm7, %v3318_v4, %v3320_v50 }
 0x109   : > { %v1382_v37 = vsel %vm912_vm5, %v1379_v11, %v1381_v30  ;;  %v1384_v28 = vsel %vm912_vm5, %v1381_v30, %v1383_v10  ;;  %v1797_v38 = vrot.slane %v1795_v54, 2  ;;  %v1810_v30 = vshrl.u32 %v5933_v22, 16 }
 0x10b   : > { %v1812_v10 = vrot.slane %v1810_v30, 1 }
 0x10c   : > { %4801 = vmatmul.mubr.msk.bf16.gmra.mrb[12].mxu1 %vm454_vm2, %v1368_v35  ;;  %v1768_v35 = vshll.u32 %v5880_v55, 16  ;;  %v1387_v55 = vrot.slane %v5385_v41, 1  ;;  %v1831_v41 = vshll.u32 %v5953_v59, 16 }
 0x10d   : > { %4804 = vmatprep.mubr.msk.bf16.mxu1 %vm454_vm2, %v1370_v2  ;;  %v3324_v2 = vrot.slane %v6014_v3, 3  ;;  %v1783_v3 = vshrl.u32 %v5905_v60, 16 }
 0x10e   : > { %v1770_v20 = vrot.slane %v1768_v35, 2  ;;  %v1388_v1 = vsel %vm912_vm5, %v1385_v45, %v1387_v55  ;;  %v3336_v45 = vrot.slane %v6070_v5, 3 }
 0x10f   : > { %4969 = vmatmul.mubr.msk.bf16.gmra.mrb[28].mxu0 %vm454_vm2, %v3017_v29  ;;  %v3325_v29 = vsel %vm3312_vm7, %v3322_v18, %v3324_v2  ;;  %v3327_v61 = vsel %vm3312_vm7, %v3324_v2, %v3326_v44  ;;  %v1785_v9 = vrot.slane %v1783_v3, 1  ;;  %v3346_v3 = vrot.slane %v6114_v14, 3 }
 0x110   : > { %4972 = vmatprep.mubr.msk.bf16.mxu0 %vm454_vm2, %v3026_v51  ;;  %v1771_v19 = vor.u32 %v1770_v20, %v1767_v32  ;;  %v1776_v51 = vrot.slane %v1774_v40, 1  ;;  %v3342_v40 = vrot.slane %v6097_v43, 3 }
 0x112   : > { %v1772_v57 = vsel %vm1665_vm3, %v5794_v15, %v1771_v19  ;;  %v1780_v60 = vor.u32 %v1779_v16, %v1776_v51  ;;  %v1804_v15 = vshll.u32 %v5921_v12, 16 }
 0x114   : > { %4805 = vmatmul.mubr.msk.bf16.gmra.mrb[16].mxu1 %vm454_vm2, %v1372_v63  ;;  %v3328_v63 = vrot.slane %v6032_v13, 3  ;;  %v1801_v13 = vshrl.u32 %v5921_v12, 16  ;;  %v1781_v8 = vsel %vm1665_vm3, %v1771_v19, %v1780_v60  ;;  %v1806_v11 = vrot.slane %v1804_v15, 2 }
 0x115   : > { %4808 = vmatprep.mubr.msk.bf16.mxu1 %vm454_vm2, %v1374_v17  ;;  %v1788_v17 = vrot.slane %v1786_v33, 2 }
 0x116   : > { %v1803_v4 = vrot.slane %v1801_v13, 1 }
 0x117   : > { %4973 = vmatmul.mubr.msk.bf16.gmra.mrb[32].mxu0 %vm454_vm2, %v3035_v31  ;;  %v3329_v31 = vsel %vm3312_vm7, %v3326_v44, %v3328_v63  ;;  %v1789_v56 = vor.u32 %v1788_v17, %v1785_v9  ;;  %v3340_v44 = vrot.slane %v6092_v36, 3  ;;  %v3344_v36 = vrot.slane %v6110_v62, 3 }
 0x118   : > { %4978 = vmatprep.mubr.msk.bf16.mxu0 %vm454_vm2, %v3315_v58  ;;  %v3331_v58 = vsel %vm3312_vm7, %v3328_v63, %v3330_v48  ;;  %v1807_v50 = vor.u32 %v1806_v11, %v1803_v4 }
 0x119   : > { %v1790_v7 = vsel %vm1665_vm3, %v1780_v60, %v1789_v56  ;;  %v3345_v43 = vsel %vm3312_vm7, %v3342_v40, %v3344_v36  ;;  %v3347_v33 = vsel %vm3312_vm7, %v3344_v36, %v3346_v3 }
 0x11c   : > { %4809 = vmatmul.mubr.msk.bf16.gmra.mrb[20].mxu1 %vm454_vm2, %v1376_v34  ;;  %v1794_v34 = vrot.slane %v1792_v24, 1 }
 0x11d   : > { %4812 = vmatprep.mubr.msk.bf16.mxu1 %vm454_vm2, %v1378_v49  ;;  %v3332_v49 = vrot.slane %v6050_v47, 3  ;;  %v1819_v47 = vshrl.u32 %v5937_v26, 16 }
 0x11e   : > { %v1798_v12 = vor.u32 %v1797_v38, %v1794_v34 }
 0x11f   : > { %4979 = vmatmul.mubr.msk.bf16.vlgmr.msra.gmra.mrb[0].mxu0 %vm454_vm2, %v3317_v6  ;;  %v3334_v6 = vrot.slane %v6055_v52, 3  ;;  %v1821_v23 = vrot.slane %v1819_v47, 1 }
 0x120   : > { %4982 = vmatprep.mubr.msk.bf16.mxu0 %vm454_vm2, %v3319_v42  ;;  %v1813_v42 = vshll.u32 %v5933_v22, 16  ;;  %v1799_v52 = vsel %vm1665_vm3, %v1789_v56, %v1798_v12  ;;  %v1808_v22 = vsel %vm1665_vm3, %v1798_v12, %v1807_v50 }
 0x121   : > { %v3335_v18 = vsel %vm3312_vm7, %v3332_v49, %v3334_v6  ;;  %v3337_v2 = vsel %vm3312_vm7, %v3334_v6, %v3336_v45 }
 0x124   : > { %4813 = vmatmul.mubr.msk.bf16.gmra.mrb[24].mxu1 %vm454_vm2, %v1380_v46  ;;  %v3333_v46 = vsel %vm3312_vm7, %v3330_v48, %v3332_v49  ;;  %v6404_v49 = vld [vmem:[%s6726_s2] ss:$0 sm:$0xff] }
 0x125   : > { %4816 = vmatprep.mubr.msk.bf16.mxu1 %vm454_vm2, %v1382_v37  ;;  %v1822_v37 = vshll.u32 %v5937_v26, 16 }
 0x127   : > { %4983 = vmatmul.mubr.msk.bf16.gmra.mrb[4].mxu0 %vm454_vm2, %v3321_v25  ;;  %v1815_v25 = vrot.slane %v1813_v42, 2  ;;  %v1824_v35 = vrot.slane %v1822_v37, 2 }
 0x128   : > { %4986 = vmatprep.mubr.msk.bf16.mxu0 %vm454_vm2, %v3323_v53  ;;  %v3338_v53 = vrot.slane %v6079_v21, 3  ;;  %v1833_v21 = vrot.slane %v1831_v41, 2 }
 0x129   : > { %v1816_v26 = vor.u32 %v1815_v25, %v1812_v10 }
 0x12a   : > { %v3339_v5 = vsel %vm3312_vm7, %v3336_v45, %v3338_v53  ;;  %v3341_v39 = vsel %vm3312_vm7, %v3338_v53, %v3340_v44 }
 0x12b   : > { %v1817_v32 = vsel %vm1665_vm3, %v1807_v50, %v1816_v26 }
 0x12c   : > { %4817 = vmatmul.mubr.msk.bf16.gmra.mrb[28].mxu1 %vm454_vm2, %v1384_v28  ;;  %v1828_v28 = vshrl.u32 %v5953_v59, 16 }
 0x12d   : > { %4820 = vmatprep.mubr.msk.bf16.mxu1 %vm454_vm2, %v1386_v27  ;;  %v1825_v27 = vor.u32 %v1824_v35, %v1821_v23 }
 0x12e   : > { %v1830_v20 = vrot.slane %v1828_v28, 1 }
 0x12f   : > { %4987 = vmatmul.mubr.msk.bf16.gmra.mrb[8].mxu0 %vm454_vm2, %v3325_v29  ;;  %v1826_v55 = vsel %vm1665_vm3, %v1816_v26, %v1825_v27  ;;  %v3343_v29 = vsel %vm3312_vm7, %v3340_v44, %v3342_v40 }
 0x130   : > { %4990 = vmatprep.mubr.msk.bf16.mxu0 %vm454_vm2, %v3327_v61  ;;  %v1834_v59 = vor.u32 %v1833_v21, %v1830_v20  ;;  %v3348_v61 = vrot.slane %v6250_v0, 3 }
 0x132   : > { %v1835_v19 = vsel %vm1665_vm3, %v1825_v27, %v1834_v59 }
 0x134   : > { %4821 = vmatmul.mubr.msk.bf16.gmra.mrb[32].mxu1 %vm454_vm2, %v1388_v1  ;;  %v3349_v1 = vsel %vm3312_vm7, %v3346_v3, %v3348_v61 }
 0x135   : > { %4846 = vmatprep.mubr.msk.bf16.mxu1 %vm454_vm2, %v1772_v57 }
 0x137   : > { %4991 = vmatmul.mubr.msk.bf16.gmra.mrb[12].mxu0 %vm454_vm2, %v3329_v31 }
 0x138   : > { %4994 = vmatprep.mubr.msk.bf16.mxu0 %vm454_vm2, %v3331_v58 }
 0x13c   : > { %4847 = vmatmul.mubr.msk.bf16.vlgmr.msra.gmra.mrb[20].mxu1 %vm454_vm2, %v1781_v8 }
 0x13d   : > { %4850 = vmatprep.mubr.msk.bf16.mxu1 %vm454_vm2, %v1790_v7 }
 0x13f   : > { %4995 = vmatmul.mubr.msk.bf16.gmra.mrb[16].mxu0 %vm454_vm2, %v3333_v46 }
 0x140   : > { %4998 = vmatprep.mubr.msk.bf16.mxu0 %vm454_vm2, %v3335_v18 }
 0x144   : > { %4851 = vmatmul.mubr.msk.bf16.gmra.mrb[24].mxu1 %vm454_vm2, %v1799_v52 }
 0x145   : > { %4854 = vmatprep.mubr.msk.bf16.mxu1 %vm454_vm2, %v1808_v22 }
 0x147   : > { %4999 = vmatmul.mubr.msk.bf16.gmra.mrb[20].mxu0 %vm454_vm2, %v3337_v2 }
 0x148   : > { %5002 = vmatprep.mubr.msk.bf16.mxu0 %vm454_vm2, %v3339_v5 }
 0x14c   : > { %4855 = vmatmul.mubr.msk.bf16.gmra.mrb[28].mxu1 %vm454_vm2, %v1817_v32 }
 0x14d   : > { %4858 = vmatprep.mubr.msk.bf16.mxu1 %vm454_vm2, %v1826_v55 }
 0x14f   : > { %5003 = vmatmul.mubr.msk.bf16.gmra.mrb[24].mxu0 %vm454_vm2, %v3341_v39 }
 0x150   : > { %5006 = vmatprep.mubr.msk.bf16.mxu0 %vm454_vm2, %v3343_v29 }
 0x154   : > { %4859 = vmatmul.mubr.msk.bf16.gmra.mrb[32].mxu1 %vm454_vm2, %v1835_v19 }
 0x157   : > { %5007 = vmatmul.mubr.msk.bf16.gmra.mrb[28].mxu0 %vm454_vm2, %v3345_v43 }
 0x158   : > { %5010 = vmatprep.mubr.msk.bf16.mxu0 %vm454_vm2, %v3347_v33 }
 0x15f   : > { %5011 = vmatmul.mubr.msk.bf16.gmra.mrb[32].mxu0 %vm454_vm2, %v3349_v1 }
 0x1c7   : > { %v4790_v51 = vpop.f32.mrb[0].mxu1 }
 0x1c8   : > { %v1480_v62 = vpop.f32.mrb[1].mxu1 }
 0x1c9   : > { %v4791_v16 = vpop.f32.mrb[2].mxu1 }
 0x1ca   : > { %v1483_v14 = vpop.f32.mrb[3].mxu1 }
 0x1cf   : > { %v4794_v63 = vpop.f32.mrb[4].mxu1 }
 0x1d0   : > { %v1496_v57 = vpop.f32.mrb[5].mxu1 }
 0x1d1   : > { %v4795_v9 = vpop.f32.mrb[6].mxu1 }
 0x1d2   : > { %v1499_v17 = vpop.f32.mrb[7].mxu1 }
 0x1d7   : > { %v4798_v48 = vpop.f32.mrb[8].mxu1 }
 0x1d8   : > { %v1512_v60 = vpop.f32.mrb[9].mxu1 }
 0x1d9   : > { %v4799_v24 = vpop.f32.mrb[10].mxu1 }
 0x1da   : > { %v6383_v54 = vpop.f32.mrb[11].mxu1 }
 0x1df   : > { %v6385_v31 = vpop.f32.mrb[12].mxu1 }
 0x1e0   : > { %v6387_v0 = vpop.f32.mrb[13].mxu1 }
 0x1e1   : > { %v6389_v56 = vpop.f32.mrb[14].mxu1 }
 0x1e2   : > { %v6391_v13 = vpop.f32.mrb[15].mxu1 }
 0x1e7   : > { %v6393_v15 = vpop.f32.mrb[16].mxu1 }
 0x1e8   : > { %v6395_v58 = vpop.f32.mrb[17].mxu1 }
 0x1e9   : > { %v6397_v8 = vpop.f32.mrb[18].mxu1 }
 0x1ea   : > { %v6399_v34 = vpop.f32.mrb[19].mxu1 }
 0x1f2   : > { %v4980_v38 = vpop.f32.mrb[0].mxu0 }
 0x1f3   : > { %v5016_v7 = vadd.f32 %v4980_v38, %v4790_v51  ;;  %v3441_v4 = vpop.f32.mrb[1].mxu0 }
 0x1f4   : > { %v5017_v11 = vadd.f32 %v3441_v4, %v1480_v62  ;;  %v4981_v6 = vpop.f32.mrb[2].mxu0 }
 0x1f5   : > { %v6407_v12 = vadd.f32 %v5016_v7, %v6404_v49  ;;  %v5018_v30 = vadd.f32 %v4981_v6, %v4791_v16  ;;  %v3444_v42 = vpop.f32.mrb[3].mxu0 }
 0x1f6   : > { %v6410_v46 = vadd.f32 %v5017_v11, %v6404_v49  ;;  %v5019_v50 = vadd.f32 %v3444_v42, %v1483_v14 }
 0x1f7   : > { %v4393_v47 = vmul.f32 -1.442695, %v6407_v12  ;;  %v6414_v37 = vadd.f32 %v5018_v30, %v6404_v49 }
 0x1f8   : > { %v4391_v18 = vmul.f32 -1.442695, %v6410_v46  ;;  %v6418_v52 = vadd.f32 %v5019_v50, %v6404_v49 }
 0x1f9   : > { %5386 = vpow2.f32 %v4393_v47  ;;  %v4394_v10 = vmul.f32 -1.442695, %v6414_v37 }
 0x1fa   : > { %5388 = vpow2.f32 %v4391_v18  ;;  %v4392_v25 = vmul.f32 -1.442695, %v6418_v52  ;;  %v4984_v45 = vpop.f32.mrb[4].mxu0 }
 0x1fb   : > { %5390 = vpow2.f32 %v4394_v10  ;;  %v5020_v22 = vadd.f32 %v4984_v45, %v4794_v63  ;;  %v3457_v23 = vpop.f32.mrb[5].mxu0 }
 0x1fc   : > { %5392 = vpow2.f32 %v4392_v25  ;;  %v5021_v35 = vadd.f32 %v3457_v23, %v1496_v57  ;;  %v4985_v53 = vpop.f32.mrb[6].mxu0 }
 0x1fd   : > { %v6423_v26 = vadd.f32 %v5020_v22, %v6404_v49  ;;  %v5022_v28 = vadd.f32 %v4985_v53, %v4795_v9  ;;  %v3460_v41 = vpop.f32.mrb[7].mxu0 }
 0x1fe   : > { %v6426_v2 = vadd.f32 %v5021_v35, %v6404_v49  ;;  %v5023_v27 = vadd.f32 %v3460_v41, %v1499_v17 }
 0x1ff   : > { %v4397_v5 = vmul.f32 -1.442695, %v6423_v26  ;;  %v6430_v32 = vadd.f32 %v5022_v28, %v6404_v49 }
 0x200   : > { %v4395_v20 = vmul.f32 -1.442695, %v6426_v2  ;;  %v6434_v21 = vadd.f32 %v5023_v27, %v6404_v49 }
 0x201   : > { %5394 = vpow2.f32 %v4397_v5  ;;  %v4398_v44 = vmul.f32 -1.442695, %v6430_v32 }
 0x202   : > { %5396 = vpow2.f32 %v4395_v20  ;;  %v4396_v55 = vmul.f32 -1.442695, %v6434_v21  ;;  %v4988_v40 = vpop.f32.mrb[8].mxu0 }
 0x203   : > { %v5387_v59 = vpop.eup %5386  ;;  %5398 = vpow2.f32 %v4398_v44  ;;  %v5024_v39 = vadd.f32 %v4988_v40, %v4798_v48  ;;  %v3473_v29 = vpop.f32.mrb[9].mxu0 }
 0x204   : > { %v5389_v19 = vpop.eup %5388  ;;  %v3773_v36 = vadd.f32 1.0, %v5387_v59  ;;  %5400 = vpow2.f32 %v4396_v55  ;;  %v5025_v3 = vadd.f32 %v3473_v29, %v1512_v60  ;;  %v4989_v43 = vpop.f32.mrb[10].mxu0 }
 0x205   : > { %v5391_v33 = vpop.eup %5390  ;;  %v3771_v61 = vadd.f32 1.0, %v5389_v19  ;;  %v6439_v1 = vadd.f32 %v5024_v39, %v6404_v49  ;;  %v5026_v51 = vadd.f32 %v4989_v43, %v4799_v24  ;;  %v3476_v62 = vpop.f32.mrb[11].mxu0 }
 0x206   : > { %v5393_v16 = vpop.eup %5392  ;;  %5402 = vrcp.f32 %v3773_v36  ;;  %v3774_v14 = vadd.f32 1.0, %v5391_v33  ;;  %v6442_v63 = vadd.f32 %v5025_v3, %v6404_v49  ;;  %v5027_v57 = vadd.f32 %v3476_v62, %v6383_v54 }
 0x207   : > { %5404 = vrcp.f32 %v3771_v61  ;;  %v3772_v9 = vadd.f32 1.0, %v5393_v16  ;;  %v4401_v17 = vmul.f32 -1.442695, %v6439_v1  ;;  %v6447_v48 = vadd.f32 %v5026_v51, %v6404_v49 }
 0x208   : > { %5406 = vrcp.f32 %v3774_v14  ;;  %v4399_v60 = vmul.f32 -1.442695, %v6442_v63  ;;  %v6451_v24 = vadd.f32 %v5027_v57, %v6404_v49 }
 0x209   : > { %5408 = vrcp.f32 %v3772_v9  ;;  %v4402_v38 = vmul.f32 -1.442695, %v6447_v48 }
 0x20a   : > { %5410 = vpow2.f32 %v4401_v17  ;;  %v4400_v7 = vmul.f32 -1.442695, %v6451_v24  ;;  %v4992_v54 = vpop.f32.mrb[12].mxu0 }
 0x20b   : > { %v5395_v4 = vpop.eup %5394  ;;  %5412 = vpow2.f32 %v4399_v60  ;;  %v5028_v11 = vadd.f32 %v4992_v54, %v6385_v31  ;;  %v3489_v6 = vpop.f32.mrb[13].mxu0 }
 0x20c   : > { %v5397_v30 = vpop.eup %5396  ;;  %v3777_v42 = vadd.f32 1.0, %v5395_v4  ;;  %5414 = vpow2.f32 %v4402_v38  ;;  %v5029_v50 = vadd.f32 %v3489_v6, %v6387_v0  ;;  %v4993_v47 = vpop.f32.mrb[14].mxu0 }
 0x20d   : > { %v5399_v18 = vpop.eup %5398  ;;  %v3775_v10 = vadd.f32 1.0, %v5397_v30  ;;  %5416 = vpow2.f32 %v4400_v7  ;;  %v6458_v25 = vadd.f32 %v5028_v11, %v6404_v49  ;;  %v5030_v45 = vadd.f32 %v4993_v47, %v6389_v56  ;;  %v3492_v22 = vpop.f32.mrb[15].mxu0 }
 0x20e   : > { %v5401_v35 = vpop.eup %5400  ;;  %5418 = vrcp.f32 %v3777_v42  ;;  %v3778_v31 = vadd.f32 1.0, %v5399_v18  ;;  %v6465_v53 = vadd.f32 %v5029_v50, %v6404_v49  ;;  %v5031_v0 = vadd.f32 %v3492_v22, %v6391_v13 }
 0x20f   : > { %v6461_v23 = vpop.f32.mrb[20].mxu1  ;;  %5420 = vrcp.f32 %v3775_v10  ;;  %v3776_v41 = vadd.f32 1.0, %v5401_v35  ;;  %v4405_v27 = vmul.f32 -1.442695, %v6458_v25  ;;  %v6472_v56 = vadd.f32 %v5030_v45, %v6404_v49 }
 0x210   : > { %v6468_v28 = vpop.f32.mrb[21].mxu1  ;;  %v5403_v20 = vpop.eup %5402  ;;  %5422 = vrcp.f32 %v3778_v31  ;;  %v4403_v44 = vmul.f32 -1.442695, %v6465_v53  ;;  %v6478_v55 = vadd.f32 %v5031_v0, %v6404_v49 }
 0x211   : > { %v6474_v5 = vpop.f32.mrb[22].mxu1  ;;  %v5405_v13 = vpop.eup %5404  ;;  %v3881_v59 = vmul.f32 %v5403_v20, %v6407_v12  ;;  %5424 = vrcp.f32 %v3776_v41  ;;  %v4406_v39 = vmul.f32 -1.442695, %v6472_v56 }
 0x212   : > { %v6480_v40 = vpop.f32.mrb[23].mxu1  ;;  %v5407_v29 = vpop.eup %5406  ;;  %v3879_v19 = vmul.f32 %v5405_v13, %v6410_v46  ;;  %5426 = vpow2.f32 %v4405_v27  ;;  %v4404_v36 = vmul.f32 -1.442695, %v6478_v55 }
 0x213   : > { %v4996_v3 = vpop.f32.mrb[16].mxu0  ;;  %v5409_v43 = vpop.eup %5408  ;;  %v4467_v33 = vpack.c.bf16 %v3881_v59, %v3881_v59  ;;  %v3882_v12 = vmul.f32 %v5407_v29, %v6414_v37  ;;  %5428 = vpow2.f32 %v4403_v44 }
 0x214   : > { %v5032_v61 = vadd.f32 %v4996_v3, %v6393_v15  ;;  %v3505_v51 = vpop.f32.mrb[17].mxu0  ;;  %v5411_v62 = vpop.eup %5410  ;;  %v4465_v16 = vpack.c.bf16 %v3879_v19, %v3879_v19  ;;  %v3880_v14 = vmul.f32 %v5409_v43, %v6418_v52  ;;  %5430 = vpow2.f32 %v4406_v39 }
 0x215   : > { %v5033_v46 = vadd.f32 %v3505_v51, %v6395_v58  ;;  %v4997_v57 = vpop.f32.mrb[18].mxu0  ;;  %v5413_v9 = vpop.eup %5412  ;;  %4062 = vst.msk [vmem:[%s6487_s17 + $0x8] sm:$0xf] %vm4059_vm8, %v4467_v33  ;;  %v4468_v17 = vpack.c.bf16 %v3882_v12, %v3882_v12  ;;  %v3781_v60 = vadd.f32 1.0, %v5411_v62  ;;  %5432 = vpow2.f32 %v4404_v36 }
 0x216   : > { %v6498_v37 = vadd.f32 %v5032_v61, %v6404_v49  ;;  %v3508_v15 = vpop.f32.mrb[19].mxu0  ;;  %v5415_v7 = vpop.eup %5414  ;;  %4060 = vst.msk [vmem:[%s6487_s17] sm:$0xf] %vm4059_vm8, %v4465_v16  ;;  %v4466_v52 = vpack.c.bf16 %v3880_v14, %v3880_v14  ;;  %v3779_v58 = vadd.f32 1.0, %v5413_v9  ;;  %v5034_v4 = vadd.f32 %v4997_v57, %v6397_v8 }
 0x217   : > { %v6500_v38 = vpop.f32.mrb[24].mxu1  ;;  %v6505_v54 = vadd.f32 %v5033_v46, %v6404_v49  ;;  %v5417_v6 = vpop.eup %5416  ;;  %4063 = vst.msk [vmem:[%s6487_s17 + $0xc] sm:$0xf] %vm4059_vm8, %v4468_v17  ;;  %5434 = vrcp.f32 %v3781_v60  ;;  %v3782_v30 = vadd.f32 1.0, %v5415_v7  ;;  %v5035_v50 = vadd.f32 %v3508_v15, %v6399_v34 }
 0x218   : > { %v6508_v11 = vpop.f32.mrb[25].mxu1  ;;  %v4409_v42 = vmul.f32 -1.442695, %v6498_v37  ;;  %v5419_v18 = vpop.eup %5418  ;;  %4061 = vst.msk [vmem:[%s6487_s17 + $0x4] sm:$0xf] %vm4059_vm8, %v4466_v52  ;;  %5436 = vrcp.f32 %v3779_v58  ;;  %v3780_v10 = vadd.f32 1.0, %v5417_v6  ;;  %v6520_v45 = vadd.f32 %v5034_v4, %v6404_v49 }
 0x219   : > { %v6514_v47 = vpop.f32.mrb[26].mxu1  ;;  %v4407_v8 = vmul.f32 -1.442695, %v6505_v54  ;;  %v5421_v35 = vpop.eup %5420  ;;  %v3885_v31 = vmul.f32 %v5419_v18, %v6423_v26  ;;  %5438 = vrcp.f32 %v3782_v30  ;;  %v6526_v34 = vadd.f32 %v5035_v50, %v6404_v49 }
 0x21a   : > { %v6522_v22 = vpop.f32.mrb[27].mxu1  ;;  %v5423_v0 = vpop.eup %5422  ;;  %v3883_v41 = vmul.f32 %v5421_v35, %v6426_v2  ;;  %5440 = vrcp.f32 %v3780_v10  ;;  %v4410_v27 = vmul.f32 -1.442695, %v6520_v45 }
 0x21b   : > { %v5000_v20 = vpop.f32.mrb[20].mxu0  ;;  %v5425_v44 = vpop.eup %5424  ;;  %v4471_v13 = vpack.c.bf16 %v3885_v31, %v3885_v31  ;;  %v3886_v59 = vmul.f32 %v5423_v0, %v6430_v32  ;;  %5442 = vpow2.f32 %v4409_v42  ;;  %v4408_v39 = vmul.f32 -1.442695, %v6526_v34 }
 0x21c   : > { %v3521_v26 = vpop.f32.mrb[21].mxu0  ;;  %v5427_v29 = vpop.eup %5426  ;;  %v4469_v19 = vpack.c.bf16 %v3883_v41, %v3883_v41  ;;  %v3884_v36 = vmul.f32 %v5425_v44, %v6434_v21  ;;  %5444 = vpow2.f32 %v4407_v8  ;;  %v5036_v2 = vadd.f32 %v5000_v20, %v6461_v23 }
 0x21d   : > { %v5001_v3 = vpop.f32.mrb[22].mxu0  ;;  %v5429_v43 = vpop.eup %5428  ;;  %4066 = vst.msk [vmem:[%s6487_s17 + $0x18] sm:$0xf] %vm4059_vm8, %v4471_v13  ;;  %v4472_v33 = vpack.c.bf16 %v3886_v59, %v3886_v59  ;;  %v3785_v12 = vadd.f32 1.0, %v5427_v29  ;;  %5446 = vpow2.f32 %v4410_v27  ;;  %v5037_v32 = vadd.f32 %v3521_v26, %v6468_v28 }
 0x21e   : > { %v3524_v61 = vpop.f32.mrb[23].mxu0  ;;  %v5431_v62 = vpop.eup %5430  ;;  %4064 = vst.msk [vmem:[%s6487_s17 + $0x10] sm:$0xf] %vm4059_vm8, %v4469_v19  ;;  %v4470_v21 = vpack.c.bf16 %v3884_v36, %v3884_v36  ;;  %v3783_v16 = vadd.f32 1.0, %v5429_v43  ;;  %5448 = vpow2.f32 %v4408_v39  ;;  %v6542_v23 = vadd.f32 %v5036_v2, %v6404_v49 }
 0x21f   : > { %v6537_v51 = vpop.f32.mrb[28].mxu1  ;;  %v5433_v46 = vpop.eup %5432  ;;  %4067 = vst.msk [vmem:[%s6487_s17 + $0x1c] sm:$0xf] %vm4059_vm8, %v4472_v33  ;;  %5450 = vrcp.f32 %v3785_v12  ;;  %v3786_v28 = vadd.f32 1.0, %v5431_v62  ;;  %v6549_v57 = vadd.f32 %v5037_v32, %v6404_v49  ;;  %v5038_v9 = vadd.f32 %v5001_v3, %v6474_v5 }
 0x220   : > { %v6544_v14 = vpop.f32.mrb[29].mxu1  ;;  %4065 = vst.msk [vmem:[%s6487_s17 + $0x14] sm:$0xf] %vm4059_vm8, %v4470_v21  ;;  %5452 = vrcp.f32 %v3783_v16  ;;  %v3784_v60 = vadd.f32 1.0, %v5433_v46  ;;  %v4413_v15 = vmul.f32 -1.442695, %v6542_v23  ;;  %v5039_v7 = vadd.f32 %v3524_v61, %v6480_v40 }
 0x221   : > { %v6552_v17 = vpop.f32.mrb[30].mxu1  ;;  %v5435_v58 = vpop.eup %5434  ;;  %5454 = vrcp.f32 %v3786_v28  ;;  %v4411_v4 = vmul.f32 -1.442695, %v6549_v57  ;;  %v6562_v6 = vadd.f32 %v5038_v9, %v6404_v49 }
 0x222   : > { %v6558_v52 = vpop.f32.mrb[31].mxu1  ;;  %v5437_v5 = vpop.eup %5436  ;;  %v3889_v30 = vmul.f32 %v5435_v58, %v6439_v1  ;;  %5456 = vrcp.f32 %v3784_v60  ;;  %v6566_v42 = vadd.f32 %v5039_v7, %v6404_v49 }
 0x223   : > { %v5004_v50 = vpop.f32.mrb[24].mxu0  ;;  %v5439_v18 = vpop.eup %5438  ;;  %v3887_v40 = vmul.f32 %v5437_v5, %v6442_v63  ;;  %5458 = vpow2.f32 %v4413_v15  ;;  %v4414_v10 = vmul.f32 -1.442695, %v6562_v6 }
 0x224   : > { %v5040_v8 = vadd.f32 %v5004_v50, %v6500_v38  ;;  %v3537_v35 = vpop.f32.mrb[25].mxu0  ;;  %v5441_v31 = vpop.eup %5440  ;;  %v4475_v0 = vpack.c.bf16 %v3889_v30, %v3889_v30  ;;  %v3890_v41 = vmul.f32 %v5439_v18, %v6447_v48  ;;  %5460 = vpow2.f32 %v4411_v4 }
 0x225   : > { %v4412_v1 = vmul.f32 -1.442695, %v6566_v42  ;;  %v5005_v27 = vpop.f32.mrb[26].mxu0  ;;  %v5443_v20 = vpop.eup %5442  ;;  %v4473_v44 = vpack.c.bf16 %v3887_v40, %v3887_v40  ;;  %v3888_v63 = vmul.f32 %v5441_v31, %v6451_v24  ;;  %5462 = vpow2.f32 %v4414_v10 }
 0x226   : > { %v6575_v13 = vadd.f32 %v5040_v8, %v6404_v49  ;;  %v3540_v38 = vpop.f32.mrb[27].mxu0  ;;  %v5445_v39 = vpop.eup %5444  ;;  %4070 = vst.msk [vmem:[%s6487_s17 + $0x28] sm:$0xf] %vm4059_vm8, %v4475_v0  ;;  %v4476_v48 = vpack.c.bf16 %v3890_v41, %v3890_v41  ;;  %v3789_v26 = vadd.f32 1.0, %v5443_v20  ;;  %v5041_v29 = vadd.f32 %v3537_v35, %v6508_v11 }
 0x227   : > { %v6577_v59 = vpop.f32.mrb[32].mxu1  ;;  %5464 = vpow2.f32 %v4412_v1  ;;  %v5447_v24 = vpop.eup %5446  ;;  %4068 = vst.msk [vmem:[%s6487_s17 + $0x20] sm:$0xf] %vm4059_vm8, %v4473_v44  ;;  %v4474_v36 = vpack.c.bf16 %v3888_v63, %v3888_v63  ;;  %v3787_v2 = vadd.f32 1.0, %v5445_v39  ;;  %v5042_v43 = vadd.f32 %v5005_v27, %v6514_v47 }
 0x228   : > { %v6582_v19 = vpop.f32.mrb[33].mxu1  ;;  %v4417_v3 = vmul.f32 -1.442695, %v6575_v13  ;;  %v5449_v12 = vpop.eup %5448  ;;  %4071 = vst.msk [vmem:[%s6487_s17 + $0x2c] sm:$0xf] %vm4059_vm8, %v4476_v48  ;;  %5466 = vrcp.f32 %v3789_v26  ;;  %v3790_v32 = vadd.f32 1.0, %v5447_v24  ;;  %v6593_v11 = vadd.f32 %v5041_v29, %v6404_v49 }
 0x229   : > { %v6588_v33 = vpop.f32.mrb[34].mxu1  ;;  %v5043_v61 = vadd.f32 %v3540_v38, %v6522_v22  ;;  %v5451_v21 = vpop.eup %5450  ;;  %4069 = vst.msk [vmem:[%s6487_s17 + $0x24] sm:$0xf] %vm4059_vm8, %v4474_v36  ;;  %5468 = vrcp.f32 %v3787_v2  ;;  %v3788_v16 = vadd.f32 1.0, %v5449_v12  ;;  %v6601_v47 = vadd.f32 %v5042_v43, %v6404_v49 }
 0x22a   : > { %v6596_v62 = vpop.f32.mrb[35].mxu1  ;;  %v5453_v46 = vpop.eup %5452  ;;  %v3893_v28 = vmul.f32 %v5451_v21, %v6458_v25  ;;  %5470 = vrcp.f32 %v3790_v32  ;;  %v4415_v9 = vmul.f32 -1.442695, %v6593_v11 }
 0x22b   : > { %v6606_v60 = vadd.f32 %v5043_v61, %v6404_v49  ;;  %v5008_v22 = vpop.f32.mrb[28].mxu0  ;;  %v5455_v15 = vpop.eup %5454  ;;  %v3891_v7 = vmul.f32 %v5453_v46, %v6465_v53  ;;  %5472 = vrcp.f32 %v3788_v16  ;;  %v4418_v58 = vmul.f32 -1.442695, %v6601_v47 }
 0x22c   : > { %v5044_v4 = vadd.f32 %v5008_v22, %v6537_v51  ;;  %v3553_v5 = vpop.f32.mrb[29].mxu0  ;;  %v5457_v30 = vpop.eup %5456  ;;  %v4479_v50 = vpack.c.bf16 %v3893_v28, %v3893_v28  ;;  %v3894_v25 = vmul.f32 %v5455_v15, %v6472_v56  ;;  %5474 = vpow2.f32 %v4417_v3 }
 0x22d   : > { %v4416_v18 = vmul.f32 -1.442695, %v6606_v60  ;;  %v5009_v40 = vpop.f32.mrb[30].mxu0  ;;  %v5459_v10 = vpop.eup %5458  ;;  %v4477_v8 = vpack.c.bf16 %v3891_v7, %v3891_v7  ;;  %v3892_v53 = vmul.f32 %v5457_v30, %v6478_v55  ;;  %5476 = vpow2.f32 %v4415_v9 }
 0x22e   : > { %v6615_v35 = vadd.f32 %v5044_v4, %v6404_v49  ;;  %v3556_v51 = vpop.f32.mrb[31].mxu0  ;;  %v5461_v31 = vpop.eup %5460  ;;  %4074 = vst.msk [vmem:[%s6487_s17 + $0x38] sm:$0xf] %vm4059_vm8, %v4479_v50  ;;  %v4480_v0 = vpack.c.bf16 %v3894_v25, %v3894_v25  ;;  %v3793_v56 = vadd.f32 1.0, %v5459_v10  ;;  %5478 = vpow2.f32 %v4418_v58 }
 0x22f   : > { %v5045_v41 = vadd.f32 %v3553_v5, %v6544_v14  ;;  %v5463_v1 = vpop.eup %5462  ;;  %4072 = vst.msk [vmem:[%s6487_s17 + $0x30] sm:$0xf] %vm4059_vm8, %v4477_v8  ;;  %v4478_v27 = vpack.c.bf16 %v3892_v53, %v3892_v53  ;;  %v3791_v55 = vadd.f32 1.0, %v5461_v31  ;;  %5480 = vpow2.f32 %v4416_v18 }
 0x230   : > { %v4421_v20 = vmul.f32 -1.442695, %v6615_v35  ;;  %4075 = vst.msk [vmem:[%s6487_s17 + $0x3c] sm:$0xf] %vm4059_vm8, %v4480_v0  ;;  %5482 = vrcp.f32 %v3793_v56  ;;  %v3794_v63 = vadd.f32 1.0, %v5463_v1  ;;  %v5046_v39 = vadd.f32 %v5009_v40, %v6552_v17 }
 0x231   : > { %v5465_v44 = vpop.eup %5464  ;;  %v6626_v38 = vadd.f32 %v5045_v41, %v6404_v49  ;;  %4073 = vst.msk [vmem:[%s6487_s17 + $0x34] sm:$0xf] %vm4059_vm8, %v4478_v27  ;;  %5484 = vrcp.f32 %v3791_v55  ;;  %v5047_v48 = vadd.f32 %v3556_v51, %v6558_v52 }
 0x232   : > { %v3792_v14 = vadd.f32 1.0, %v5465_v44  ;;  %v5467_v26 = vpop.eup %5466  ;;  %5486 = vrcp.f32 %v3794_v63  ;;  %v6634_v24 = vadd.f32 %v5046_v39, %v6404_v49  ;;  %v5012_v36 = vpop.f32.mrb[32].mxu0 }
 0x233   : > { %v4419_v29 = vmul.f32 -1.442695, %v6626_v38  ;;  %v5469_v2 = vpop.eup %5468  ;;  %v3897_v3 = vmul.f32 %v5467_v26, %v6498_v37  ;;  %v6638_v17 = vadd.f32 %v5047_v48, %v6404_v49  ;;  %v5048_v43 = vadd.f32 %v5012_v36, %v6577_v59  ;;  %v3569_v12 = vpop.f32.mrb[33].mxu0 }
 0x234   : > { %5488 = vrcp.f32 %v3792_v14  ;;  %v5471_v32 = vpop.eup %5470  ;;  %v3895_v52 = vmul.f32 %v5469_v2, %v6505_v54  ;;  %v4422_v61 = vmul.f32 -1.442695, %v6634_v24  ;;  %v5049_v21 = vadd.f32 %v3569_v12, %v6582_v19  ;;  %v5013_v16 = vpop.f32.mrb[34].mxu0 }
 0x235   : > { %5490 = vpow2.f32 %v4421_v20  ;;  %v5473_v46 = vpop.eup %5472  ;;  %v4483_v28 = vpack.c.bf16 %v3897_v3, %v3897_v3  ;;  %v3898_v37 = vmul.f32 %v5471_v32, %v6520_v45  ;;  %v4420_v9 = vmul.f32 -1.442695, %v6638_v17  ;;  %v3572_v59 = vpop.f32.mrb[35].mxu0 }
 0x236   : > { %5492 = vpow2.f32 %v4419_v29  ;;  %v5475_v22 = vpop.eup %5474  ;;  %v4481_v15 = vpack.c.bf16 %v3895_v52, %v3895_v52  ;;  %v3896_v54 = vmul.f32 %v5473_v46, %v6526_v34  ;;  %v6648_v7 = vadd.f32 %v5048_v43, %v6404_v49 }
 0x237   : > { %5494 = vpow2.f32 %v4422_v61  ;;  %v5477_v19 = vpop.eup %5476  ;;  %4078 = vst.msk [vmem:[%s6487_s17 + $0x48] sm:$0xf] %vm4059_vm8, %v4483_v28  ;;  %v4484_v58 = vpack.c.bf16 %v3898_v37, %v3898_v37  ;;  %v3797_v45 = vadd.f32 1.0, %v5475_v22  ;;  %v6653_v4 = vadd.f32 %v5049_v21, %v6404_v49 }
 0x238   : > { %5496 = vpow2.f32 %v4420_v9  ;;  %v5479_v5 = vpop.eup %5478  ;;  %4076 = vst.msk [vmem:[%s6487_s17 + $0x40] sm:$0xf] %vm4059_vm8, %v4481_v15  ;;  %v4482_v30 = vpack.c.bf16 %v3896_v54, %v3896_v54  ;;  %v3795_v50 = vadd.f32 1.0, %v5477_v19  ;;  %v5050_v34 = vadd.f32 %v5013_v16, %v6588_v33 }
 0x239   : > { %v5481_v25 = vpop.eup %5480  ;;  %4079 = vst.msk [vmem:[%s6487_s17 + $0x4c] sm:$0xf] %vm4059_vm8, %v4484_v58  ;;  %5498 = vrcp.f32 %v3797_v45  ;;  %v3798_v18 = vadd.f32 1.0, %v5479_v5  ;;  %v4425_v40 = vmul.f32 -1.442695, %v6648_v7  ;;  %v5051_v10 = vadd.f32 %v3572_v59, %v6596_v62 }
 0x23a   : > { %v5483_v8 = vpop.eup %5482  ;;  %4077 = vst.msk [vmem:[%s6487_s17 + $0x44] sm:$0xf] %vm4059_vm8, %v4482_v30  ;;  %5500 = vrcp.f32 %v3795_v50  ;;  %v3796_v53 = vadd.f32 1.0, %v5481_v25  ;;  %v4423_v51 = vmul.f32 -1.442695, %v6653_v4  ;;  %v6666_v31 = vadd.f32 %v5050_v34, %v6404_v49 }
 0x23b   : > { %v5485_v33 = vpop.eup %5484  ;;  %v3901_v0 = vmul.f32 %v5483_v8, %v6542_v23  ;;  %5502 = vrcp.f32 %v3798_v18  ;;  %v6670_v56 = vadd.f32 %v5051_v10, %v6404_v49 }
 0x23c   : > { %v5487_v41 = vpop.eup %5486  ;;  %v3899_v62 = vmul.f32 %v5485_v33, %v6549_v57  ;;  %5504 = vrcp.f32 %v3796_v53  ;;  %v4426_v1 = vmul.f32 -1.442695, %v6666_v31 }
 0x23d   : > { %v4487_v55 = vpack.c.bf16 %v3901_v0, %v3901_v0  ;;  %v3902_v20 = vmul.f32 %v5487_v41, %v6562_v6  ;;  %5506 = vpow2.f32 %v4425_v40  ;;  %v4424_v44 = vmul.f32 -1.442695, %v6670_v56 }
 0x23e   : > { %v5489_v27 = vpop.eup %5488  ;;  %v4485_v63 = vpack.c.bf16 %v3899_v62, %v3899_v62  ;;  %5508 = vpow2.f32 %v4423_v51 }
 0x23f   : > { %v5491_v23 = vpop.eup %5490  ;;  %v3900_v49 = vmul.f32 %v5489_v27, %v6566_v42  ;;  %4082 = vst.msk [vmem:[%s6487_s17 + $0x58] sm:$0xf] %vm4059_vm8, %v4487_v55  ;;  %v4488_v57 = vpack.c.bf16 %v3902_v20, %v3902_v20  ;;  %5510 = vpow2.f32 %v4426_v1 }
 0x240   : > { %v5493_v39 = vpop.eup %5492  ;;  %v3801_v14 = vadd.f32 1.0, %v5491_v23  ;;  %4080 = vst.msk [vmem:[%s6487_s17 + $0x50] sm:$0xf] %vm4059_vm8, %v4485_v63  ;;  %5512 = vpow2.f32 %v4424_v44 }
 0x241   : > { %v5495_v48 = vpop.eup %5494  ;;  %v4486_v6 = vpack.c.bf16 %v3900_v49, %v3900_v49  ;;  %v3799_v26 = vadd.f32 1.0, %v5493_v39  ;;  %4083 = vst.msk [vmem:[%s6487_s17 + $0x5c] sm:$0xf] %vm4059_vm8, %v4488_v57 }
 0x242   : > { %v5497_v29 = vpop.eup %5496  ;;  %5514 = vrcp.f32 %v3801_v14  ;;  %v3802_v36 = vadd.f32 1.0, %v5495_v48 }
 0x243   : > { %4081 = vst.msk [vmem:[%s6487_s17 + $0x54] sm:$0xf] %vm4059_vm8, %v4486_v6  ;;  %5516 = vrcp.f32 %v3799_v26  ;;  %v3800_v42 = vadd.f32 1.0, %v5497_v29  ;;  %v5499_v2 = vpop.eup %5498 }
 0x244   : > { %5518 = vrcp.f32 %v3802_v36  ;;  %v5501_v3 = vpop.eup %5500  ;;  %v3905_v43 = vmul.f32 %v5499_v2, %v6575_v13 }
 0x245   : > { %5520 = vrcp.f32 %v3800_v42  ;;  %v5503_v12 = vpop.eup %5502  ;;  %v3903_v32 = vmul.f32 %v5501_v3, %v6593_v11 }
 0x246   : > { %v5505_v52 = vpop.eup %5504  ;;  %v4491_v61 = vpack.c.bf16 %v3905_v43, %v3905_v43  ;;  %v3906_v21 = vmul.f32 %v5503_v12, %v6601_v47 }
 0x247   : > { %v5507_v16 = vpop.eup %5506  ;;  %v4489_v46 = vpack.c.bf16 %v3903_v32, %v3903_v32  ;;  %v3904_v28 = vmul.f32 %v5505_v52, %v6606_v60 }
 0x248   : > { %v5509_v37 = vpop.eup %5508  ;;  %4086 = vst.msk [vmem:[%s6487_s17 + $0x68] sm:$0xf] %vm4059_vm8, %v4491_v61  ;;  %v4492_v9 = vpack.c.bf16 %v3906_v21, %v3906_v21  ;;  %v3805_v59 = vadd.f32 1.0, %v5507_v16 }
 0x249   : > { %v5511_v13 = vpop.eup %5510  ;;  %4084 = vst.msk [vmem:[%s6487_s17 + $0x60] sm:$0xf] %vm4059_vm8, %v4489_v46  ;;  %v4490_v22 = vpack.c.bf16 %v3904_v28, %v3904_v28  ;;  %v3803_v11 = vadd.f32 1.0, %v5509_v37 }
 0x24a   : > { %v5513_v15 = vpop.eup %5512  ;;  %4087 = vst.msk [vmem:[%s6487_s17 + $0x6c] sm:$0xf] %vm4059_vm8, %v4492_v9  ;;  %5522 = vrcp.f32 %v3805_v59  ;;  %v3806_v47 = vadd.f32 1.0, %v5511_v13 }
 0x24b   : > { %4085 = vst.msk [vmem:[%s6487_s17 + $0x64] sm:$0xf] %vm4059_vm8, %v4490_v22  ;;  %5524 = vrcp.f32 %v3803_v11  ;;  %v3804_v60 = vadd.f32 1.0, %v5513_v15 }
 0x24c   : > { %v5515_v54 = vpop.eup %5514  ;;  %5526 = vrcp.f32 %v3806_v47 }
 0x24d   : > { %v5517_v19 = vpop.eup %5516  ;;  %v3909_v58 = vmul.f32 %v5515_v54, %v6615_v35  ;;  %5528 = vrcp.f32 %v3804_v60 }
 0x24e   : > { %v5519_v45 = vpop.eup %5518  ;;  %v3907_v5 = vmul.f32 %v5517_v19, %v6626_v38 }
 0x24f   : > { %v5521_v30 = vpop.eup %5520  ;;  %v4495_v50 = vpack.c.bf16 %v3909_v58, %v3909_v58  ;;  %v3910_v34 = vmul.f32 %v5519_v45, %v6634_v24 }
 0x250   : > { %v4493_v25 = vpack.c.bf16 %v3907_v5, %v3907_v5  ;;  %v3908_v18 = vmul.f32 %v5521_v30, %v6638_v17 }
 0x251   : > { %4090 = vst.msk [vmem:[%s6487_s17 + $0x78] sm:$0xf] %vm4059_vm8, %v4495_v50  ;;  %v4496_v40 = vpack.c.bf16 %v3910_v34, %v3910_v34 }
 0x252   : > { %4088 = vst.msk [vmem:[%s6487_s17 + $0x70] sm:$0xf] %vm4059_vm8, %v4493_v25  ;;  %v4494_v35 = vpack.c.bf16 %v3908_v18, %v3908_v18 }
 0x253   : > { %4091 = vst.msk [vmem:[%s6487_s17 + $0x7c] sm:$0xf] %vm4059_vm8, %v4496_v40 }
 0x254   : > { %4089 = vst.msk [vmem:[%s6487_s17 + $0x74] sm:$0xf] %vm4059_vm8, %v4494_v35  ;;  %v5523_v38 = vpop.eup %5522 }
 0x255   : > { %v5525_v10 = vpop.eup %5524  ;;  %v3913_v24 = vmul.f32 %v5523_v38, %v6648_v7 }
 0x256   : > { %v5527_v8 = vpop.eup %5526  ;;  %v3911_v17 = vmul.f32 %v5525_v10, %v6653_v4 }
 0x257   : > { %v5529_v53 = vpop.eup %5528  ;;  %v4499_v51 = vpack.c.bf16 %v3913_v24, %v3913_v24  ;;  %v3914_v33 = vmul.f32 %v5527_v8, %v6666_v31 }
 0x258   : > { %v4497_v0 = vpack.c.bf16 %v3911_v17, %v3911_v17  ;;  %v3912_v41 = vmul.f32 %v5529_v53, %v6670_v56 }
 0x259   : > { %4094 = vst.msk [vmem:[%s6487_s17 + $0x88] sm:$0xf] %vm4059_vm8, %v4499_v51  ;;  %v4500_v62 = vpack.c.bf16 %v3914_v33, %v3914_v33 }
 0x25a   : > { %4092 = vst.msk [vmem:[%s6487_s17 + $0x80] sm:$0xf] %vm4059_vm8, %v4497_v0  ;;  %v4498_v1 = vpack.c.bf16 %v3912_v41, %v3912_v41 }
 0x25b   : > { %4095 = vst.msk [vmem:[%s6487_s17 + $0x8c] sm:$0xf] %vm4059_vm8, %v4500_v62 }
 0x25c   : > { %4093 = vst.msk [vmem:[%s6487_s17 + $0x84] sm:$0xf] %vm4059_vm8, %v4498_v1 }
 0x25d PF: > { %s13_s12 = sadd.s32 1, %s5547_s12  }
 0x25e   : > { %p10_p4 = scmp.ge.s32.totalorder %s13_s12, 4  }
 0x260   :  { %12 = sbr.rel (!%p10_p4) target bundleno = 1 (0x1), region = 70 }

</bundles_post_ra>
